<compile_context>
chip_gen: v7x
topology: tpu7x:2x2x1
jax: 0.10.0
libtpu: 0.0.40
codegen_flags: <defaults>
</compile_context>

<pallas_src>
import math

import jax
import jax.numpy as jnp
from jax.experimental import pallas as pl
from jax.experimental.pallas import tpu as pltpu

# ---- model dims (small, TPU-lane-aligned synthetic config) ----
B = 2         # batch
S = 8         # target sequence length
SM = 16       # memory (source) sequence length
D = 128       # d_model ("size")  -- multiple of 128 (lane-dense)
H = 4         # attention heads
DK = D // H   # per-head dim = 32
DFF = 256     # feed-forward hidden
EPS = 1e-6    # LayerNorm eps (matches torch module)
NEG = -1e9    # masked_fill value

WEIGHT_ORDER = ("w_sa_qkv", "b_sa_qkv", "w_sa_o", "b_sa_o",
                "w_ca_q", "b_ca_q", "w_ca_kv", "b_ca_kv", "w_ca_o", "b_ca_o",
                "w_ff1", "b_ff1", "w_ff2", "b_ff2", "ln_a", "ln_b")


# =====================================================================
# Pallas kernel: single invocation, whole batch + all weights resident in VMEM
# =====================================================================
def decoder_layer_kernel(
        x_ref, mem_ref, tbias_ref, sbias_ref,
        w_sa_qkv_ref, b_sa_qkv_ref, w_sa_o_ref, b_sa_o_ref,
        w_ca_q_ref, b_ca_q_ref, w_ca_kv_ref, b_ca_kv_ref, w_ca_o_ref, b_ca_o_ref,
        w_ff1_ref, b_ff1_ref, w_ff2_ref, b_ff2_ref,
        ln_a_ref, ln_b_ref, out_ref):
    f32, bf16 = jnp.float32, jnp.bfloat16

    x = x_ref[...].reshape(B * S, D)          # (16, 128)  f32, all batches as rows
    mem = mem_ref[...].reshape(B * SM, D)     # (32, 128)  f32

    def layernorm(y, idx):
        # torch-module semantics: Bessel-corrected std (1/(D-1)), eps added to std
        # (matches the custom LayerNorm in the spec, NOT torch.nn.LayerNorm).
        mean = jnp.mean(y, axis=-1, keepdims=True)
        var = jnp.sum((y - mean) ** 2, axis=-1, keepdims=True) * (1.0 / (D - 1))
        return ln_a_ref[idx] * (y - mean) / (jnp.sqrt(var) + EPS) + ln_b_ref[idx]

    def dense(inp, w_ref, b_ref):
        # lane-dense (rows, D) @ (D, out) matmul: bf16 MXU operands, f32 accumulate
        return jnp.dot(inp.astype(bf16), w_ref[...],
                       preferred_element_type=f32) + b_ref[...]

    def split_heads(t, seq):
        # (B*seq, H*DK) -> (H*B, seq, DK); static 32-lane slices + leading-dim concat
        parts = [t[:, h * DK:(h + 1) * DK].reshape(B, seq, DK) for h in range(H)]
        return jnp.concatenate(parts, axis=0)

    def merge_heads(o, seq):
        # (H*B, seq, DK) -> (B*seq, H*DK=128) lane-dense context for the out-proj
        parts = [o[h * B:(h + 1) * B].reshape(B * seq, DK) for h in range(H)]
        return jnp.concatenate(parts, axis=-1)

    def attend(q, k, v, bias, w_o_ref, b_o_ref, sq, sk):
        # q:(B*sq,128)  k,v:(B*sk,128)  bias:(H*B, 1 or sq, sk) additive f32
        qh = split_heads(q, sq).astype(bf16)
        kh = split_heads(k, sk).astype(bf16)
        vh = split_heads(v, sk).astype(bf16)
        s = jnp.einsum("gqd,gkd->gqk", qh, kh,
                       preferred_element_type=f32) * (1.0 / math.sqrt(DK))
        s = s + bias                                    # additive mask, single VPU add
        m = jnp.max(s, axis=-1, keepdims=True)          # stable softmax
        e = jnp.exp(s - m)
        p = e * pl.reciprocal(jnp.sum(e, axis=-1, keepdims=True), approx=True)
        o = jnp.einsum("gqk,gkd->gqd", p.astype(bf16), vh,
                       preferred_element_type=f32)      # (H*B, sq, DK)
        # head merge folded into ONE 128-deep output projection (MXU does the head sum)
        return dense(merge_heads(o, sq), w_o_ref, b_o_ref)   # (B*sq, D)

    # ---- sublayer 0: masked self-attention ----
    n0 = layernorm(x, 0)
    qkv = dense(n0, w_sa_qkv_ref, b_sa_qkv_ref)             # (B*S, 3D) lane-dense
    x = x + attend(qkv[:, :D], qkv[:, D:2 * D], qkv[:, 2 * D:],
                   tbias_ref[...], w_sa_o_ref, b_sa_o_ref, S, S)

    # ---- sublayer 1: source (cross) attention ----
    n1 = layernorm(x, 1)
    q = dense(n1, w_ca_q_ref, b_ca_q_ref)                   # (B*S, D)
    kv = dense(mem, w_ca_kv_ref, b_ca_kv_ref)               # (B*SM, 2D)
    x = x + attend(q, kv[:, :D], kv[:, D:],
                   sbias_ref[...], w_ca_o_ref, b_ca_o_ref, S, SM)

    # ---- sublayer 2: position-wise feed-forward  w2(relu(w1(x))) ----
    n2 = layernorm(x, 2)
    hid = jnp.maximum(dense(n2, w_ff1_ref, b_ff1_ref), 0.0)  # (B*S, DFF)
    ff = dense(hid, w_ff2_ref, b_ff2_ref)                    # (B*S, D)

    out_ref[...] = (x + ff).reshape(B, S, D)                 # f32, 128-lane dense


# =====================================================================
# One-time weight packing (runs ONCE at init, outside the jitted forward)
# =====================================================================
def pack_params(p):
    bf16, f32 = jnp.bfloat16, jnp.float32
    return dict(
        w_sa_qkv=jnp.concatenate([p["sa_w"][0], p["sa_w"][1], p["sa_w"][2]],
                                 axis=-1).astype(bf16),                    # (D, 3D)
        b_sa_qkv=jnp.concatenate([p["sa_b"][0], p["sa_b"][1], p["sa_b"][2]],
                                 axis=-1).reshape(1, 3 * D).astype(f32),
        w_sa_o=p["sa_w"][3].astype(bf16),                                  # (D, D)
        b_sa_o=p["sa_b"][3].reshape(1, D).astype(f32),
        w_ca_q=p["ca_w"][0].astype(bf16),                                  # (D, D)
        b_ca_q=p["ca_b"][0].reshape(1, D).astype(f32),
        w_ca_kv=jnp.concatenate([p["ca_w"][1], p["ca_w"][2]],
                                axis=-1).astype(bf16),                     # (D, 2D)
        b_ca_kv=jnp.concatenate([p["ca_b"][1], p["ca_b"][2]],
                                axis=-1).reshape(1, 2 * D).astype(f32),
        w_ca_o=p["ca_w"][3].astype(bf16),
        b_ca_o=p["ca_b"][3].reshape(1, D).astype(f32),
        w_ff1=p["ff_w1"].astype(bf16),                                     # (D, DFF)
        b_ff1=p["ff_b1"].reshape(1, DFF).astype(f32),
        w_ff2=p["ff_w2"].astype(bf16),                                     # (DFF, D)
        b_ff2=p["ff_b2"].reshape(1, D).astype(f32),
        ln_a=p["ln_a"].reshape(3, 1, D).astype(f32),
        ln_b=p["ln_b"].reshape(3, 1, D).astype(f32),
    )


# =====================================================================
# Jitted forward: only mask-bias prep + the pallas_call
# =====================================================================
@jax.jit
def decoder_layer(x, memory, src_mask, tgt_mask, packed):
    # additive mask biases, already broadcast per head (index order h*B + b)
    tbias = jnp.where(tgt_mask == 0.0, NEG, 0.0).astype(jnp.float32)       # (B,S,S)
    tbias = jnp.broadcast_to(tbias[None], (H, B, S, S)).reshape(H * B, S, S)
    sbias = jnp.where(src_mask == 0.0, NEG, 0.0).astype(jnp.float32)       # (B,1,SM)
    sbias = jnp.broadcast_to(sbias[None], (H, B, 1, SM)).reshape(H * B, 1, SM)

    weights = tuple(packed[k] for k in WEIGHT_ORDER)
    vmem = pl.BlockSpec(memory_space=pltpu.MemorySpace.VMEM)

    return pl.pallas_call(
        decoder_layer_kernel,
        out_shape=jax.ShapeDtypeStruct((B, S, D), jnp.float32),
        in_specs=[vmem] * (4 + len(weights)),
        out_specs=vmem,
    )(x, memory, tbias, sbias, *weights)


# =====================================================================
# Pure-JAX f32 reference (same math as the torch module)
# =====================================================================
def _layernorm_ref(y, a, b):
    mean = jnp.mean(y, axis=-1, keepdims=True)
    std = jnp.sqrt(jnp.sum((y - mean) ** 2, axis=-1, keepdims=True) / (D - 1))
    return a * (y - mean) / (std + EPS) + b


def decoder_layer_ref(x, memory, src_mask, tgt_mask, p):
    def mha(q_in, k_in, v_in, mask, w, b):
        q = q_in @ w[0] + b[0]
        k = k_in @ w[1] + b[1]
        v = v_in @ w[2] + b[2]

        def split(t):
            bt, st, _ = t.shape
            return t.reshape(bt, st, H, DK).transpose(0, 2, 1, 3)

        qh, kh, vh = split(q), split(k), split(v)
        s = jnp.einsum("bhqd,bhkd->bhqk", qh, kh) / math.sqrt(DK)
        s = jnp.where(mask[:, None] == 0, NEG, s)
        pr = jax.nn.softmax(s, axis=-1)
        o = jnp.einsum("bhqk,bhkd->bhqd", pr, vh)
        o = o.transpose(0, 2, 1, 3).reshape(q.shape)
        return o @ w[3] + b[3]

    n0 = _layernorm_ref(x, p["ln_a"][0], p["ln_b"][0])
    x = x + mha(n0, n0, n0, tgt_mask, p["sa_w"], p["sa_b"])
    n1 = _layernorm_ref(x, p["ln_a"][1], p["ln_b"][1])
    x = x + mha(n1, memory, memory, src_mask, p["ca_w"], p["ca_b"])
    n2 = _layernorm_ref(x, p["ln_a"][2], p["ln_b"][2])
    hid = jnp.maximum(n2 @ p["ff_w1"] + p["ff_b1"], 0.0)
    return x + (hid @ p["ff_w2"] + p["ff_b2"])


def init_params(key):
    ks = jax.random.split(key, 8)
    sc = 0.05
    return {
        "sa_w": sc * jax.random.normal(ks[0], (4, D, D), jnp.float32),   # Wq,Wk,Wv,Wo (in,out)
        "sa_b": sc * jax.random.normal(ks[1], (4, D), jnp.float32),
        "ca_w": sc * jax.random.normal(ks[2], (4, D, D), jnp.float32),
        "ca_b": sc * jax.random.normal(ks[3], (4, D), jnp.float32),
        "ff_w1": sc * jax.random.normal(ks[4], (D, DFF), jnp.float32),
        "ff_b1": sc * jax.random.normal(ks[5], (DFF,), jnp.float32),
        "ff_w2": sc * jax.random.normal(ks[6], (DFF, D), jnp.float32),
        "ff_b2": sc * jax.random.normal(ks[7], (D,), jnp.float32),
        "ln_a": jnp.ones((3, D), jnp.float32),    # LayerNorm a_2 init = ones
        "ln_b": jnp.zeros((3, D), jnp.float32),   # LayerNorm b_2 init = zeros
    }


if __name__ == "__main__":
    key = jax.random.PRNGKey(0)
    kx, km, kp = jax.random.split(key, 3)

    x = jax.random.normal(kx, (B, S, D), jnp.float32)
    memory = jax.random.normal(km, (B, SM, D), jnp.float32)

    # causal target mask (float 0/1), shared across batch
    tgt_mask = jnp.broadcast_to(jnp.tril(jnp.ones((S, S), jnp.float32)), (B, S, S))
    # source mask: batch 1 has its last three memory positions masked out
    src_mask = jnp.ones((B, 1, SM), jnp.float32)
    src_mask = src_mask.at[1, 0, SM - 3:].set(0.0)

    params = init_params(kp)
    packed = pack_params(params)       # pack ONCE; not part of the per-call jit path

    out = jax.block_until_ready(decoder_layer(x, memory, src_mask, tgt_mask, packed))
    ref = decoder_layer_ref(x, memory, src_mask, tgt_mask, params)

    assert out.shape == (B, S, D)
    max_err = float(jnp.max(jnp.abs(out - ref)))
    # bf16 MXU operands + approx softmax reciprocal => small deliberate drift vs f32 ref.
    assert jnp.allclose(out, ref, atol=3e-2, rtol=3e-2), (
        f"mismatch vs JAX reference (max abs err {max_err})")
    print("KERNEL_OK")
</pallas_src>

<mosaic_0001>
module attributes {stable_mosaic.version = 11 : i64} {
  func.func @decoder_layer_kernel(%arg0: memref<2x8x128xf32, #tpu.memory_space<vmem>>, %arg1: memref<2x16x128xf32, #tpu.memory_space<vmem>>, %arg2: memref<8x8x8xf32, #tpu.memory_space<vmem>>, %arg3: memref<8x1x16xf32, #tpu.memory_space<vmem>>, %arg4: memref<128x384xbf16, #tpu.memory_space<vmem>>, %arg5: memref<1x384xf32, #tpu.memory_space<vmem>>, %arg6: memref<128x128xbf16, #tpu.memory_space<vmem>>, %arg7: memref<1x128xf32, #tpu.memory_space<vmem>>, %arg8: memref<128x128xbf16, #tpu.memory_space<vmem>>, %arg9: memref<1x128xf32, #tpu.memory_space<vmem>>, %arg10: memref<128x256xbf16, #tpu.memory_space<vmem>>, %arg11: memref<1x256xf32, #tpu.memory_space<vmem>>, %arg12: memref<128x128xbf16, #tpu.memory_space<vmem>>, %arg13: memref<1x128xf32, #tpu.memory_space<vmem>>, %arg14: memref<128x256xbf16, #tpu.memory_space<vmem>>, %arg15: memref<1x256xf32, #tpu.memory_space<vmem>>, %arg16: memref<256x128xbf16, #tpu.memory_space<vmem>>, %arg17: memref<1x128xf32, #tpu.memory_space<vmem>>, %arg18: memref<3x1x128xf32, #tpu.memory_space<vmem>>, %arg19: memref<3x1x128xf32, #tpu.memory_space<vmem>>, %arg20: memref<2x8x128xf32, #tpu.memory_space<vmem>>) attributes {dimension_semantics = [], scalar_prefetch = 0 : i64, scratch_operands = 0 : i64, tpu.core_type = #tpu.core_type<tc>} {
    %c0 = arith.constant 0 : index
    %c0_0 = arith.constant 0 : index
    %c0_1 = arith.constant 0 : index
    %0 = vector.load %arg0[%c0, %c0_0, %c0_1] : memref<2x8x128xf32, #tpu.memory_space<vmem>>, vector<2x8x128xf32>
    %1 = vector.shape_cast %0 : vector<2x8x128xf32> to vector<16x128xf32>
    %c0_2 = arith.constant 0 : index
    %c0_3 = arith.constant 0 : index
    %c0_4 = arith.constant 0 : index
    %2 = vector.load %arg1[%c0_2, %c0_3, %c0_4] : memref<2x16x128xf32, #tpu.memory_space<vmem>>, vector<2x16x128xf32>
    %3 = vector.shape_cast %2 : vector<2x16x128xf32> to vector<32x128xf32>
    %cst = arith.constant dense<0.000000e+00> : vector<16xf32>
    %4 = vector.multi_reduction <add>, %1, %cst [1] : vector<16x128xf32> to vector<16xf32>
    %5 = vector.shape_cast %4 : vector<16xf32> to vector<16x1xf32>
    %cst_5 = arith.constant 1.280000e+02 : f32
    %6 = vector.broadcast %cst_5 : f32 to vector<16x1xf32>
    %7 = arith.divf %5, %6 : vector<16x1xf32>
    %8 = vector.broadcast %7 : vector<16x1xf32> to vector<16x128xf32>
    %9 = arith.subf %1, %8 : vector<16x128xf32>
    %10 = arith.mulf %9, %9 : vector<16x128xf32>
    %cst_6 = arith.constant dense<0.000000e+00> : vector<16xf32>
    %11 = vector.multi_reduction <add>, %10, %cst_6 [1] : vector<16x128xf32> to vector<16xf32>
    %12 = vector.shape_cast %11 : vector<16xf32> to vector<16x1xf32>
    %cst_7 = arith.constant 0.00787401571 : f32
    %13 = vector.broadcast %cst_7 : f32 to vector<16x1xf32>
    %14 = arith.mulf %12, %13 : vector<16x1xf32>
    %c0_8 = arith.constant 0 : index
    %c0_9 = arith.constant 0 : index
    %c0_10 = arith.constant 0 : index
    %15 = vector.load %arg18[%c0_8, %c0_9, %c0_10] : memref<3x1x128xf32, #tpu.memory_space<vmem>>, vector<1x1x128xf32>
    %16 = vector.shape_cast %15 : vector<1x1x128xf32> to vector<1x128xf32>
    %17 = vector.broadcast %7 : vector<16x1xf32> to vector<16x128xf32>
    %18 = arith.subf %1, %17 : vector<16x128xf32>
    %19 = vector.broadcast %16 : vector<1x128xf32> to vector<16x128xf32>
    %20 = arith.mulf %19, %18 : vector<16x128xf32>
    %21 = math.sqrt %14 : vector<16x1xf32>
    %cst_11 = arith.constant 9.99999997E-7 : f32
    %22 = vector.broadcast %cst_11 : f32 to vector<16x1xf32>
    %23 = arith.addf %21, %22 : vector<16x1xf32>
    %24 = vector.broadcast %23 : vector<16x1xf32> to vector<16x128xf32>
    %25 = arith.divf %20, %24 : vector<16x128xf32>
    %c0_12 = arith.constant 0 : index
    %c0_13 = arith.constant 0 : index
    %c0_14 = arith.constant 0 : index
    %26 = vector.load %arg19[%c0_12, %c0_13, %c0_14] : memref<3x1x128xf32, #tpu.memory_space<vmem>>, vector<1x1x128xf32>
    %27 = vector.shape_cast %26 : vector<1x1x128xf32> to vector<1x128xf32>
    %28 = vector.broadcast %27 : vector<1x128xf32> to vector<16x128xf32>
    %29 = arith.addf %25, %28 : vector<16x128xf32>
    %30 = arith.truncf %29 : vector<16x128xf32> to vector<16x128xbf16>
    %c0_15 = arith.constant 0 : index
    %c0_16 = arith.constant 0 : index
    %31 = vector.load %arg4[%c0_15, %c0_16] : memref<128x384xbf16, #tpu.memory_space<vmem>>, vector<128x384xbf16>
    %cst_17 = arith.constant dense<0.000000e+00> : vector<16x384xf32>
    %32 = tpu.matmul %30, %31, %cst_17 {dimension_numbers = #tpu.dot_dimension_numbers<[1], [0], [0], [1], [0, 0, 1, 1], [], []>} : vector<16x128xbf16>, vector<128x384xbf16>, vector<16x384xf32> -> vector<16x384xf32>
    %c0_18 = arith.constant 0 : index
    %c0_19 = arith.constant 0 : index
    %33 = vector.load %arg5[%c0_18, %c0_19] : memref<1x384xf32, #tpu.memory_space<vmem>>, vector<1x384xf32>
    %34 = vector.broadcast %33 : vector<1x384xf32> to vector<16x384xf32>
    %35 = arith.addf %32, %34 : vector<16x384xf32>
    %36 = vector.extract_strided_slice %35 {offsets = [0, 0], sizes = [16, 128], strides = [1, 1]} : vector<16x384xf32> to vector<16x128xf32>
    %37 = vector.extract_strided_slice %35 {offsets = [0, 128], sizes = [16, 128], strides = [1, 1]} : vector<16x384xf32> to vector<16x128xf32>
    %38 = vector.extract_strided_slice %35 {offsets = [0, 256], sizes = [16, 128], strides = [1, 1]} : vector<16x384xf32> to vector<16x128xf32>
    %c0_20 = arith.constant 0 : index
    %c0_21 = arith.constant 0 : index
    %c0_22 = arith.constant 0 : index
    %39 = vector.load %arg2[%c0_20, %c0_21, %c0_22] : memref<8x8x8xf32, #tpu.memory_space<vmem>>, vector<8x8x8xf32>
    %40 = vector.extract_strided_slice %36 {offsets = [0, 0], sizes = [16, 32], strides = [1, 1]} : vector<16x128xf32> to vector<16x32xf32>
    %41 = vector.shape_cast %40 : vector<16x32xf32> to vector<2x8x32xf32>
    %42 = vector.extract_strided_slice %36 {offsets = [0, 32], sizes = [16, 32], strides = [1, 1]} : vector<16x128xf32> to vector<16x32xf32>
    %43 = vector.shape_cast %42 : vector<16x32xf32> to vector<2x8x32xf32>
    %44 = vector.extract_strided_slice %36 {offsets = [0, 64], sizes = [16, 32], strides = [1, 1]} : vector<16x128xf32> to vector<16x32xf32>
    %45 = vector.shape_cast %44 : vector<16x32xf32> to vector<2x8x32xf32>
    %46 = vector.extract_strided_slice %36 {offsets = [0, 96], sizes = [16, 32], strides = [1, 1]} : vector<16x128xf32> to vector<16x32xf32>
    %47 = vector.shape_cast %46 : vector<16x32xf32> to vector<2x8x32xf32>
    %48 = tpu.concatenate %41, %43, %45, %47 in 0 : vector<2x8x32xf32>, vector<2x8x32xf32>, vector<2x8x32xf32>, vector<2x8x32xf32> -> vector<8x8x32xf32>
    %49 = arith.truncf %48 : vector<8x8x32xf32> to vector<8x8x32xbf16>
    %50 = vector.extract_strided_slice %37 {offsets = [0, 0], sizes = [16, 32], strides = [1, 1]} : vector<16x128xf32> to vector<16x32xf32>
    %51 = vector.shape_cast %50 : vector<16x32xf32> to vector<2x8x32xf32>
    %52 = vector.extract_strided_slice %37 {offsets = [0, 32], sizes = [16, 32], strides = [1, 1]} : vector<16x128xf32> to vector<16x32xf32>
    %53 = vector.shape_cast %52 : vector<16x32xf32> to vector<2x8x32xf32>
    %54 = vector.extract_strided_slice %37 {offsets = [0, 64], sizes = [16, 32], strides = [1, 1]} : vector<16x128xf32> to vector<16x32xf32>
    %55 = vector.shape_cast %54 : vector<16x32xf32> to vector<2x8x32xf32>
    %56 = vector.extract_strided_slice %37 {offsets = [0, 96], sizes = [16, 32], strides = [1, 1]} : vector<16x128xf32> to vector<16x32xf32>
    %57 = vector.shape_cast %56 : vector<16x32xf32> to vector<2x8x32xf32>
    %58 = tpu.concatenate %51, %53, %55, %57 in 0 : vector<2x8x32xf32>, vector<2x8x32xf32>, vector<2x8x32xf32>, vector<2x8x32xf32> -> vector<8x8x32xf32>
    %59 = arith.truncf %58 : vector<8x8x32xf32> to vector<8x8x32xbf16>
    %60 = vector.extract_strided_slice %38 {offsets = [0, 0], sizes = [16, 32], strides = [1, 1]} : vector<16x128xf32> to vector<16x32xf32>
    %61 = vector.shape_cast %60 : vector<16x32xf32> to vector<2x8x32xf32>
    %62 = vector.extract_strided_slice %38 {offsets = [0, 32], sizes = [16, 32], strides = [1, 1]} : vector<16x128xf32> to vector<16x32xf32>
    %63 = vector.shape_cast %62 : vector<16x32xf32> to vector<2x8x32xf32>
    %64 = vector.extract_strided_slice %38 {offsets = [0, 64], sizes = [16, 32], strides = [1, 1]} : vector<16x128xf32> to vector<16x32xf32>
    %65 = vector.shape_cast %64 : vector<16x32xf32> to vector<2x8x32xf32>
    %66 = vector.extract_strided_slice %38 {offsets = [0, 96], sizes = [16, 32], strides = [1, 1]} : vector<16x128xf32> to vector<16x32xf32>
    %67 = vector.shape_cast %66 : vector<16x32xf32> to vector<2x8x32xf32>
    %68 = tpu.concatenate %61, %63, %65, %67 in 0 : vector<2x8x32xf32>, vector<2x8x32xf32>, vector<2x8x32xf32>, vector<2x8x32xf32> -> vector<8x8x32xf32>
    %69 = arith.truncf %68 : vector<8x8x32xf32> to vector<8x8x32xbf16>
    "tpu.trace_start"() <{level = 10 : i32, message = "gqd,gkd->gqk"}> : () -> ()
    %cst_23 = arith.constant dense<0.000000e+00> : vector<8x8x8xf32>
    %70 = tpu.matmul %49, %59, %cst_23 {dimension_numbers = #tpu.dot_dimension_numbers<[2], [2], [1], [1], [0, 0, 0, 1, 1, 1], [0], [0]>} : vector<8x8x32xbf16>, vector<8x8x32xbf16>, vector<8x8x8xf32> -> vector<8x8x8xf32>
    "tpu.trace_stop"() : () -> ()
    %cst_24 = arith.constant 0.176776692 : f32
    %71 = vector.broadcast %cst_24 : f32 to vector<8x8x8xf32>
    %72 = arith.mulf %70, %71 : vector<8x8x8xf32>
    %73 = arith.addf %72, %39 : vector<8x8x8xf32>
    %cst_25 = arith.constant dense<0xFF800000> : vector<8x8xf32>
    %74 = vector.multi_reduction <maximumf>, %73, %cst_25 [2] : vector<8x8x8xf32> to vector<8x8xf32>
    %75 = vector.shape_cast %74 : vector<8x8xf32> to vector<8x8x1xf32>
    %76 = vector.broadcast %75 : vector<8x8x1xf32> to vector<8x8x8xf32>
    %77 = arith.subf %73, %76 : vector<8x8x8xf32>
    %78 = math.exp %77 : vector<8x8x8xf32>
    %cst_26 = arith.constant dense<0.000000e+00> : vector<8x8xf32>
    %79 = vector.multi_reduction <add>, %78, %cst_26 [2] : vector<8x8x8xf32> to vector<8x8xf32>
    %80 = vector.shape_cast %79 : vector<8x8xf32> to vector<8x8x1xf32>
    %81 = tpu.reciprocal %80 {approx = true} : vector<8x8x1xf32> -> vector<8x8x1xf32>
    %82 = vector.broadcast %81 : vector<8x8x1xf32> to vector<8x8x8xf32>
    %83 = arith.mulf %78, %82 : vector<8x8x8xf32>
    %84 = arith.truncf %83 : vector<8x8x8xf32> to vector<8x8x8xbf16>
    "tpu.trace_start"() <{level = 10 : i32, message = "gqk,gkd->gqd"}> : () -> ()
    %cst_27 = arith.constant dense<0.000000e+00> : vector<8x8x32xf32>
    %85 = tpu.matmul %84, %69, %cst_27 {dimension_numbers = #tpu.dot_dimension_numbers<[2], [1], [1], [2], [0, 0, 0, 1, 1, 2], [0], [0]>} : vector<8x8x8xbf16>, vector<8x8x32xbf16>, vector<8x8x32xf32> -> vector<8x8x32xf32>
    "tpu.trace_stop"() : () -> ()
    %86 = vector.extract_strided_slice %85 {offsets = [0, 0, 0], sizes = [2, 8, 32], strides = [1, 1, 1]} : vector<8x8x32xf32> to vector<2x8x32xf32>
    %87 = vector.shape_cast %86 : vector<2x8x32xf32> to vector<16x32xf32>
    %88 = vector.extract_strided_slice %85 {offsets = [2, 0, 0], sizes = [2, 8, 32], strides = [1, 1, 1]} : vector<8x8x32xf32> to vector<2x8x32xf32>
    %89 = vector.shape_cast %88 : vector<2x8x32xf32> to vector<16x32xf32>
    %90 = vector.extract_strided_slice %85 {offsets = [4, 0, 0], sizes = [2, 8, 32], strides = [1, 1, 1]} : vector<8x8x32xf32> to vector<2x8x32xf32>
    %91 = vector.shape_cast %90 : vector<2x8x32xf32> to vector<16x32xf32>
    %92 = vector.extract_strided_slice %85 {offsets = [6, 0, 0], sizes = [2, 8, 32], strides = [1, 1, 1]} : vector<8x8x32xf32> to vector<2x8x32xf32>
    %93 = vector.shape_cast %92 : vector<2x8x32xf32> to vector<16x32xf32>
    %94 = tpu.concatenate %87, %89, %91, %93 in 1 : vector<16x32xf32>, vector<16x32xf32>, vector<16x32xf32>, vector<16x32xf32> -> vector<16x128xf32>
    %95 = arith.truncf %94 : vector<16x128xf32> to vector<16x128xbf16>
    %c0_28 = arith.constant 0 : index
    %c0_29 = arith.constant 0 : index
    %96 = vector.load %arg6[%c0_28, %c0_29] : memref<128x128xbf16, #tpu.memory_space<vmem>>, vector<128x128xbf16>
    %cst_30 = arith.constant dense<0.000000e+00> : vector<16x128xf32>
    %97 = tpu.matmul %95, %96, %cst_30 {dimension_numbers = #tpu.dot_dimension_numbers<[1], [0], [0], [1], [0, 0, 1, 1], [], []>} : vector<16x128xbf16>, vector<128x128xbf16>, vector<16x128xf32> -> vector<16x128xf32>
    %c0_31 = arith.constant 0 : index
    %c0_32 = arith.constant 0 : index
    %98 = vector.load %arg7[%c0_31, %c0_32] : memref<1x128xf32, #tpu.memory_space<vmem>>, vector<1x128xf32>
    %99 = vector.broadcast %98 : vector<1x128xf32> to vector<16x128xf32>
    %100 = arith.addf %97, %99 : vector<16x128xf32>
    %101 = arith.addf %1, %100 : vector<16x128xf32>
    %cst_33 = arith.constant dense<0.000000e+00> : vector<16xf32>
    %102 = vector.multi_reduction <add>, %101, %cst_33 [1] : vector<16x128xf32> to vector<16xf32>
    %103 = vector.shape_cast %102 : vector<16xf32> to vector<16x1xf32>
    %cst_34 = arith.constant 1.280000e+02 : f32
    %104 = vector.broadcast %cst_34 : f32 to vector<16x1xf32>
    %105 = arith.divf %103, %104 : vector<16x1xf32>
    %106 = vector.broadcast %105 : vector<16x1xf32> to vector<16x128xf32>
    %107 = arith.subf %101, %106 : vector<16x128xf32>
    %108 = arith.mulf %107, %107 : vector<16x128xf32>
    %cst_35 = arith.constant dense<0.000000e+00> : vector<16xf32>
    %109 = vector.multi_reduction <add>, %108, %cst_35 [1] : vector<16x128xf32> to vector<16xf32>
    %110 = vector.shape_cast %109 : vector<16xf32> to vector<16x1xf32>
    %cst_36 = arith.constant 0.00787401571 : f32
    %111 = vector.broadcast %cst_36 : f32 to vector<16x1xf32>
    %112 = arith.mulf %110, %111 : vector<16x1xf32>
    %c1 = arith.constant 1 : index
    %c0_37 = arith.constant 0 : index
    %c0_38 = arith.constant 0 : index
    %113 = vector.load %arg18[%c1, %c0_37, %c0_38] : memref<3x1x128xf32, #tpu.memory_space<vmem>>, vector<1x1x128xf32>
    %114 = vector.shape_cast %113 : vector<1x1x128xf32> to vector<1x128xf32>
    %115 = vector.broadcast %105 : vector<16x1xf32> to vector<16x128xf32>
    %116 = arith.subf %101, %115 : vector<16x128xf32>
    %117 = vector.broadcast %114 : vector<1x128xf32> to vector<16x128xf32>
    %118 = arith.mulf %117, %116 : vector<16x128xf32>
    %119 = math.sqrt %112 : vector<16x1xf32>
    %cst_39 = arith.constant 9.99999997E-7 : f32
    %120 = vector.broadcast %cst_39 : f32 to vector<16x1xf32>
    %121 = arith.addf %119, %120 : vector<16x1xf32>
    %122 = vector.broadcast %121 : vector<16x1xf32> to vector<16x128xf32>
    %123 = arith.divf %118, %122 : vector<16x128xf32>
    %c1_40 = arith.constant 1 : index
    %c0_41 = arith.constant 0 : index
    %c0_42 = arith.constant 0 : index
    %124 = vector.load %arg19[%c1_40, %c0_41, %c0_42] : memref<3x1x128xf32, #tpu.memory_space<vmem>>, vector<1x1x128xf32>
    %125 = vector.shape_cast %124 : vector<1x1x128xf32> to vector<1x128xf32>
    %126 = vector.broadcast %125 : vector<1x128xf32> to vector<16x128xf32>
    %127 = arith.addf %123, %126 : vector<16x128xf32>
    %128 = arith.truncf %127 : vector<16x128xf32> to vector<16x128xbf16>
    %c0_43 = arith.constant 0 : index
    %c0_44 = arith.constant 0 : index
    %129 = vector.load %arg8[%c0_43, %c0_44] : memref<128x128xbf16, #tpu.memory_space<vmem>>, vector<128x128xbf16>
    %cst_45 = arith.constant dense<0.000000e+00> : vector<16x128xf32>
    %130 = tpu.matmul %128, %129, %cst_45 {dimension_numbers = #tpu.dot_dimension_numbers<[1], [0], [0], [1], [0, 0, 1, 1], [], []>} : vector<16x128xbf16>, vector<128x128xbf16>, vector<16x128xf32> -> vector<16x128xf32>
    %c0_46 = arith.constant 0 : index
    %c0_47 = arith.constant 0 : index
    %131 = vector.load %arg9[%c0_46, %c0_47] : memref<1x128xf32, #tpu.memory_space<vmem>>, vector<1x128xf32>
    %132 = vector.broadcast %131 : vector<1x128xf32> to vector<16x128xf32>
    %133 = arith.addf %130, %132 : vector<16x128xf32>
    %134 = arith.truncf %3 : vector<32x128xf32> to vector<32x128xbf16>
    %c0_48 = arith.constant 0 : index
    %c0_49 = arith.constant 0 : index
    %135 = vector.load %arg10[%c0_48, %c0_49] : memref<128x256xbf16, #tpu.memory_space<vmem>>, vector<128x256xbf16>
    %cst_50 = arith.constant dense<0.000000e+00> : vector<32x256xf32>
    %136 = tpu.matmul %134, %135, %cst_50 {dimension_numbers = #tpu.dot_dimension_numbers<[1], [0], [0], [1], [0, 0, 1, 1], [], []>} : vector<32x128xbf16>, vector<128x256xbf16>, vector<32x256xf32> -> vector<32x256xf32>
    %c0_51 = arith.constant 0 : index
    %c0_52 = arith.constant 0 : index
    %137 = vector.load %arg11[%c0_51, %c0_52] : memref<1x256xf32, #tpu.memory_space<vmem>>, vector<1x256xf32>
    %138 = vector.broadcast %137 : vector<1x256xf32> to vector<32x256xf32>
    %139 = arith.addf %136, %138 : vector<32x256xf32>
    %140 = vector.extract_strided_slice %139 {offsets = [0, 0], sizes = [32, 128], strides = [1, 1]} : vector<32x256xf32> to vector<32x128xf32>
    %141 = vector.extract_strided_slice %139 {offsets = [0, 128], sizes = [32, 128], strides = [1, 1]} : vector<32x256xf32> to vector<32x128xf32>
    %c0_53 = arith.constant 0 : index
    %c0_54 = arith.constant 0 : index
    %c0_55 = arith.constant 0 : index
    %142 = vector.load %arg3[%c0_53, %c0_54, %c0_55] : memref<8x1x16xf32, #tpu.memory_space<vmem>>, vector<8x1x16xf32>
    %143 = vector.extract_strided_slice %133 {offsets = [0, 0], sizes = [16, 32], strides = [1, 1]} : vector<16x128xf32> to vector<16x32xf32>
    %144 = vector.shape_cast %143 : vector<16x32xf32> to vector<2x8x32xf32>
    %145 = vector.extract_strided_slice %133 {offsets = [0, 32], sizes = [16, 32], strides = [1, 1]} : vector<16x128xf32> to vector<16x32xf32>
    %146 = vector.shape_cast %145 : vector<16x32xf32> to vector<2x8x32xf32>
    %147 = vector.extract_strided_slice %133 {offsets = [0, 64], sizes = [16, 32], strides = [1, 1]} : vector<16x128xf32> to vector<16x32xf32>
    %148 = vector.shape_cast %147 : vector<16x32xf32> to vector<2x8x32xf32>
    %149 = vector.extract_strided_slice %133 {offsets = [0, 96], sizes = [16, 32], strides = [1, 1]} : vector<16x128xf32> to vector<16x32xf32>
    %150 = vector.shape_cast %149 : vector<16x32xf32> to vector<2x8x32xf32>
    %151 = tpu.concatenate %144, %146, %148, %150 in 0 : vector<2x8x32xf32>, vector<2x8x32xf32>, vector<2x8x32xf32>, vector<2x8x32xf32> -> vector<8x8x32xf32>
    %152 = arith.truncf %151 : vector<8x8x32xf32> to vector<8x8x32xbf16>
    %153 = vector.extract_strided_slice %140 {offsets = [0, 0], sizes = [32, 32], strides = [1, 1]} : vector<32x128xf32> to vector<32x32xf32>
    %154 = vector.shape_cast %153 : vector<32x32xf32> to vector<2x16x32xf32>
    %155 = vector.extract_strided_slice %140 {offsets = [0, 32], sizes = [32, 32], strides = [1, 1]} : vector<32x128xf32> to vector<32x32xf32>
    %156 = vector.shape_cast %155 : vector<32x32xf32> to vector<2x16x32xf32>
    %157 = vector.extract_strided_slice %140 {offsets = [0, 64], sizes = [32, 32], strides = [1, 1]} : vector<32x128xf32> to vector<32x32xf32>
    %158 = vector.shape_cast %157 : vector<32x32xf32> to vector<2x16x32xf32>
    %159 = vector.extract_strided_slice %140 {offsets = [0, 96], sizes = [32, 32], strides = [1, 1]} : vector<32x128xf32> to vector<32x32xf32>
    %160 = vector.shape_cast %159 : vector<32x32xf32> to vector<2x16x32xf32>
    %161 = tpu.concatenate %154, %156, %158, %160 in 0 : vector<2x16x32xf32>, vector<2x16x32xf32>, vector<2x16x32xf32>, vector<2x16x32xf32> -> vector<8x16x32xf32>
    %162 = arith.truncf %161 : vector<8x16x32xf32> to vector<8x16x32xbf16>
    %163 = vector.extract_strided_slice %141 {offsets = [0, 0], sizes = [32, 32], strides = [1, 1]} : vector<32x128xf32> to vector<32x32xf32>
    %164 = vector.shape_cast %163 : vector<32x32xf32> to vector<2x16x32xf32>
    %165 = vector.extract_strided_slice %141 {offsets = [0, 32], sizes = [32, 32], strides = [1, 1]} : vector<32x128xf32> to vector<32x32xf32>
    %166 = vector.shape_cast %165 : vector<32x32xf32> to vector<2x16x32xf32>
    %167 = vector.extract_strided_slice %141 {offsets = [0, 64], sizes = [32, 32], strides = [1, 1]} : vector<32x128xf32> to vector<32x32xf32>
    %168 = vector.shape_cast %167 : vector<32x32xf32> to vector<2x16x32xf32>
    %169 = vector.extract_strided_slice %141 {offsets = [0, 96], sizes = [32, 32], strides = [1, 1]} : vector<32x128xf32> to vector<32x32xf32>
    %170 = vector.shape_cast %169 : vector<32x32xf32> to vector<2x16x32xf32>
    %171 = tpu.concatenate %164, %166, %168, %170 in 0 : vector<2x16x32xf32>, vector<2x16x32xf32>, vector<2x16x32xf32>, vector<2x16x32xf32> -> vector<8x16x32xf32>
    %172 = arith.truncf %171 : vector<8x16x32xf32> to vector<8x16x32xbf16>
    "tpu.trace_start"() <{level = 10 : i32, message = "gqd,gkd->gqk"}> : () -> ()
    %cst_56 = arith.constant dense<0.000000e+00> : vector<8x8x16xf32>
    %173 = tpu.matmul %152, %162, %cst_56 {dimension_numbers = #tpu.dot_dimension_numbers<[2], [2], [1], [1], [0, 0, 0, 1, 1, 1], [0], [0]>} : vector<8x8x32xbf16>, vector<8x16x32xbf16>, vector<8x8x16xf32> -> vector<8x8x16xf32>
    "tpu.trace_stop"() : () -> ()
    %cst_57 = arith.constant 0.176776692 : f32
    %174 = vector.broadcast %cst_57 : f32 to vector<8x8x16xf32>
    %175 = arith.mulf %173, %174 : vector<8x8x16xf32>
    %176 = vector.broadcast %142 : vector<8x1x16xf32> to vector<8x8x16xf32>
    %177 = arith.addf %175, %176 : vector<8x8x16xf32>
    %cst_58 = arith.constant dense<0xFF800000> : vector<8x8xf32>
    %178 = vector.multi_reduction <maximumf>, %177, %cst_58 [2] : vector<8x8x16xf32> to vector<8x8xf32>
    %179 = vector.shape_cast %178 : vector<8x8xf32> to vector<8x8x1xf32>
    %180 = vector.broadcast %179 : vector<8x8x1xf32> to vector<8x8x16xf32>
    %181 = arith.subf %177, %180 : vector<8x8x16xf32>
    %182 = math.exp %181 : vector<8x8x16xf32>
    %cst_59 = arith.constant dense<0.000000e+00> : vector<8x8xf32>
    %183 = vector.multi_reduction <add>, %182, %cst_59 [2] : vector<8x8x16xf32> to vector<8x8xf32>
    %184 = vector.shape_cast %183 : vector<8x8xf32> to vector<8x8x1xf32>
    %185 = tpu.reciprocal %184 {approx = true} : vector<8x8x1xf32> -> vector<8x8x1xf32>
    %186 = vector.broadcast %185 : vector<8x8x1xf32> to vector<8x8x16xf32>
    %187 = arith.mulf %182, %186 : vector<8x8x16xf32>
    %188 = arith.truncf %187 : vector<8x8x16xf32> to vector<8x8x16xbf16>
    "tpu.trace_start"() <{level = 10 : i32, message = "gqk,gkd->gqd"}> : () -> ()
    %cst_60 = arith.constant dense<0.000000e+00> : vector<8x8x32xf32>
    %189 = tpu.matmul %188, %172, %cst_60 {dimension_numbers = #tpu.dot_dimension_numbers<[2], [1], [1], [2], [0, 0, 0, 1, 1, 2], [0], [0]>} : vector<8x8x16xbf16>, vector<8x16x32xbf16>, vector<8x8x32xf32> -> vector<8x8x32xf32>
    "tpu.trace_stop"() : () -> ()
    %190 = vector.extract_strided_slice %189 {offsets = [0, 0, 0], sizes = [2, 8, 32], strides = [1, 1, 1]} : vector<8x8x32xf32> to vector<2x8x32xf32>
    %191 = vector.shape_cast %190 : vector<2x8x32xf32> to vector<16x32xf32>
    %192 = vector.extract_strided_slice %189 {offsets = [2, 0, 0], sizes = [2, 8, 32], strides = [1, 1, 1]} : vector<8x8x32xf32> to vector<2x8x32xf32>
    %193 = vector.shape_cast %192 : vector<2x8x32xf32> to vector<16x32xf32>
    %194 = vector.extract_strided_slice %189 {offsets = [4, 0, 0], sizes = [2, 8, 32], strides = [1, 1, 1]} : vector<8x8x32xf32> to vector<2x8x32xf32>
    %195 = vector.shape_cast %194 : vector<2x8x32xf32> to vector<16x32xf32>
    %196 = vector.extract_strided_slice %189 {offsets = [6, 0, 0], sizes = [2, 8, 32], strides = [1, 1, 1]} : vector<8x8x32xf32> to vector<2x8x32xf32>
    %197 = vector.shape_cast %196 : vector<2x8x32xf32> to vector<16x32xf32>
    %198 = tpu.concatenate %191, %193, %195, %197 in 1 : vector<16x32xf32>, vector<16x32xf32>, vector<16x32xf32>, vector<16x32xf32> -> vector<16x128xf32>
    %199 = arith.truncf %198 : vector<16x128xf32> to vector<16x128xbf16>
    %c0_61 = arith.constant 0 : index
    %c0_62 = arith.constant 0 : index
    %200 = vector.load %arg12[%c0_61, %c0_62] : memref<128x128xbf16, #tpu.memory_space<vmem>>, vector<128x128xbf16>
    %cst_63 = arith.constant dense<0.000000e+00> : vector<16x128xf32>
    %201 = tpu.matmul %199, %200, %cst_63 {dimension_numbers = #tpu.dot_dimension_numbers<[1], [0], [0], [1], [0, 0, 1, 1], [], []>} : vector<16x128xbf16>, vector<128x128xbf16>, vector<16x128xf32> -> vector<16x128xf32>
    %c0_64 = arith.constant 0 : index
    %c0_65 = arith.constant 0 : index
    %202 = vector.load %arg13[%c0_64, %c0_65] : memref<1x128xf32, #tpu.memory_space<vmem>>, vector<1x128xf32>
    %203 = vector.broadcast %202 : vector<1x128xf32> to vector<16x128xf32>
    %204 = arith.addf %201, %203 : vector<16x128xf32>
    %205 = arith.addf %101, %204 : vector<16x128xf32>
    %cst_66 = arith.constant dense<0.000000e+00> : vector<16xf32>
    %206 = vector.multi_reduction <add>, %205, %cst_66 [1] : vector<16x128xf32> to vector<16xf32>
    %207 = vector.shape_cast %206 : vector<16xf32> to vector<16x1xf32>
    %cst_67 = arith.constant 1.280000e+02 : f32
    %208 = vector.broadcast %cst_67 : f32 to vector<16x1xf32>
    %209 = arith.divf %207, %208 : vector<16x1xf32>
    %210 = vector.broadcast %209 : vector<16x1xf32> to vector<16x128xf32>
    %211 = arith.subf %205, %210 : vector<16x128xf32>
    %212 = arith.mulf %211, %211 : vector<16x128xf32>
    %cst_68 = arith.constant dense<0.000000e+00> : vector<16xf32>
    %213 = vector.multi_reduction <add>, %212, %cst_68 [1] : vector<16x128xf32> to vector<16xf32>
    %214 = vector.shape_cast %213 : vector<16xf32> to vector<16x1xf32>
    %cst_69 = arith.constant 0.00787401571 : f32
    %215 = vector.broadcast %cst_69 : f32 to vector<16x1xf32>
    %216 = arith.mulf %214, %215 : vector<16x1xf32>
    %c2 = arith.constant 2 : index
    %c0_70 = arith.constant 0 : index
    %c0_71 = arith.constant 0 : index
    %217 = vector.load %arg18[%c2, %c0_70, %c0_71] : memref<3x1x128xf32, #tpu.memory_space<vmem>>, vector<1x1x128xf32>
    %218 = vector.shape_cast %217 : vector<1x1x128xf32> to vector<1x128xf32>
    %219 = vector.broadcast %209 : vector<16x1xf32> to vector<16x128xf32>
    %220 = arith.subf %205, %219 : vector<16x128xf32>
    %221 = vector.broadcast %218 : vector<1x128xf32> to vector<16x128xf32>
    %222 = arith.mulf %221, %220 : vector<16x128xf32>
    %223 = math.sqrt %216 : vector<16x1xf32>
    %cst_72 = arith.constant 9.99999997E-7 : f32
    %224 = vector.broadcast %cst_72 : f32 to vector<16x1xf32>
    %225 = arith.addf %223, %224 : vector<16x1xf32>
    %226 = vector.broadcast %225 : vector<16x1xf32> to vector<16x128xf32>
    %227 = arith.divf %222, %226 : vector<16x128xf32>
    %c2_73 = arith.constant 2 : index
    %c0_74 = arith.constant 0 : index
    %c0_75 = arith.constant 0 : index
    %228 = vector.load %arg19[%c2_73, %c0_74, %c0_75] : memref<3x1x128xf32, #tpu.memory_space<vmem>>, vector<1x1x128xf32>
    %229 = vector.shape_cast %228 : vector<1x1x128xf32> to vector<1x128xf32>
    %230 = vector.broadcast %229 : vector<1x128xf32> to vector<16x128xf32>
    %231 = arith.addf %227, %230 : vector<16x128xf32>
    %232 = arith.truncf %231 : vector<16x128xf32> to vector<16x128xbf16>
    %c0_76 = arith.constant 0 : index
    %c0_77 = arith.constant 0 : index
    %233 = vector.load %arg14[%c0_76, %c0_77] : memref<128x256xbf16, #tpu.memory_space<vmem>>, vector<128x256xbf16>
    %cst_78 = arith.constant dense<0.000000e+00> : vector<16x256xf32>
    %234 = tpu.matmul %232, %233, %cst_78 {dimension_numbers = #tpu.dot_dimension_numbers<[1], [0], [0], [1], [0, 0, 1, 1], [], []>} : vector<16x128xbf16>, vector<128x256xbf16>, vector<16x256xf32> -> vector<16x256xf32>
    %c0_79 = arith.constant 0 : index
    %c0_80 = arith.constant 0 : index
    %235 = vector.load %arg15[%c0_79, %c0_80] : memref<1x256xf32, #tpu.memory_space<vmem>>, vector<1x256xf32>
    %236 = vector.broadcast %235 : vector<1x256xf32> to vector<16x256xf32>
    %237 = arith.addf %234, %236 : vector<16x256xf32>
    %cst_81 = arith.constant 0.000000e+00 : f32
    %238 = vector.broadcast %cst_81 : f32 to vector<16x256xf32>
    %239 = arith.maximumf %237, %238 : vector<16x256xf32>
    %240 = arith.truncf %239 : vector<16x256xf32> to vector<16x256xbf16>
    %c0_82 = arith.constant 0 : index
    %c0_83 = arith.constant 0 : index
    %241 = vector.load %arg16[%c0_82, %c0_83] : memref<256x128xbf16, #tpu.memory_space<vmem>>, vector<256x128xbf16>
    %cst_84 = arith.constant dense<0.000000e+00> : vector<16x128xf32>
    %242 = tpu.matmul %240, %241, %cst_84 {dimension_numbers = #tpu.dot_dimension_numbers<[1], [0], [0], [1], [0, 0, 1, 1], [], []>} : vector<16x256xbf16>, vector<256x128xbf16>, vector<16x128xf32> -> vector<16x128xf32>
    %c0_85 = arith.constant 0 : index
    %c0_86 = arith.constant 0 : index
    %243 = vector.load %arg17[%c0_85, %c0_86] : memref<1x128xf32, #tpu.memory_space<vmem>>, vector<1x128xf32>
    %244 = vector.broadcast %243 : vector<1x128xf32> to vector<16x128xf32>
    %245 = arith.addf %242, %244 : vector<16x128xf32>
    %246 = arith.addf %205, %245 : vector<16x128xf32>
    %247 = vector.shape_cast %246 : vector<16x128xf32> to vector<2x8x128xf32>
    %c0_87 = arith.constant 0 : index
    %c0_88 = arith.constant 0 : index
    %c0_89 = arith.constant 0 : index
    %248 = vector.load %arg20[%c0_87, %c0_88, %c0_89] : memref<2x8x128xf32, #tpu.memory_space<vmem>>, vector<2x8x128xf32>
    tpu.vector_store %arg20[%c0_87, %c0_88, %c0_89], %247 {strides = array<i32>} : memref<2x8x128xf32, #tpu.memory_space<vmem>>, vector<2x8x128xf32>,
    return
  }
}

</mosaic_0001>

<bundles_post_ra>
// kernel: decoder_layer.1
= control target key start
LH: loop header
LB: loop body
LE: loop exit
PB: predicated region body
PF: predicated region fallthrough
CT: control target
= control target key end

     0   :  { %s5828_s0 = inlined_call_operand.vmem [shape: f32[2,8,128], index: 0, kind: input, shape index: {}]   ;;  %s5829_s1 = inlined_call_operand.hbm [shape: f32[2,16,128], index: 1, kind: input, shape index: {}]   ;;  %s5830_s2 = inlined_call_operand.vmem [shape: f32[8,8,8], index: 2, kind: input, shape index: {}]   ;;  %s5831_s3 = inlined_call_operand.vmem [shape: f32[8,1,16], index: 3, kind: input, shape index: {}]   ;;  %s5832_s4 = inlined_call_operand.vmem [shape: bf16[128,384], index: 4, kind: input, shape index: {}]   ;;  %s5833_s5 = inlined_call_operand.hbm [shape: f32[1,384], index: 5, kind: input, shape index: {}]   ;;  %s5834_s6 = inlined_call_operand.hbm [shape: bf16[128,128], index: 6, kind: input, shape index: {}]   ;;  %s5835_s7 = inlined_call_operand.vmem [shape: f32[1,128], index: 7, kind: input, shape index: {}]   ;;  %s5836_s8 = inlined_call_operand.hbm [shape: bf16[128,128], index: 8, kind: input, shape index: {}]   ;;  %s5837_s9 = inlined_call_operand.hbm [shape: f32[1,128], index: 9, kind: input, shape index: {}]   ;;  %s5838_s10 = inlined_call_operand.hbm [shape: bf16[128,256], index: 10, kind: input, shape index: {}]   ;;  %s5839_s11 = inlined_call_operand.hbm [shape: f32[1,256], index: 11, kind: input, shape index: {}]   ;;  %s5840_s12 = inlined_call_operand.hbm [shape: bf16[128,128], index: 12, kind: input, shape index: {}]   ;;  %s5841_s13 = inlined_call_operand.hbm [shape: f32[1,128], index: 13, kind: input, shape index: {}]   ;;  %s5842_s14 = inlined_call_operand.hbm [shape: bf16[128,256], index: 14, kind: input, shape index: {}]   ;;  %s5843_s15 = inlined_call_operand.hbm [shape: f32[1,256], index: 15, kind: input, shape index: {}]   ;;  %s5844_s16 = inlined_call_operand.hbm [shape: bf16[256,128], index: 16, kind: input, shape index: {}]   ;;  %s5845_s17 = inlined_call_operand.hbm [shape: f32[1,128], index: 17, kind: input, shape index: {}]   ;;  %s5846_s18 = inlined_call_operand.hbm [shape: f32[3,1,128], index: 18, kind: input, shape index: {}]   ;;  %s5847_s19 = inlined_call_operand.hbm [shape: f32[3,1,128], index: 19, kind: input, shape index: {}]   ;;  %s5848_s20 = inlined_call_operand.hbm [shape: f32[2,8,128], index: 20, kind: output, shape index: {}]  }
   0x1   :  { %5854 = sst [smem:[#allocation36_spill]] %s5828_s0 }
   0x2   :  { %5855 = sst [smem:[#allocation37_spill]] %s5829_s1 }
   0x3   :  { %5856 = sst [smem:[#allocation38_spill]] %s5830_s2 }
   0x4   :  { %5857 = sst [smem:[#allocation39_spill]] %s5831_s3 }
   0x5   :  { %5858 = sst [smem:[#allocation40_spill]] %s5832_s4 }
   0x6   :  { %25 = vsyncpa [#allocation3], 0 }
   0x7   :  { %26 = vsyncpa [#allocation6], 0 }
   0x8   :  { %27 = vsyncpa [#allocation9], 0 }
   0x9   :  { %28 = vsyncpa [#allocation12], 0 }
   0xa   :  { %29 = vsyncpa [#allocation15], 0 }
   0xb   :  { %30 = vsyncpa [#allocation18], 0 }
   0xc   :  { %31 = vsyncpa [#allocation21], 0 }
   0xd   :  { %32 = vsyncpa [#allocation24], 0 }
   0xe   :  { %33 = vsyncpa [#allocation4], 0  ;;  %s4868_s1 = smov [#allocation5]   ;;  %s4498_s2 = scalar_lea.hbm %s5833_s5, 48 }
   0xf   :  { %s60_s22 = sshll.u32 %s4868_s1, 4  ;;  %p4499_p0 = scmp.ne.s32.totalorder %s5833_s5, %s4498_s2  ;;  %s61_s22 = int_to_ptr.vmem [resolvable:$true] %s60_s22 }
  0x10   :  { %p4502_p1 = scmp.lt.u32.totalorder %s4498_s2, %s5833_s5 }
  0x12   :  { %p4504_p2 = pnand %p4502_p1, %p4499_p0 }
  0x14   :  { %4507 = shalt.err (!%p4504_p2)
}
  0x15   :  { %s4508_s28 = scalar_lea.vmem %s61_s22, 48  ;;  %s4512_s4 = scalar_lea.vmem %s61_s22, 64 }
  0x16   :  { %p4509_p3 = scmp.ne.s32.totalorder %s61_s22, %s4508_s28  ;;  %p4513_p4 = scmp.lt.s32.totalorder %s61_s22, %s61_s22 }
  0x17   :  { %p4514_p5 = scmp.lt.s32.totalorder %s4512_s4, %s4508_s28 }
  0x19   :  { %p4515_p6 = por %p4514_p5, %p4513_p4 }
  0x1b   :  { %p4516_p7 = pnand %p4515_p6, %p4509_p3 }
  0x1d   :  { %4519 = shalt.err (!%p4516_p7)
}
  0x1e   :  { %63 = dma.hbm_to_vmem [thread:$0]  %s5833_s5, 48, %s61_s22, [#allocation6]  }
  0x1f   :  { %s4869_s0 = smov [#allocation8]   ;;  %s4520_s24 = scalar_lea.hbm %s5836_s8, 1024 }
  0x20   :  { %s83_s21 = sshll.u32 %s4869_s0, 4  ;;  %p4521_p8 = scmp.ne.s32.totalorder %s5836_s8, %s4520_s24  ;;  %s84_s21 = int_to_ptr.vmem [resolvable:$true] %s83_s21 }
  0x21   :  { %p4524_p9 = scmp.lt.u32.totalorder %s4520_s24, %s5836_s8 }
  0x23   :  { %p4526_p10 = pnand %p4524_p9, %p4521_p8 }
  0x25   :  { %4529 = shalt.err (!%p4526_p10)
}
  0x26   :  { %s4530_s27 = scalar_lea.vmem %s84_s21, 1024  ;;  %p4535_p12 = scmp.lt.s32.totalorder %s84_s21, %s84_s21 }
  0x27   :  { %p4531_p11 = scmp.ne.s32.totalorder %s84_s21, %s4530_s27  ;;  %p4536_p13 = scmp.lt.s32.totalorder %s4530_s27, %s4530_s27 }
  0x29   :  { %p4537_p0 = por %p4536_p13, %p4535_p12 }
  0x2b   :  { %p4538_p1 = pnand %p4537_p0, %p4531_p11 }
  0x2d   :  { %4541 = shalt.err (!%p4538_p1)
}
  0x2e   :  { %s4870_s5 = smov 64   ;;  %s4871_s22 = smov 4  }
  0x2f   :  { %89 = dma.hbm_to_vmem [thread:$0]  %s5836_s8, 1024, %s84_s21, [#allocation9], %s4870_s5, %s4870_s5, %s4871_s22  }
  0x30   :  { %s4872_s29 = smov [#allocation11]   ;;  %s4873_s0 = smov [#allocation14]  }
  0x31   :  { %s105_s30 = sshll.u32 %s4872_s29, 4  ;;  %s127_s1 = sshll.u32 %s4873_s0, 4  ;;  %s106_s30 = int_to_ptr.vmem [resolvable:$true] %s105_s30  ;;  %s5027_s1 = int_to_ptr.vmem [resolvable:$true] %s127_s1 }
  0x32   :  { %s4542_s2 = scalar_lea.hbm %s5838_s10, 2048 }
  0x33   :  { %p4543_p2 = scmp.ne.s32.totalorder %s5838_s10, %s4542_s2  ;;  %p4546_p3 = scmp.lt.u32.totalorder %s4542_s2, %s5838_s10 }
  0x35   :  { %p4548_p4 = pnand %p4546_p3, %p4543_p2 }
  0x37   :  { %4551 = shalt.err (!%p4548_p4)
}
  0x38   :  { %s4552_s8 = scalar_lea.vmem %s106_s30, 2048  ;;  %p4557_p6 = scmp.lt.s32.totalorder %s106_s30, %s106_s30 }
  0x39   :  { %p4553_p5 = scmp.ne.s32.totalorder %s106_s30, %s4552_s8  ;;  %p4558_p7 = scmp.lt.s32.totalorder %s4552_s8, %s4552_s8 }
  0x3b   :  { %p4559_p8 = por %p4558_p7, %p4557_p6 }
  0x3d   :  { %p4560_p9 = pnand %p4559_p8, %p4553_p5 }
  0x3f   :  { %4563 = shalt.err (!%p4560_p9)
}
  0x40   :  { %s4874_s21 = smov 128   ;;  %s4875_s28 = smov 8  }
  0x41   :  { %111 = dma.hbm_to_vmem [thread:$0]  %s5838_s10, 2048, %s106_s30, [#allocation12], %s4874_s21, %s4874_s21, %s4875_s28  }
  0x42   :  { %s4564_s24 = scalar_lea.hbm %s5840_s12, 1024 }
  0x43   :  { %p4565_p10 = scmp.ne.s32.totalorder %s5840_s12, %s4564_s24  ;;  %p4568_p11 = scmp.lt.u32.totalorder %s4564_s24, %s5840_s12 }
  0x45   :  { %p4570_p12 = pnand %p4568_p11, %p4565_p10 }
  0x47   :  { %4573 = shalt.err (!%p4570_p12)
}
  0x48   :  { %s4574_s27 = scalar_lea.vmem %s5027_s1, 1024  ;;  %p4579_p0 = scmp.lt.s32.totalorder %s5027_s1, %s5027_s1 }
  0x49   :  { %p4575_p13 = scmp.ne.s32.totalorder %s5027_s1, %s4574_s27  ;;  %p4580_p1 = scmp.lt.s32.totalorder %s4574_s27, %s4574_s27 }
  0x4b   :  { %p4581_p2 = por %p4580_p1, %p4579_p0 }
  0x4d   :  { %p4582_p3 = pnand %p4581_p2, %p4575_p13 }
  0x4f   :  { %4585 = shalt.err (!%p4582_p3)
}
  0x50   :  { %133 = dma.hbm_to_vmem [thread:$0]  %s5840_s12, 1024, %s5027_s1, [#allocation15], %s4870_s5, %s4870_s5, %s4871_s22  }
  0x51   :  { %s4876_s8 = smov [#allocation17]   ;;  %s4877_s29 = smov [#allocation20]  }
  0x52   :  { %s149_s4 = sshll.u32 %s4876_s8, 4  ;;  %s171_s0 = sshll.u32 %s4877_s29, 4  ;;  %s150_s4 = int_to_ptr.vmem [resolvable:$true] %s149_s4  ;;  %s5064_s0 = int_to_ptr.vmem [resolvable:$true] %s171_s0 }
  0x53   :  { %s4586_s2 = scalar_lea.hbm %s5842_s14, 2048 }
  0x54   :  { %p4587_p4 = scmp.ne.s32.totalorder %s5842_s14, %s4586_s2  ;;  %p4590_p5 = scmp.lt.u32.totalorder %s4586_s2, %s5842_s14 }
  0x56   :  { %p4592_p6 = pnand %p4590_p5, %p4587_p4 }
  0x58   :  { %4595 = shalt.err (!%p4592_p6)
}
  0x59   :  { %s4596_s12 = scalar_lea.vmem %s150_s4, 2048  ;;  %p4601_p8 = scmp.lt.s32.totalorder %s150_s4, %s150_s4 }
  0x5a   :  { %p4597_p7 = scmp.ne.s32.totalorder %s150_s4, %s4596_s12  ;;  %p4602_p9 = scmp.lt.s32.totalorder %s4596_s12, %s4596_s12 }
  0x5c   :  { %p4603_p10 = por %p4602_p9, %p4601_p8 }
  0x5e   :  { %p4604_p11 = pnand %p4603_p10, %p4597_p7 }
  0x60   :  { %4607 = shalt.err (!%p4604_p11)
}
  0x61   :  { %155 = dma.hbm_to_vmem [thread:$0]  %s5842_s14, 2048, %s150_s4, [#allocation18], %s4874_s21, %s4874_s21, %s4875_s28  }
  0x62   :  { %s4608_s29 = scalar_lea.hbm %s5844_s16, 2048 }
  0x63   :  { %p4609_p12 = scmp.ne.s32.totalorder %s5844_s16, %s4608_s29  ;;  %p4612_p13 = scmp.lt.u32.totalorder %s4608_s29, %s5844_s16 }
  0x65   :  { %p4614_p0 = pnand %p4612_p13, %p4609_p12 }
  0x67   :  { %4617 = shalt.err (!%p4614_p0)
}
  0x68   :  { %s4618_s3 = scalar_lea.vmem %s5064_s0, 2048  ;;  %p4623_p2 = scmp.lt.s32.totalorder %s5064_s0, %s5064_s0 }
  0x69   :  { %p4619_p1 = scmp.ne.s32.totalorder %s5064_s0, %s4618_s3  ;;  %p4624_p3 = scmp.lt.s32.totalorder %s4618_s3, %s4618_s3 }
  0x6b   :  { %p4625_p4 = por %p4624_p3, %p4623_p2 }
  0x6d   :  { %p4626_p5 = pnand %p4625_p4, %p4619_p1 }
  0x6f   :  { %4629 = shalt.err (!%p4626_p5)
}
  0x70   :  { %177 = dma.hbm_to_vmem [thread:$0]  %s5844_s16, 2048, %s5064_s0, [#allocation21], %s4870_s5, %s4870_s5, %s4871_s22  }
  0x71   :  { %s4878_s26 = smov [#allocation23]   ;;  %s4630_s10 = scalar_lea.hbm %s5846_s18, 48 }
  0x72   :  { %s193_s27 = sshll.u32 %s4878_s26, 4  ;;  %p4631_p6 = scmp.ne.s32.totalorder %s5846_s18, %s4630_s10  ;;  %s194_s27 = int_to_ptr.vmem [resolvable:$true] %s193_s27 }
  0x73   :  { %p4634_p7 = scmp.lt.u32.totalorder %s4630_s10, %s5846_s18 }
  0x75   :  { %p4636_p8 = pnand %p4634_p7, %p4631_p6 }
  0x77   :  { %4639 = shalt.err (!%p4636_p8)
}
  0x78   :  { %s4640_s24 = scalar_lea.vmem %s194_s27, 48  ;;  %s4644_s16 = scalar_lea.vmem %s194_s27, 64 }
  0x79   :  { %p4641_p9 = scmp.ne.s32.totalorder %s194_s27, %s4640_s24  ;;  %p4645_p10 = scmp.lt.s32.totalorder %s194_s27, %s194_s27 }
  0x7a   :  { %p4646_p11 = scmp.lt.s32.totalorder %s4644_s16, %s4640_s24 }
  0x7c   :  { %p4647_p12 = por %p4646_p11, %p4645_p10 }
  0x7e   :  { %p4648_p13 = pnand %p4647_p12, %p4641_p9 }
  0x80   :  { %4651 = shalt.err (!%p4648_p13)
}
  0x81   :  { %s4879_s0 = smov 16   ;;  %s4880_s2 = smov 1  }
  0x82   :  { %199 = dma.hbm_to_vmem [thread:$0]  %s5846_s18, 48, %s194_s27, [#allocation24], %s4879_s0, %s4879_s0, %s4880_s2  }
  0x83   :  { %s4881_s14 = smov [#allocation2]   ;;  %s4882_s26 = smov [#allocation7]  }
  0x84   :  { %s41_s4 = sshll.u32 %s4881_s14, 4  ;;  %s69_s12 = sshll.u32 %s4882_s26, 4  ;;  %s42_s4 = int_to_ptr.vmem [resolvable:$true] %s41_s4  ;;  %s70_s12 = int_to_ptr.vmem [resolvable:$true] %s69_s12 }
  0x85   :  { %s5859_s30 = sld [smem:[#allocation37_spill]] }
  0x8b   :  { %s4652_s8 = scalar_lea.hbm %s5859_s30, 512 }
  0x8c   :  { %p4653_p0 = scmp.ne.s32.totalorder %s5859_s30, %s4652_s8  ;;  %p4656_p1 = scmp.lt.u32.totalorder %s4652_s8, %s5859_s30 }
  0x8e   :  { %p4658_p2 = pnand %p4656_p1, %p4653_p0 }
  0x90   :  { %4661 = shalt.err (!%p4658_p2)
}
  0x91   :  { %s4662_s18 = scalar_lea.vmem %s42_s4, 512  ;;  %p4667_p4 = scmp.lt.s32.totalorder %s42_s4, %s42_s4 }
  0x92   :  { %p4663_p3 = scmp.ne.s32.totalorder %s42_s4, %s4662_s18  ;;  %p4668_p5 = scmp.lt.s32.totalorder %s4662_s18, %s4662_s18 }
  0x94   :  { %p4669_p6 = por %p4668_p5, %p4667_p4 }
  0x96   :  { %p4670_p7 = pnand %p4669_p6, %p4663_p3 }
  0x98   :  { %4673 = shalt.err (!%p4670_p7)
}
  0x99   :  { %47 = dma.hbm_to_vmem [thread:$0]  %s5859_s30, 512, %s42_s4, [#allocation3], %s4874_s21, %s4874_s21, %s4875_s28  }
  0x9a   :  { %s4674_s26 = scalar_lea.hbm %s5834_s6, 1024 }
  0x9b   :  { %p4675_p8 = scmp.ne.s32.totalorder %s5834_s6, %s4674_s26  ;;  %p4678_p9 = scmp.lt.u32.totalorder %s4674_s26, %s5834_s6 }
  0x9d   :  { %p4680_p10 = pnand %p4678_p9, %p4675_p8 }
  0x9f   :  { %4683 = shalt.err (!%p4680_p10)
}
  0xa0   :  { %s4684_s23 = scalar_lea.vmem %s70_s12, 1024  ;;  %p4689_p12 = scmp.lt.s32.totalorder %s70_s12, %s70_s12 }
  0xa1   :  { %p4685_p11 = scmp.ne.s32.totalorder %s70_s12, %s4684_s23  ;;  %p4690_p13 = scmp.lt.s32.totalorder %s4684_s23, %s4684_s23 }
  0xa3   :  { %p4691_p0 = por %p4690_p13, %p4689_p12 }
  0xa5   :  { %p4692_p1 = pnand %p4691_p0, %p4685_p11 }
  0xa7   :  { %4695 = shalt.err (!%p4692_p1)
}
  0xa8   :  { %75 = dma.hbm_to_vmem [thread:$0]  %s5834_s6, 1024, %s70_s12, [#allocation6], %s4870_s5, %s4870_s5, %s4871_s22  }
  0xa9   :  { %s4883_s24 = smov [#allocation10]   ;;  %s4884_s18 = smov [#allocation13]  }
  0xaa   :  { %s96_s16 = sshll.u32 %s4883_s24, 4  ;;  %s118_s27 = sshll.u32 %s4884_s18, 4  ;;  %s97_s16 = int_to_ptr.vmem [resolvable:$true] %s96_s16  ;;  %s119_s27 = int_to_ptr.vmem [resolvable:$true] %s118_s27 }
  0xab   :  { %s4696_s14 = scalar_lea.hbm %s5837_s9, 16 }
  0xac   :  { %p4697_p2 = scmp.ne.s32.totalorder %s5837_s9, %s4696_s14  ;;  %p4700_p3 = scmp.lt.u32.totalorder %s4696_s14, %s5837_s9 }
  0xae   :  { %p4702_p4 = pnand %p4700_p3, %p4697_p2 }
  0xb0   :  { %4705 = shalt.err (!%p4702_p4)
}
  0xb1   :  { %s4706_s6 = scalar_lea.vmem %s97_s16, 16  ;;  %s4710_s22 = scalar_lea.vmem %s97_s16, 32 }
  0xb2   :  { %p4707_p5 = scmp.ne.s32.totalorder %s97_s16, %s4706_s6  ;;  %p4711_p6 = scmp.lt.s32.totalorder %s97_s16, %s97_s16 }
  0xb3   :  { %p4712_p7 = scmp.lt.s32.totalorder %s4710_s22, %s4706_s6 }
  0xb5   :  { %p4713_p8 = por %p4712_p7, %p4711_p6 }
  0xb7   :  { %p4714_p9 = pnand %p4713_p8, %p4707_p5 }
  0xb9   :  { %4717 = shalt.err (!%p4714_p9)
}
  0xba   :  { %99 = dma.hbm_to_vmem [thread:$0]  %s5837_s9, 16, %s97_s16, [#allocation9]  }
  0xbb   :  { %s4718_s30 = scalar_lea.hbm %s5839_s11, 32 }
  0xbc   :  { %p4719_p10 = scmp.ne.s32.totalorder %s5839_s11, %s4718_s30  ;;  %p4722_p11 = scmp.lt.u32.totalorder %s4718_s30, %s5839_s11 }
  0xbe   :  { %p4724_p12 = pnand %p4722_p11, %p4719_p10 }
  0xc0   :  { %4727 = shalt.err (!%p4724_p12)
}
  0xc1   :  { %s4728_s14 = scalar_lea.vmem %s119_s27, 32  ;;  %p4733_p0 = scmp.lt.s32.totalorder %s119_s27, %s119_s27 }
  0xc2   :  { %p4729_p13 = scmp.ne.s32.totalorder %s119_s27, %s4728_s14  ;;  %p4734_p1 = scmp.lt.s32.totalorder %s4728_s14, %s4728_s14 }
  0xc4   :  { %p4735_p2 = por %p4734_p1, %p4733_p0 }
  0xc6   :  { %p4736_p3 = pnand %p4735_p2, %p4729_p13 }
  0xc8   :  { %4739 = shalt.err (!%p4736_p3)
}
  0xc9   :  { %121 = dma.hbm_to_vmem [thread:$0]  %s5839_s11, 32, %s119_s27, [#allocation12]  }
  0xca   :  { %s4885_s26 = smov [#allocation16]   ;;  %s4886_s10 = smov [#allocation19]  }
  0xcb   :  { %s140_s1 = sshll.u32 %s4885_s26, 4  ;;  %s162_s8 = sshll.u32 %s4886_s10, 4  ;;  %s141_s1 = int_to_ptr.vmem [resolvable:$true] %s140_s1  ;;  %s163_s8 = int_to_ptr.vmem [resolvable:$true] %s162_s8 }
  0xcc   :  { %s4740_s12 = scalar_lea.hbm %s5841_s13, 16 }
  0xcd   :  { %p4741_p4 = scmp.ne.s32.totalorder %s5841_s13, %s4740_s12  ;;  %p4744_p5 = scmp.lt.u32.totalorder %s4740_s12, %s5841_s13 }
  0xcf   :  { %p4746_p6 = pnand %p4744_p5, %p4741_p4 }
  0xd1   :  { %4749 = shalt.err (!%p4746_p6)
}
  0xd2   :  { %s4750_s11 = scalar_lea.vmem %s141_s1, 16  ;;  %s4754_s27 = scalar_lea.vmem %s141_s1, 32 }
  0xd3   :  { %p4751_p7 = scmp.ne.s32.totalorder %s141_s1, %s4750_s11  ;;  %p4755_p8 = scmp.lt.s32.totalorder %s141_s1, %s141_s1 }
  0xd4   :  { %p4756_p9 = scmp.lt.s32.totalorder %s4754_s27, %s4750_s11 }
  0xd6   :  { %p4757_p10 = por %p4756_p9, %p4755_p8 }
  0xd8   :  { %p4758_p11 = pnand %p4757_p10, %p4751_p7 }
  0xda   :  { %4761 = shalt.err (!%p4758_p11)
}
  0xdb   :  { %143 = dma.hbm_to_vmem [thread:$0]  %s5841_s13, 16, %s141_s1, [#allocation15]  }
  0xdc   :  { %s4762_s14 = scalar_lea.hbm %s5843_s15, 32 }
  0xdd   :  { %p4763_p12 = scmp.ne.s32.totalorder %s5843_s15, %s4762_s14  ;;  %p4766_p13 = scmp.lt.u32.totalorder %s4762_s14, %s5843_s15 }
  0xdf   :  { %p4768_p0 = pnand %p4766_p13, %p4763_p12 }
  0xe1   :  { %4771 = shalt.err (!%p4768_p0)
}
  0xe2   :  { %s4772_s6 = scalar_lea.vmem %s163_s8, 32  ;;  %p4777_p2 = scmp.lt.s32.totalorder %s163_s8, %s163_s8 }
  0xe3   :  { %p4773_p1 = scmp.ne.s32.totalorder %s163_s8, %s4772_s6  ;;  %p4778_p3 = scmp.lt.s32.totalorder %s4772_s6, %s4772_s6 }
  0xe5   :  { %p4779_p4 = por %p4778_p3, %p4777_p2 }
  0xe7   :  { %p4780_p5 = pnand %p4779_p4, %p4773_p1 }
  0xe9   :  { %4783 = shalt.err (!%p4780_p5)
}
  0xea   :  { %165 = dma.hbm_to_vmem [thread:$0]  %s5843_s15, 32, %s163_s8, [#allocation18]  }
  0xeb   :  { %s4887_s22 = smov [#allocation22]   ;;  %s4888_s29 = smov [#allocation25]  }
  0xec   :  { %s184_s12 = sshll.u32 %s4887_s22, 4  ;;  %s205_s23 = sshll.u32 %s4888_s29, 4  ;;  %s185_s12 = int_to_ptr.vmem [resolvable:$true] %s184_s12  ;;  %s206_s23 = int_to_ptr.vmem [resolvable:$true] %s205_s23 }
  0xed   :  { %s4784_s11 = scalar_lea.hbm %s5845_s17, 16 }
  0xee   :  { %p4785_p6 = scmp.ne.s32.totalorder %s5845_s17, %s4784_s11  ;;  %p4788_p7 = scmp.lt.u32.totalorder %s4784_s11, %s5845_s17 }
  0xf0   :  { %p4790_p8 = pnand %p4788_p7, %p4785_p6 }
  0xf2   :  { %4793 = shalt.err (!%p4790_p8)
}
  0xf3   :  { %s4794_s15 = scalar_lea.vmem %s185_s12, 16  ;;  %s4798_s8 = scalar_lea.vmem %s185_s12, 32 }
  0xf4   :  { %p4795_p9 = scmp.ne.s32.totalorder %s185_s12, %s4794_s15  ;;  %p4799_p10 = scmp.lt.s32.totalorder %s185_s12, %s185_s12 }
  0xf5   :  { %p4800_p11 = scmp.lt.s32.totalorder %s4798_s8, %s4794_s15 }
  0xf7   :  { %p4801_p12 = por %p4800_p11, %p4799_p10 }
  0xf9   :  { %p4802_p13 = pnand %p4801_p12, %p4795_p9 }
  0xfb   :  { %4805 = shalt.err (!%p4802_p13)
}
  0xfc   :  { %187 = dma.hbm_to_vmem [thread:$0]  %s5845_s17, 16, %s185_s12, [#allocation21]  }
  0xfd   :  { %s4806_s26 = scalar_lea.hbm %s5847_s19, 48 }
  0xfe   :  { %p4807_p0 = scmp.ne.s32.totalorder %s5847_s19, %s4806_s26  ;;  %p4810_p1 = scmp.lt.u32.totalorder %s4806_s26, %s5847_s19 }
 0x100   :  { %p4812_p2 = pnand %p4810_p1, %p4807_p0 }
 0x102   :  { %4815 = shalt.err (!%p4812_p2)
}
 0x103   :  { %s4816_s22 = scalar_lea.vmem %s206_s23, 48  ;;  %s4820_s29 = scalar_lea.vmem %s206_s23, 64 }
 0x104   :  { %p4817_p3 = scmp.ne.s32.totalorder %s206_s23, %s4816_s22  ;;  %p4821_p4 = scmp.lt.s32.totalorder %s206_s23, %s206_s23 }
 0x105   :  { %p4822_p5 = scmp.lt.s32.totalorder %s4820_s29, %s4816_s22 }
 0x107   :  { %p4823_p6 = por %p4822_p5, %p4821_p4 }
 0x109   :  { %p4824_p7 = pnand %p4823_p6, %p4817_p3 }
 0x10b   :  { %4827 = shalt.err (!%p4824_p7)
}
 0x10c   :  { %211 = dma.hbm_to_vmem [thread:$0]  %s5847_s19, 48, %s206_s23, [#allocation24], %s4879_s0, %s4879_s0, %s4880_s2  }
 0x10d   :  { %4850 = dma.done.wait [#allocation3], 512  }
 0x10e   :  { %4851 = vsyncadd [#allocation3], 4294966784 }
 0x10f   :  { %4852 = dma.done.wait [#allocation6], 1072  }
 0x110   :  { %4853 = vsyncadd [#allocation6], 4294966224 }
 0x111   :  { %4854 = dma.done.wait [#allocation9], 1040  }
 0x112   :  { %4855 = vsyncadd [#allocation9], 4294966256 }
 0x113   :  { %4856 = dma.done.wait [#allocation12], 2080  }
 0x114   :  { %4857 = vsyncadd [#allocation12], 4294965216 }
 0x115   :  { %4858 = dma.done.wait [#allocation15], 1040  }
 0x116   :  { %4859 = vsyncadd [#allocation15], 4294966256 }
 0x117   :  { %4860 = dma.done.wait [#allocation18], 2080  }
 0x118   :  { %4861 = vsyncadd [#allocation18], 4294965216 }
 0x119   :  { %4862 = dma.done.wait [#allocation21], 2064  }
 0x11a   :  { %4863 = vsyncadd [#allocation21], 4294965232 }
 0x11b   :  { %4864 = dma.done.wait [#allocation24], 96  }
 0x11c   :  { %4865 = vsyncadd [#allocation24], 4294967200  ;;  %s5860_s11 = sld [smem:[#allocation36_spill]]  ;;  %s5861_s27 = sld [smem:[#allocation40_spill]]  ;;  %v4889_v13 = vmov 0.0   ;;  %v4890_v27 = vmov 0   ;;  %v354_v63 = vlaneseq }
 0x11d   :  { %3839 = vmatprep.subr.bf16.mxu1 %v4889_v13  ;;  %529 = vmatprep.mubr.bf16.mxu0 %v4890_v27  ;;  %vm4891_vm0 = vmmov 0   ;;  %v3571_v52 = vld [vmem:[#allocation23] ss:$0 sm:$0xff]  ;;  %v3572_v58 = vld [vmem:[#allocation25] ss:$0 sm:$0xff]  ;;  %vm673_vm5 = vcmask 261120  }
 0x11e   :  { %3855 = vmatprep.mubr.msk.bf16.mxu1 %vm4891_vm0, %v4889_v13  ;;  %s4893_s2 = smov 32   ;;  %vm1158_vm6 = vcmask 1043456   ;;  %s5862_s18 = sld [smem:[#allocation38_spill]]  ;;  %vm1058_vm7 = vcmask 64512   ;;  %vm1550_vm8 = vcmask 523264   ;;  %vm1553_vm9 = vcmask 785408  }
 0x11f   :  { %s5863_s23 = sld [smem:[#allocation39_spill]]  ;;  %vm2567_vm14 = vcmask 130048  }
 0x122   :  { %v258_v0 = vld [vmem:[%s5860_s11] sm:$0xff]  ;;  %v259_v1 = vld [vmem:[%s5860_s11 + $0x8] sm:$0xff]  ;;  %v4298_v18 = vld [vmem:[%s5861_s27 + $0x30] ss:$12 sps:$4 sm:$0xff]  }
 0x123   :  { %264 = vadd.xlane.f32.xlu0 %v258_v0  ;;  %v4288_v10 = vld [vmem:[%s5861_s27 + $0x4] ss:$12 sps:$4 sm:$0xff]   ;;  %v4290_v11 = vld [vmem:[%s5861_s27] ss:$12 sps:$4 sm:$0xff]   ;;  %v4291_v12 = vld [vmem:[%s5861_s27 + $0x8] ss:$12 sps:$4 sm:$0xff]  }
 0x124   :  { %497 = vmatprep.subr.bf16.mxu0 %v4288_v10  ;;  %3840 = vmatpush3.bf16.msra.mxu1 %v4291_v12  ;;  %v4292_v14 = vld [vmem:[%s5861_s27 + $0x1c] ss:$12 sps:$4 sm:$0xff]   ;;  %v4294_v15 = vld [vmem:[%s5861_s27 + $0x18] ss:$12 sps:$4 sm:$0xff]   ;;  %v4295_v16 = vld [vmem:[%s5861_s27 + $0x20] ss:$12 sps:$4 sm:$0xff]  }
 0x125   :  { %498 = vmatpush1.bf16.msra.mxu0 %v4290_v11  ;;  %3841 = vmatprep.subr.bf16.mxu1 %v4889_v13  ;;  %v4296_v17 = vld [vmem:[%s5861_s27 + $0x34] ss:$12 sps:$4 sm:$0xff]   ;;  %v4299_v19 = vld [vmem:[%s5861_s27 + $0x38] ss:$12 sps:$4 sm:$0xff]   ;;  %v4303_v22 = vld [vmem:[%s5861_s27 + $0x50] ss:$12 sps:$4 sm:$0xff]  }
 0x126   :  { %499 = vmatprep.subr.bf16.mxu0 %v4292_v14  ;;  %v4300_v20 = vld [vmem:[%s5861_s27 + $0x4c] ss:$12 sps:$4 sm:$0xff]   ;;  %v4302_v21 = vld [vmem:[%s5861_s27 + $0x48] ss:$12 sps:$4 sm:$0xff]   ;;  %v4304_v23 = vld [vmem:[%s5861_s27 + $0x64] ss:$12 sps:$4 sm:$0xff]  }
 0x127   :  { %266 = vadd.xlane.f32.xlu0 %v259_v1  ;;  %v4306_v24 = vld [vmem:[%s5861_s27 + $0x60] ss:$12 sps:$4 sm:$0xff]   ;;  %v4307_v25 = vld [vmem:[%s5861_s27 + $0x68] ss:$12 sps:$4 sm:$0xff]   ;;  %v4310_v28 = vld [vmem:[%s5861_s27 + $0x78] ss:$12 sps:$4 sm:$0xff]  }
 0x128   :  { %3842 = vmatpush3.bf16.msra.mxu1 %v4295_v16  ;;  %v4308_v26 = vld [vmem:[%s5861_s27 + $0x7c] ss:$12 sps:$4 sm:$0xff]   ;;  %v4311_v29 = vld [vmem:[%s5861_s27 + $0x80] ss:$12 sps:$4 sm:$0xff]   ;;  %v4315_v32 = vld [vmem:[%s5861_s27 + $0x98] ss:$12 sps:$4 sm:$0xff]  }
 0x129   :  { %500 = vmatpush1.bf16.msra.mxu0 %v4294_v15  ;;  %3843 = vmatprep.subr.bf16.mxu1 %v4889_v13  ;;  %v4312_v30 = vld [vmem:[%s5861_s27 + $0x94] ss:$12 sps:$4 sm:$0xff]   ;;  %v4314_v31 = vld [vmem:[%s5861_s27 + $0x90] ss:$12 sps:$4 sm:$0xff]   ;;  %v4316_v33 = vld [vmem:[%s5861_s27 + $0xac] ss:$12 sps:$4 sm:$0xff]  }
 0x12a   :  { %501 = vmatprep.subr.bf16.mxu0 %v4296_v17  ;;  %v4318_v34 = vld [vmem:[%s5861_s27 + $0xa8] ss:$12 sps:$4 sm:$0xff]   ;;  %v4319_v35 = vld [vmem:[%s5861_s27 + $0xb0] ss:$12 sps:$4 sm:$0xff]   ;;  %s4892_s27 = smov 96  }
 0x12c   :  { %3844 = vmatpush3.bf16.msra.mxu1 %v4299_v19 }
 0x12d   :  { %502 = vmatpush1.bf16.msra.mxu0 %v4298_v18  ;;  %3845 = vmatprep.subr.bf16.mxu1 %v4889_v13 }
 0x12e   :  { %503 = vmatprep.subr.bf16.mxu0 %v4300_v20 }
 0x130   :  { %3846 = vmatpush3.bf16.msra.mxu1 %v4303_v22 }
 0x131   :  { %504 = vmatpush1.bf16.msra.mxu0 %v4302_v21  ;;  %3847 = vmatprep.subr.bf16.mxu1 %v4889_v13 }
 0x132   :  { %505 = vmatprep.subr.bf16.mxu0 %v4304_v23 }
 0x134   :  { %3848 = vmatpush3.bf16.msra.mxu1 %v4307_v25 }
 0x135   :  { %506 = vmatpush1.bf16.msra.mxu0 %v4306_v24  ;;  %3849 = vmatprep.subr.bf16.mxu1 %v4889_v13 }
 0x136   :  { %507 = vmatprep.subr.bf16.mxu0 %v4308_v26 }
 0x138   :  { %3850 = vmatpush3.bf16.msra.mxu1 %v4311_v29 }
 0x139   :  { %508 = vmatpush1.bf16.msra.mxu0 %v4310_v28  ;;  %3851 = vmatprep.subr.bf16.mxu1 %v4889_v13 }
 0x13a   :  { %509 = vmatprep.subr.bf16.mxu0 %v4312_v30 }
 0x13c   :  { %3852 = vmatpush3.bf16.msra.mxu1 %v4315_v32 }
 0x13d   :  { %510 = vmatpush1.bf16.msra.mxu0 %v4314_v31  ;;  %3853 = vmatprep.subr.bf16.mxu1 %v4889_v13 }
 0x13e   :  { %511 = vmatprep.subr.bf16.mxu0 %v4316_v33 }
 0x140   :  { %3854 = vmatpush3.bf16.msra.mxu1 %v4319_v35 }
 0x141   :  { %512 = vmatpush1.bf16.msra.mxu0 %v4318_v34  ;;  %3877 = vmatprep.subr.bf16.mxu1 %v4889_v13 }
 0x142   :  { %3859 = vmatprep.subr.bf16.mxu0 %v4889_v13 }
 0x1b0   :  { %v265_v2 = vpop.xlane.xlu0 %264 }
 0x1b1   :  { %v269_v3 = vmul.f32 0.0078125, %v265_v2  ;;  %v352_v2 = vld [vmem:[#allocation5] sm:$0x7] }
 0x1b3   :  { %v5227_v4 = vsub.f32 %v258_v0, %v269_v3  ;;  %v355_v0 = vshrl.u32 %v354_v63, 7 }
 0x1b4   :  { %v267_v5 = vpop.xlane.xlu0 %266 }
 0x1b5   :  { %v270_v6 = vmul.f32 0.0078125, %v267_v5  ;;  %v273_v7 = vmul.f32 %v5227_v4, %v5227_v4  ;;  %v288_v54 = vmul.f32 %v3571_v52, %v5227_v4  ;;  %v5328_v3 = vsub.s32 0, %v355_v0 }
 0x1b6   :  { %v364_v4 = vsub.s32 2, %v355_v0 }
 0x1b7   :  { %v5231_v8 = vsub.f32 %v259_v1, %v270_v6  ;;  %275 = vadd.xlane.f32.xlu1 %v273_v7  ;;  %v5326_v1 = vsub.s32 1, %v355_v0  ;;  %v357_v6 = vrot.slane %v352_v2, %v5328_v3 }
 0x1b9   :  { %v274_v9 = vmul.f32 %v5231_v8, %v5231_v8  ;;  %v289_v55 = vmul.f32 %v3571_v52, %v5231_v8  ;;  %v361_v5 = vrot.slane %v352_v2, %v5326_v1 }
 0x1bb   :  { %277 = vadd.xlane.f32.xlu1 %v274_v9  ;;  %v365_v9 = vrot.slane %v352_v2, %v364_v4 }
 0x244   :  { %v276_v36 = vpop.xlane.xlu1 %275 }
 0x245   :  { %v279_v37 = vmul.f32 0.007874016, %v276_v36 }
 0x247   :  { %4408 = vrsqrt.f32 %v279_v37  ;;  %vm292_vm1 = vcmp.eq.f32.partialorder %v279_v37, inf  ;;  %v295_v42 = vand.u32 2147483648, %v279_v37  ;;  %vm294_vm2 = vcmp.eq.f32.partialorder %v279_v37, 0.0 }
 0x248   :  { %v278_v38 = vpop.xlane.xlu1 %277 }
 0x249   :  { %v280_v39 = vmul.f32 0.007874016, %v278_v38 }
 0x24b   :  { %4410 = vrsqrt.f32 %v280_v39  ;;  %vm299_vm3 = vcmp.eq.f32.partialorder %v280_v39, inf  ;;  %v302_v48 = vand.u32 2147483648, %v280_v39  ;;  %vm301_vm4 = vcmp.eq.f32.partialorder %v280_v39, 0.0 }
 0x251   :  { %v4409_v40 = vpop.eup %4408 }
 0x252   :  { %v291_v41 = vmul.f32 %v4409_v40, %v279_v37 }
 0x254   :  { %v293_v43 = vsel %vm292_vm1, %v279_v37, %v291_v41 }
 0x255   :  { %v4411_v44 = vpop.eup %4410  ;;  %v296_v45 = vsel %vm294_vm2, %v295_v42, %v293_v43 }
 0x256   :  { %v298_v46 = vmul.f32 %v4411_v44, %v280_v39  ;;  %v304_v47 = vadd.f32 1e-06, %v296_v45 }
 0x258   :  { %v300_v49 = vsel %vm299_vm3, %v280_v39, %v298_v46  ;;  %4412 = vrcp.f32 %v304_v47 }
 0x259   :  { %v303_v50 = vsel %vm301_vm4, %v302_v48, %v300_v49 }
 0x25a   :  { %v305_v51 = vadd.f32 1e-06, %v303_v50 }
 0x25c   :  { %4414 = vrcp.f32 %v305_v51 }
 0x262   :  { %v4413_v53 = vpop.eup %4412 }
 0x263   :  { %v307_v56 = vmul.f32 %v4413_v53, %v288_v54 }
 0x265   :  { %v317_v60 = vadd.f32 %v3572_v58, %v307_v56 }
 0x266   :  { %v4415_v57 = vpop.eup %4414 }
 0x267   :  { %v309_v59 = vmul.f32 %v4415_v57, %v289_v55 }
 0x269   :  { %v318_v61 = vadd.f32 %v3572_v58, %v309_v59 }
 0x26b   :  { %v319_v62 = vpack.c.bf16 %v318_v61, %v317_v60 }
 0x26d   :  { %530 = vmatmul.mubr.bf16.vlgmr.msra.gmra.mrb[0].mxu0 %v319_v62  ;;  %3856 = vmatmul.mubr.bf16.vlgmr.msra.gmra.mrb[0].mxu1 %v319_v62 }
 0x26e   :  { %3861 = vmatprep.mubr.msk.bf16.mxu0 %vm4891_vm0, %v4889_v13  ;;  %3879 = vmatprep.mubr.msk.bf16.mxu1 %vm4891_vm0, %v4889_v13 }
 0x340   :  { %v531_v7 = vpop.f32.mrb[0].mxu0  ;;  %v574_v8 = vpop.f32.mrb[0].mxu1 }
 0x341   :  { %v533_v10 = vpop.f32.mrb[1].mxu0  ;;  %v3857_v11 = vpop.f32.mrb[1].mxu1  ;;  %v532_v16 = vadd.f32 %v531_v7, %v357_v6  ;;  %v5334_v23 = vadd.f32 %v574_v8, %v365_v9 }
 0x342   :  { %v534_v12 = vadd.f32 %v533_v10, %v361_v5  ;;  %v535_v14 = vpop.f32.mrb[2].mxu0  ;;  %v577_v15 = vpop.f32.mrb[2].mxu1 }
 0x343   :  { %v536_v17 = vadd.f32 %v535_v14, %v357_v6  ;;  %v5332_v18 = vadd.f32 %v577_v15, %v365_v9  ;;  %v537_v19 = vpop.f32.mrb[3].mxu0  ;;  %v3858_v20 = vpop.f32.mrb[3].mxu1  ;;  %v609_v30 = vpack.c.bf16 %v532_v16, %v532_v16 }
 0x344   :  { %v538_v21 = vadd.f32 %v537_v19, %v361_v5  ;;  %v637_v22 = vpack.c.bf16 %v534_v12, %v534_v12  ;;  %v665_v5 = vpack.c.bf16 %v5334_v23, %v5334_v23 }
 0x345   :  { %v4143_v24 = vpack.i.bf16 %v536_v17, %v532_v16  ;;  %v5340_v28 = vpack.i.bf16 %v5332_v18, %v5334_v23  ;;  %v610_v32 = vpack.c.bf16 %v536_v17, %v536_v17  ;;  %v666_v6 = vpack.c.bf16 %v5332_v18, %v5332_v18 }
 0x346   :  { %v678_v25 = vsel %vm673_vm5, %v637_v22, 0  ;;  %v4138_v26 = vpack.i.bf16 %v538_v21, %v534_v12  ;;  %v638_v29 = vpack.c.bf16 %v538_v21, %v538_v21  ;;  %v1160_v9 = vsel %vm1158_vm6, %v665_v5, 0  ;;  %v581_v12 = vld [vmem:[%s5862_s18] sm:$0xff]  ;;  %v582_v21 = vld [vmem:[%s5862_s18 + $0x8] sm:$0xff] }
 0x347   :  { %3860 = vmatpush3.bf16.xpose.msra.mxu0 %v678_v25  ;;  %4144 = vrot.lane.b32.xlu1 %v4143_v24, %s4892_s27  ;;  %v1206_v10 = vsel %vm1158_vm6, %v666_v6, 0 }
 0x348   :  { %4139 = vrot.lane.b32.xlu0 %v4138_v26, %s4892_s27  ;;  %3865 = vmatprep.subr.bf16.mxu0 %v4889_v13  ;;  %v724_v31 = vsel %vm673_vm5, %v638_v29, 0 }
 0x34b   :  { %4149 = vrot.lane.b32.xlu1 %v4138_v26, %s4870_s5 }
 0x34c   :  { %4159 = vrot.lane.b32.xlu0 %v4138_v26, %s4893_s2 }
 0x34e   :  { %3862 = vmatmul.mubr.msk.bf16.vlgmr.msra.gmra.mrb[4].mxu0 %vm673_vm5, %v609_v30 }
 0x34f   :  { %4154 = vrot.lane.b32.xlu1 %v4143_v24, %s4870_s5  ;;  %3866 = vmatpush3.bf16.xpose.msra.mxu0 %v724_v31 }
 0x350   :  { %3867 = vmatprep.mubr.msk.bf16.mxu0 %vm4891_vm0, %v4889_v13  ;;  %3871 = vmatprep.subr.bf16.mxu0 %v4889_v13 }
 0x353   :  { %4164 = vrot.lane.b32.xlu1 %v4143_v24, %s4893_s2 }
 0x356   :  { %3868 = vmatmul.mubr.msk.bf16.vlgmr.msra.gmra.mrb[8].mxu0 %vm673_vm5, %v610_v32  ;;  %v583_v32 = vld [vmem:[%s5862_s18 + $0x10] sm:$0xff] }
 0x357   :  { %3873 = vmatprep.mubr.msk.bf16.mxu0 %vm4891_vm0, %v4889_v13 }
 0x3b9   :  { %v4145_v33 = vpop.permute.xlu1 %4144 }
 0x3ba   :  { %v4140_v34 = vpop.permute.xlu0 %4139  ;;  %v4147_v44 = vunpack.i.h.bf16 %v4145_v33  ;;  %v4146_v45 = vunpack.i.l.bf16 %v4145_v33  ;;  %v584_v33 = vld [vmem:[%s5862_s18 + $0x18] sm:$0xff] }
 0x3bb   :  { %v4142_v35 = vunpack.i.h.bf16 %v4140_v34  ;;  %v4141_v36 = vunpack.i.l.bf16 %v4140_v34 }
 0x3bc   :  { %v612_v49 = vpack.c.bf16 %v4147_v44, %v4147_v44  ;;  %v611_v50 = vpack.c.bf16 %v4146_v45, %v4146_v45 }
 0x3bd   :  { %v640_v37 = vpack.c.bf16 %v4142_v35, %v4142_v35  ;;  %v639_v38 = vpack.c.bf16 %v4141_v36, %v4141_v36  ;;  %v4150_v39 = vpop.permute.xlu1 %4149 }
 0x3be   :  { %v4152_v40 = vunpack.i.h.bf16 %v4150_v39  ;;  %v4151_v41 = vunpack.i.l.bf16 %v4150_v39  ;;  %v4160_v48 = vpop.permute.xlu0 %4159 }
 0x3bf   :  { %v770_v42 = vsel %vm673_vm5, %v639_v38, 0  ;;  %v816_v43 = vsel %vm673_vm5, %v640_v37, 0  ;;  %v4162_v52 = vunpack.i.h.bf16 %v4160_v48  ;;  %v4161_v53 = vunpack.i.l.bf16 %v4160_v48  ;;  %v586_v48 = vld [vmem:[%s5862_s18 + $0x28] sm:$0xff] }
 0x3c0   :  { %3872 = vmatpush3.bf16.xpose.msra.mxu0 %v770_v42  ;;  %3878 = vmatpush3.bf16.xpose.msra.mxu1 %v816_v43  ;;  %v642_v46 = vpack.c.bf16 %v4152_v40, %v4152_v40  ;;  %v641_v47 = vpack.c.bf16 %v4151_v41, %v4151_v41 }
 0x3c1   :  { %3883 = vmatprep.subr.bf16.mxu0 %v4889_v13  ;;  %3889 = vmatprep.subr.bf16.mxu1 %v4889_v13  ;;  %v4155_v51 = vpop.permute.xlu1 %4154  ;;  %v644_v58 = vpack.c.bf16 %v4162_v52, %v4162_v52  ;;  %v643_v59 = vpack.c.bf16 %v4161_v53, %v4161_v53 }
 0x3c2   :  { %v862_v54 = vsel %vm673_vm5, %v641_v47, 0  ;;  %v908_v55 = vsel %vm673_vm5, %v642_v46, 0  ;;  %v4157_v56 = vunpack.i.h.bf16 %v4155_v51  ;;  %v4156_v57 = vunpack.i.l.bf16 %v4155_v51 }
 0x3c3   :  { %v954_v63 = vsel %vm673_vm5, %v643_v59, 0  ;;  %v1000_v0 = vsel %vm673_vm5, %v644_v58, 0 }
 0x3c4   :  { %v614_v60 = vpack.c.bf16 %v4157_v56, %v4157_v56  ;;  %v613_v61 = vpack.c.bf16 %v4156_v57, %v4156_v57 }
 0x3c5   :  { %v4165_v62 = vpop.permute.xlu1 %4164 }
 0x3c6   :  { %v4167_v2 = vunpack.i.h.bf16 %v4165_v62  ;;  %v4166_v4 = vunpack.i.l.bf16 %v4165_v62 }
 0x3c7   :  { %3874 = vmatmul.mubr.msk.bf16.vlgmr.msra.gmra.mrb[12].mxu0 %vm673_vm5, %v611_v50  ;;  %3880 = vmatmul.mubr.msk.bf16.vlgmr.msra.gmra.mrb[4].mxu1 %vm673_vm5, %v612_v49  ;;  %v585_v49 = vld [vmem:[%s5862_s18 + $0x20] sm:$0xff] }
 0x3c8   :  { %3884 = vmatpush3.bf16.xpose.msra.mxu0 %v862_v54  ;;  %3890 = vmatpush3.bf16.xpose.msra.mxu1 %v908_v55  ;;  %v616_v7 = vpack.c.bf16 %v4167_v2, %v4167_v2  ;;  %v615_v8 = vpack.c.bf16 %v4166_v4, %v4166_v4  ;;  %v587_v2 = vld [vmem:[%s5862_s18 + $0x30] sm:$0xff] }
 0x3c9   :  { %3885 = vmatprep.mubr.msk.bf16.mxu0 %vm4891_vm0, %v4889_v13  ;;  %3891 = vmatprep.mubr.msk.bf16.mxu1 %vm4891_vm0, %v4889_v13 }
 0x3ca   :  { %3895 = vmatprep.subr.bf16.mxu0 %v4889_v13  ;;  %3901 = vmatprep.subr.bf16.mxu1 %v4889_v13 }
 0x3cf   :  { %3886 = vmatmul.mubr.msk.bf16.vlgmr.msra.gmra.mrb[16].mxu0 %vm673_vm5, %v613_v61  ;;  %3892 = vmatmul.mubr.msk.bf16.vlgmr.msra.gmra.mrb[8].mxu1 %vm673_vm5, %v614_v60 }
 0x3d0   :  { %3896 = vmatpush3.bf16.xpose.msra.mxu0 %v954_v63  ;;  %3902 = vmatpush3.bf16.xpose.msra.mxu1 %v1000_v0  ;;  %v588_v0 = vld [vmem:[%s5862_s18 + $0x38] sm:$0xff] }
 0x3d1   :  { %3897 = vmatprep.mubr.msk.bf16.mxu0 %vm4891_vm0, %v4889_v13  ;;  %3903 = vmatprep.mubr.msk.bf16.mxu1 %vm4891_vm0, %v4889_v13 }
 0x3d2   :  { %3907 = vmatprep.subr.bf16.mxu0 %v4889_v13  ;;  %3913 = vmatprep.subr.bf16.mxu1 %v4889_v13 }
 0x3d7   :  { %3898 = vmatmul.mubr.msk.bf16.vlgmr.msra.gmra.mrb[20].mxu0 %vm673_vm5, %v615_v8  ;;  %3904 = vmatmul.mubr.msk.bf16.vlgmr.msra.gmra.mrb[12].mxu1 %vm673_vm5, %v616_v7 }
 0x3d8   :  { %3908 = vmatpush3.bf16.msra.mxu0 %v1160_v9  ;;  %3914 = vmatpush3.bf16.msra.mxu1 %v1206_v10 }
 0x3d9   :  { %3909 = vmatprep.mubr.msk.bf16.mxu0 %vm4891_vm0, %v4889_v13  ;;  %3915 = vmatprep.mubr.msk.bf16.mxu1 %vm4891_vm0, %v4889_v13 }
 0x3da   :  { %3919 = vmatprep.subr.bf16.mxu0 %v4889_v13  ;;  %3925 = vmatprep.subr.bf16.mxu1 %v4889_v13 }
 0x421   :  { %v714_v11 = vpop.f32.mrb[4].mxu0 }
 0x422   :  { %v1042_v14 = vmul.f32 0.17677669, %v714_v11  ;;  %v3863_v15 = vpop.f32.mrb[5].mxu0 }
 0x423   :  { %v717_v16 = vpop.f32.mrb[6].mxu0 }
 0x424   :  { %v3864_v17 = vpop.f32.mrb[7].mxu0  ;;  %v5397_v18 = vadd.f32 %v1042_v14, %v581_v12 }
 0x426   :  { %v1059_v19 = vsel %vm1058_vm7, %v5397_v18, -inf }
 0x427   :  { %1060 = vmax.xlane.f32.xlu0 %v1059_v19 }
 0x429   :  { %v760_v20 = vpop.f32.mrb[8].mxu0 }
 0x42a   :  { %v1043_v22 = vmul.f32 0.17677669, %v760_v20  ;;  %v3869_v23 = vpop.f32.mrb[9].mxu0 }
 0x42b   :  { %v763_v24 = vpop.f32.mrb[10].mxu0 }
 0x42c   :  { %v3870_v25 = vpop.f32.mrb[11].mxu0  ;;  %v5404_v26 = vadd.f32 %v1043_v22, %v582_v21 }
 0x42e   :  { %v1062_v29 = vsel %vm1058_vm7, %v5404_v26, -inf }
 0x42f   :  { %1063 = vmax.xlane.f32.xlu1 %v1062_v29 }
 0x49a   :  { %v806_v30 = vpop.f32.mrb[12].mxu0  ;;  %v852_v31 = vpop.f32.mrb[4].mxu1 }
 0x49b   :  { %v1044_v34 = vmul.f32 0.17677669, %v806_v30  ;;  %v1045_v35 = vmul.f32 0.17677669, %v852_v31  ;;  %v3875_v36 = vpop.f32.mrb[13].mxu0  ;;  %v3881_v37 = vpop.f32.mrb[5].mxu1 }
 0x49c   :  { %v809_v38 = vpop.f32.mrb[14].mxu0  ;;  %v855_v39 = vpop.f32.mrb[6].mxu1 }
 0x49d   :  { %v3876_v40 = vpop.f32.mrb[15].mxu0  ;;  %v3882_v41 = vpop.f32.mrb[7].mxu1  ;;  %v1052_v42 = vadd.f32 %v1044_v34, %v583_v32  ;;  %v1053_v43 = vadd.f32 %v1045_v35, %v584_v33 }
 0x49f   :  { %v1065_v44 = vsel %vm1058_vm7, %v1052_v42, -inf  ;;  %v1068_v47 = vsel %vm1058_vm7, %v1053_v43, -inf }
 0x4a0   :  { %1066 = vmax.xlane.f32.xlu0 %v1065_v44 }
 0x4a2   :  { %v898_v45 = vpop.f32.mrb[16].mxu0  ;;  %v944_v46 = vpop.f32.mrb[8].mxu1 }
 0x4a3   :  { %v1046_v50 = vmul.f32 0.17677669, %v898_v45  ;;  %v1047_v51 = vmul.f32 0.17677669, %v944_v46  ;;  %v3887_v52 = vpop.f32.mrb[17].mxu0  ;;  %v3893_v53 = vpop.f32.mrb[9].mxu1 }
 0x4a4   :  { %v947_v54 = vpop.f32.mrb[10].mxu1  ;;  %1069 = vmax.xlane.f32.xlu0 %v1068_v47  ;;  %v901_v55 = vpop.f32.mrb[18].mxu0 }
 0x4a5   :  { %v3888_v56 = vpop.f32.mrb[19].mxu0  ;;  %v3894_v57 = vpop.f32.mrb[11].mxu1  ;;  %v1055_v58 = vadd.f32 %v1047_v51, %v586_v48  ;;  %v1054_v59 = vadd.f32 %v1046_v50, %v585_v49 }
 0x4a7   :  { %v1074_v60 = vsel %vm1058_vm7, %v1055_v58, -inf  ;;  %v1071_v61 = vsel %vm1058_vm7, %v1054_v59, -inf }
 0x4a8   :  { %1075 = vmax.xlane.f32.xlu1 %v1074_v60  ;;  %1072 = vmax.xlane.f32.xlu0 %v1071_v61 }
 0x4aa   :  { %v990_v62 = vpop.f32.mrb[20].mxu0  ;;  %v1036_v63 = vpop.f32.mrb[12].mxu1 }
 0x4ab   :  { %v1048_v4 = vmul.f32 0.17677669, %v990_v62  ;;  %v1049_v5 = vmul.f32 0.17677669, %v1036_v63  ;;  %v3899_v6 = vpop.f32.mrb[21].mxu0  ;;  %v3905_v7 = vpop.f32.mrb[13].mxu1 }
 0x4ac   :  { %v993_v8 = vpop.f32.mrb[22].mxu0  ;;  %v1039_v9 = vpop.f32.mrb[14].mxu1 }
 0x4ad   :  { %v3900_v10 = vpop.f32.mrb[23].mxu0  ;;  %v3906_v11 = vpop.f32.mrb[15].mxu1  ;;  %v5430_v12 = vadd.f32 %v1049_v5, %v588_v0  ;;  %v1056_v14 = vadd.f32 %v1048_v4, %v587_v2 }
 0x4af   :  { %v1080_v15 = vsel %vm1058_vm7, %v5430_v12, -inf  ;;  %v1077_v16 = vsel %vm1058_vm7, %v1056_v14, -inf }
 0x4b0   :  { %1081 = vmax.xlane.f32.xlu1 %v1080_v15  ;;  %1078 = vmax.xlane.f32.xlu0 %v1077_v16 }
 0x4b4   :  { %v1061_v17 = vpop.xlane.xlu0 %1060 }
 0x4b5   :  { %v1083_v19 = vsub.f32 %v5397_v18, %v1061_v17 }
 0x4b7   :  { %v1091_v20 = vmul.f32 1.442695, %v1083_v19 }
 0x4b9   :  { %4416 = vpow2.f32 %v1091_v20 }
 0x4bc   :  { %v1064_v21 = vpop.xlane.xlu1 %1063 }
 0x4bd   :  { %v1084_v22 = vsub.f32 %v5404_v26, %v1064_v21 }
 0x4bf   :  { %v1093_v23 = vmul.f32 1.442695, %v1084_v22 }
 0x4c1   :  { %4418 = vpow2.f32 %v1093_v23 }
 0x4c3   :  { %v4417_v24 = vpop.eup %4416 }
 0x4c4   :  { %v1107_v25 = vsel %vm1058_vm7, %v4417_v24, 0.0 }
 0x4c5   :  { %1108 = vadd.xlane.f32.xlu0 %v1107_v25 }
 0x4cb   :  { %v4419_v29 = vpop.eup %4418 }
 0x4cc   :  { %v1110_v30 = vsel %vm1058_vm7, %v4419_v29, 0.0 }
 0x4cd   :  { %1111 = vadd.xlane.f32.xlu1 %v1110_v30 }
 0x52d   :  { %v1067_v31 = vpop.xlane.xlu0 %1066 }
 0x52e   :  { %v1085_v32 = vsub.f32 %v1052_v42, %v1067_v31 }
 0x530   :  { %v1095_v33 = vmul.f32 1.442695, %v1085_v32 }
 0x531   :  { %v1070_v34 = vpop.xlane.xlu0 %1069 }
 0x532   :  { %4420 = vpow2.f32 %v1095_v33  ;;  %v1086_v18 = vsub.f32 %v1053_v43, %v1070_v34 }
 0x534   :  { %v1097_v35 = vmul.f32 1.442695, %v1086_v18 }
 0x535   :  { %v1076_v36 = vpop.xlane.xlu1 %1075  ;;  %v1073_v37 = vpop.xlane.xlu0 %1072 }
 0x536   :  { %4422 = vpow2.f32 %v1097_v35  ;;  %v1088_v26 = vsub.f32 %v1055_v58, %v1076_v36  ;;  %v1087_v38 = vsub.f32 %v1054_v59, %v1073_v37 }
 0x538   :  { %v1101_v39 = vmul.f32 1.442695, %v1088_v26  ;;  %v1099_v40 = vmul.f32 1.442695, %v1087_v38 }
 0x53a   :  { %4424 = vpow2.f32 %v1101_v39 }
 0x53b   :  { %4426 = vpow2.f32 %v1099_v40 }
 0x53c   :  { %v4421_v41 = vpop.eup %4420 }
 0x53d   :  { %v1079_v44 = vpop.xlane.xlu0 %1078  ;;  %v1113_v45 = vsel %vm1058_vm7, %v4421_v41, 0.0  ;;  %v1082_v55 = vpop.xlane.xlu1 %1081 }
 0x53e   :  { %v1089_v46 = vsub.f32 %v1056_v14, %v1079_v44  ;;  %1114 = vadd.xlane.f32.xlu0 %v1113_v45  ;;  %v1090_v61 = vsub.f32 %v5430_v12, %v1082_v55 }
 0x540   :  { %v4423_v42 = vpop.eup %4422  ;;  %v1103_v47 = vmul.f32 1.442695, %v1089_v46  ;;  %v1105_v0 = vmul.f32 1.442695, %v1090_v61 }
 0x541   :  { %v1116_v43 = vsel %vm1058_vm7, %v4423_v42, 0.0 }
 0x542   :  { %1117 = vadd.xlane.f32.xlu1 %v1116_v43  ;;  %4428 = vpow2.f32 %v1103_v47 }
 0x544   :  { %v5441_v48 = vpop.eup %4424 }
 0x545   :  { %v5443_v49 = vpop.eup %4426  ;;  %v1122_v50 = vsel %vm1058_vm7, %v5441_v48, 0.0 }
 0x546   :  { %1123 = vadd.xlane.f32.xlu1 %v1122_v50  ;;  %v1119_v51 = vsel %vm1058_vm7, %v5443_v49, 0.0 }
 0x547   :  { %1120 = vadd.xlane.f32.xlu0 %v1119_v51 }
 0x54c   :  { %v5449_v52 = vpop.eup %4428 }
 0x54d   :  { %v1125_v53 = vsel %vm1058_vm7, %v5449_v52, 0.0 }
 0x54e   :  { %1126 = vadd.xlane.f32.xlu0 %v1125_v53 }
 0x552   :  { %v1109_v54 = vpop.xlane.xlu0 %1108 }
 0x553   :  { %4430 = vrcp.f32 %v1109_v54 }
 0x557   :  { %4174 = vrot.lane.b32.xlu1 %v5340_v28, %s4870_s5 }
 0x55a   :  { %v1112_v56 = vpop.xlane.xlu1 %1111 }
 0x55b   :  { %4432 = vrcp.f32 %v1112_v56 }
 0x55c   :  { %4434 = vpow2.f32 %v1105_v0 }
 0x55d   :  { %v4431_v57 = vpop.eup %4430 }
 0x55e   :  { %v1139_v58 = vmul.f32 %v4431_v57, %v4417_v24 }
 0x560   :  { %v1147_v59 = vpack.c.bf16 %v1139_v58, %v1139_v58 }
 0x562   :  { %3910 = vmatmul.mubr.msk.bf16.vlgmr.msra.gmra.mrb[24].mxu0 %vm1058_vm7, %v1147_v59 }
 0x563   :  { %3921 = vmatprep.mubr.msk.bf16.mxu0 %vm4891_vm0, %v4889_v13 }
 0x564   :  { %4169 = vrot.lane.b32.xlu0 %v5340_v28, %s4892_s27 }
 0x565   :  { %v4433_v60 = vpop.eup %4432 }
 0x566   :  { %v1140_v62 = vmul.f32 %v4433_v60, %v4419_v29  ;;  %v5464_v2 = vpop.eup %4434 }
 0x567   :  { %v1128_v4 = vsel %vm1058_vm7, %v5464_v2, 0.0 }
 0x568   :  { %v1148_v63 = vpack.c.bf16 %v1140_v62, %v1140_v62  ;;  %v4320_v62 = vld [vmem:[#allocation7] sm:$0xff]  }
 0x56a   :  { %3916 = vmatmul.mubr.msk.bf16.vlgmr.msra.gmra.mrb[16].mxu1 %vm1058_vm7, %v1148_v63 }
 0x56b   :  { %3927 = vmatprep.mubr.msk.bf16.mxu1 %vm4891_vm0, %v4889_v13 }
 0x57b   :  { %1129 = vadd.xlane.f32.xlu1 %v1128_v4 }
 0x58c   :  { %4179 = vrot.lane.b32.xlu1 %v5340_v28, %s4893_s2 }
 0x5cb   :  { %v1115_v5 = vpop.xlane.xlu0 %1114 }
 0x5cc   :  { %4436 = vrcp.f32 %v1115_v5 }
 0x5cf   :  { %v1118_v6 = vpop.xlane.xlu1 %1117 }
 0x5d0   :  { %4438 = vrcp.f32 %v1118_v6  ;;  %v4321_v6 = vld [vmem:[#allocation7 + $0x8] sm:$0xff]  }
 0x5d3   :  { %v1124_v7 = vpop.xlane.xlu1 %1123 }
 0x5d4   :  { %v1121_v8 = vpop.xlane.xlu0 %1120  ;;  %4440 = vrcp.f32 %v1124_v7 }
 0x5d5   :  { %4442 = vrcp.f32 %v1121_v8 }
 0x5d6   :  { %v4437_v11 = vpop.eup %4436 }
 0x5d7   :  { %v4175_v10 = vpop.permute.xlu1 %4174  ;;  %v1141_v20 = vmul.f32 %v4437_v11, %v4421_v41 }
 0x5d8   :  { %v4177_v15 = vunpack.i.h.bf16 %v4175_v10  ;;  %v4176_v16 = vunpack.i.l.bf16 %v4175_v10 }
 0x5d9   :  { %v1149_v31 = vpack.c.bf16 %v1141_v20, %v1141_v20 }
 0x5da   :  { %v4439_v12 = vpop.eup %4438  ;;  %v670_v23 = vpack.c.bf16 %v4177_v15, %v4177_v15  ;;  %v669_v24 = vpack.c.bf16 %v4176_v16, %v4176_v16 }
 0x5db   :  { %v1127_v9 = vpop.xlane.xlu0 %1126  ;;  %v1142_v21 = vmul.f32 %v4439_v12, %v4423_v42 }
 0x5dc   :  { %v1344_v34 = vsel %vm1158_vm6, %v669_v24, 0  ;;  %v1390_v18 = vsel %vm1158_vm6, %v670_v23, 0  ;;  %4444 = vrcp.f32 %v1127_v9  ;;  %v4322_v9 = vld [vmem:[#allocation7 + $0x10] sm:$0xff]   ;;  %v4327_v24 = vld [vmem:[#allocation7 + $0x38] sm:$0xff]  }
 0x5dd   :  { %v1150_v32 = vpack.c.bf16 %v1142_v21, %v1142_v21  ;;  %v4326_v23 = vld [vmem:[#allocation7 + $0x30] sm:$0xff]  }
 0x5de   :  { %v4441_v30 = vpop.eup %4440 }
 0x5df   :  { %v4170_v14 = vpop.permute.xlu0 %4169  ;;  %v4443_v33 = vpop.eup %4442  ;;  %v1144_v35 = vmul.f32 %v4441_v30, %v5441_v48 }
 0x5e0   :  { %v4172_v17 = vunpack.i.h.bf16 %v4170_v14  ;;  %v4171_v19 = vunpack.i.l.bf16 %v4170_v14  ;;  %v1143_v36 = vmul.f32 %v4443_v33, %v5443_v49 }
 0x5e1   :  { %v1152_v26 = vpack.c.bf16 %v1144_v35, %v1144_v35 }
 0x5e2   :  { %v668_v28 = vpack.c.bf16 %v4172_v17, %v4172_v17  ;;  %v667_v22 = vpack.c.bf16 %v4171_v19, %v4171_v19  ;;  %v1151_v37 = vpack.c.bf16 %v1143_v36, %v1143_v36  ;;  %v4323_v19 = vld [vmem:[#allocation7 + $0x18] sm:$0xff]  }
 0x5e4   :  { %v1252_v25 = vsel %vm1158_vm6, %v667_v22, 0  ;;  %v1298_v29 = vsel %vm1158_vm6, %v668_v28, 0  ;;  %v4324_v28 = vld [vmem:[#allocation7 + $0x20] sm:$0xff]   ;;  %v4325_v22 = vld [vmem:[#allocation7 + $0x28] sm:$0xff]  }
 0x5e5   :  { %3920 = vmatpush3.bf16.msra.mxu0 %v1252_v25  ;;  %3926 = vmatpush3.bf16.msra.mxu1 %v1298_v29 }
 0x5e6   :  { %3931 = vmatprep.subr.bf16.mxu0 %v4889_v13  ;;  %3937 = vmatprep.subr.bf16.mxu1 %v4889_v13  ;;  %v4445_v39 = vpop.eup %4444 }
 0x5e7   :  { %v1145_v45 = vmul.f32 %v4445_v39, %v5449_v52 }
 0x5e8   :  { %3922 = vmatmul.mubr.msk.bf16.vlgmr.msra.gmra.mrb[28].mxu0 %vm1058_vm7, %v1149_v31  ;;  %3928 = vmatmul.mubr.msk.bf16.vlgmr.msra.gmra.mrb[20].mxu1 %vm1058_vm7, %v1150_v32 }
 0x5e9   :  { %3932 = vmatpush3.bf16.msra.mxu0 %v1344_v34  ;;  %3938 = vmatpush3.bf16.msra.mxu1 %v1390_v18  ;;  %v1153_v49 = vpack.c.bf16 %v1145_v45, %v1145_v45 }
 0x5ea   :  { %3933 = vmatprep.mubr.msk.bf16.mxu0 %vm4891_vm0, %v4889_v13  ;;  %3939 = vmatprep.mubr.msk.bf16.mxu1 %vm4891_vm0, %v4889_v13 }
 0x5eb   :  { %3943 = vmatprep.subr.bf16.mxu0 %v4889_v13  ;;  %3949 = vmatprep.subr.bf16.mxu1 %v4889_v13 }
 0x5f0   :  { %3934 = vmatmul.mubr.msk.bf16.vlgmr.msra.gmra.mrb[32].mxu0 %vm1058_vm7, %v1151_v37  ;;  %3940 = vmatmul.mubr.msk.bf16.vlgmr.msra.gmra.mrb[24].mxu1 %vm1058_vm7, %v1152_v26 }
 0x5f1   :  { %3945 = vmatprep.mubr.msk.bf16.mxu0 %vm4891_vm0, %v4889_v13  ;;  %3951 = vmatprep.mubr.msk.bf16.mxu1 %vm4891_vm0, %v4889_v13 }
 0x608   :  { %v1130_v38 = vpop.xlane.xlu1 %1129 }
 0x609   :  { %4446 = vrcp.f32 %v1130_v38 }
 0x60c   :  { %v4180_v40 = vpop.permute.xlu1 %4179 }
 0x60d   :  { %v4182_v41 = vunpack.i.h.bf16 %v4180_v40  ;;  %v4181_v44 = vunpack.i.l.bf16 %v4180_v40 }
 0x60f   :  { %v672_v46 = vpack.c.bf16 %v4182_v41, %v4182_v41  ;;  %v671_v42 = vpack.c.bf16 %v4181_v44, %v4181_v44 }
 0x611   :  { %v1436_v47 = vsel %vm1158_vm6, %v671_v42, 0  ;;  %v1482_v43 = vsel %vm1158_vm6, %v672_v46, 0 }
 0x612   :  { %3944 = vmatpush3.bf16.msra.mxu0 %v1436_v47  ;;  %3950 = vmatpush3.bf16.msra.mxu1 %v1482_v43 }
 0x613   :  { %v4447_v48 = vpop.eup %4446  ;;  %3955 = vmatprep.subr.bf16.mxu0 %v4889_v13  ;;  %3975 = vmatprep.subr.bf16.mxu1 %v4889_v13 }
 0x614   :  { %v1146_v50 = vmul.f32 %v4447_v48, %v5464_v2 }
 0x615   :  { %3946 = vmatmul.mubr.msk.bf16.vlgmr.msra.gmra.mrb[36].mxu0 %vm1058_vm7, %v1153_v49 }
 0x616   :  { %v1154_v51 = vpack.c.bf16 %v1146_v50, %v1146_v50  ;;  %3971 = vmatprep.mubr.msk.bf16.mxu0 %vm4891_vm0, %v4889_v13  ;;  %3956 = vmatpush3.bf16.msra.mxu0 %v4320_v62  ;;  %v4328_v62 = vld [vmem:[#allocation11] ss:$8 sps:$4 sm:$0xff]  }
 0x617   :  { %3957 = vmatprep.subr.bf16.mxu0 %v4889_v13 }
 0x618   :  { %3952 = vmatmul.mubr.msk.bf16.vlgmr.msra.gmra.mrb[28].mxu1 %vm1058_vm7, %v1154_v51  ;;  %v3613_v51 = vld [vmem:[%s5835_s7] ss:$0 sm:$0xff] }
 0x619   :  { %3991 = vmatprep.mubr.msk.bf16.mxu1 %vm4891_vm0, %v4889_v13 }
 0x61a   :  { %3958 = vmatpush3.bf16.msra.mxu0 %v4321_v6  ;;  %v4339_v6 = vld [vmem:[#allocation11 + $0x34] ss:$8 sps:$4 sm:$0xff]  }
 0x61b   :  { %3959 = vmatprep.subr.bf16.mxu0 %v4889_v13 }
 0x61e   :  { %3960 = vmatpush3.bf16.msra.mxu0 %v4322_v9 }
 0x61f   :  { %3961 = vmatprep.subr.bf16.mxu0 %v4889_v13 }
 0x622   :  { %3962 = vmatpush3.bf16.msra.mxu0 %v4323_v19  ;;  %v4340_v19 = vld [vmem:[#allocation11 + $0x40] ss:$8 sps:$4 sm:$0xff]  }
 0x623   :  { %3963 = vmatprep.subr.bf16.mxu0 %v4889_v13 }
 0x626   :  { %3964 = vmatpush3.bf16.msra.mxu0 %v4324_v28  ;;  %v4346_v28 = vld [vmem:[#allocation8] sm:$0xff]  }
 0x627   :  { %3965 = vmatprep.subr.bf16.mxu0 %v4889_v13  ;;  %3976 = vmatpush3.bf16.msra.mxu1 %v4346_v28 }
 0x628   :  { %3977 = vmatprep.subr.bf16.mxu1 %v4889_v13 }
 0x62a   :  { %3966 = vmatpush3.bf16.msra.mxu0 %v4325_v22  ;;  %v4349_v22 = vld [vmem:[#allocation11 + $0x64] ss:$8 sps:$4 sm:$0xff]  }
 0x62b   :  { %3967 = vmatprep.subr.bf16.mxu0 %v4889_v13 }
 0x62e   :  { %3968 = vmatpush3.bf16.msra.mxu0 %v4326_v23  ;;  %v4347_v23 = vld [vmem:[#allocation11 + $0x60] ss:$8 sps:$4 sm:$0xff]  }
 0x62f   :  { %3969 = vmatprep.subr.bf16.mxu0 %v4889_v13 }
 0x632   :  { %3970 = vmatpush3.bf16.msra.mxu0 %v4327_v24  ;;  %v4350_v24 = vld [vmem:[#allocation8 + $0x8] sm:$0xff]  }
 0x633   :  { %3978 = vmatpush3.bf16.msra.mxu1 %v4350_v24 }
 0x634   :  { %3979 = vmatprep.subr.bf16.mxu1 %v4889_v13 }
 0x635   :  { %v5504_v52 = vpop.f32.mrb[24].mxu0 }
 0x636   :  { %v3911_v53 = vpop.f32.mrb[25].mxu0 }
 0x637   :  { %v1199_v54 = vpop.f32.mrb[26].mxu0 }
 0x638   :  { %v3912_v55 = vpop.f32.mrb[27].mxu0 }
 0x63d   :  { %v5506_v56 = vpop.f32.mrb[16].mxu1 }
 0x63e   :  { %v3917_v57 = vpop.f32.mrb[17].mxu1 }
 0x63f   :  { %v1245_v58 = vpop.f32.mrb[18].mxu1 }
 0x640   :  { %v3918_v59 = vpop.f32.mrb[19].mxu1 }
 0x6bb   :  { %v1288_v60 = vpop.f32.mrb[28].mxu0  ;;  %v1334_v61 = vpop.f32.mrb[20].mxu1 }
 0x6bc   :  { %v4183_v63 = vpack.i.bf16 %v1334_v61, %v1288_v60  ;;  %v3923_v0 = vpop.f32.mrb[29].mxu0  ;;  %v3929_v2 = vpop.f32.mrb[21].mxu1  ;;  %v4497_v60 = vld [vmem:[%s5860_s11 + $0x8] sm:$0xff] }
 0x6bd   :  { %v1291_v4 = vpop.f32.mrb[30].mxu0  ;;  %v1337_v5 = vpop.f32.mrb[22].mxu1  ;;  %v4333_v0 = vld [vmem:[#allocation11 + $0x14] ss:$8 sps:$4 sm:$0xff]   ;;  %v4331_v2 = vld [vmem:[#allocation11 + $0x10] ss:$8 sps:$4 sm:$0xff]  }
 0x6be   :  { %v3930_v7 = vpop.f32.mrb[23].mxu1  ;;  %4184 = vrot.lane.b32.xlu1 %v4183_v63, %s4893_s2  ;;  %v3924_v8 = vpop.f32.mrb[31].mxu0  ;;  %v4330_v63 = vld [vmem:[#allocation11 + $0x4] ss:$8 sps:$4 sm:$0xff]   ;;  %v4334_v5 = vld [vmem:[#allocation11 + $0x20] ss:$8 sps:$4 sm:$0xff]  }
 0x6bf   :  { %1950 = vmatprep.subr.bf16.mxu0 %v4330_v63  ;;  %v4336_v4 = vld [vmem:[#allocation11 + $0x24] ss:$8 sps:$4 sm:$0xff]   ;;  %v4337_v7 = vld [vmem:[#allocation11 + $0x30] ss:$8 sps:$4 sm:$0xff]  }
 0x6c3   :  { %v1380_v10 = vpop.f32.mrb[32].mxu0  ;;  %v1426_v11 = vpop.f32.mrb[24].mxu1 }
 0x6c4   :  { %v4188_v12 = vpack.i.bf16 %v1426_v11, %v1380_v10  ;;  %v3935_v14 = vpop.f32.mrb[33].mxu0  ;;  %v3941_v15 = vpop.f32.mrb[25].mxu1 }
 0x6c5   :  { %v1383_v16 = vpop.f32.mrb[34].mxu0  ;;  %v1429_v17 = vpop.f32.mrb[26].mxu1 }
 0x6c6   :  { %v3942_v20 = vpop.f32.mrb[27].mxu1  ;;  %4189 = vrot.lane.b32.xlu0 %v4188_v12, %s4870_s5  ;;  %v3936_v21 = vpop.f32.mrb[35].mxu0  ;;  %v4342_v17 = vld [vmem:[#allocation11 + $0x44] ss:$8 sps:$4 sm:$0xff]  }
 0x6c7   :  { %v4345_v20 = vld [vmem:[#allocation11 + $0x54] ss:$8 sps:$4 sm:$0xff]   ;;  %v4343_v21 = vld [vmem:[#allocation11 + $0x50] ss:$8 sps:$4 sm:$0xff]  }
 0x6e8   :  { %v1472_v25 = vpop.f32.mrb[36].mxu0 }
 0x6e9   :  { %v3947_v29 = vpop.f32.mrb[37].mxu0 }
 0x6ea   :  { %v1475_v30 = vpop.f32.mrb[38].mxu0  ;;  %v4351_v29 = vld [vmem:[#allocation11 + $0x70] ss:$8 sps:$4 sm:$0xff]  }
 0x6eb   :  { %v3948_v31 = vpop.f32.mrb[39].mxu0  ;;  %v1518_v32 = vpop.f32.mrb[28].mxu1  ;;  %v4354_v30 = vld [vmem:[#allocation8 + $0x10] sm:$0xff]  }
 0x6ec   :  { %v4193_v33 = vpack.i.bf16 %v1518_v32, %v1472_v25  ;;  %v3953_v34 = vpop.f32.mrb[29].mxu1  ;;  %v4353_v25 = vld [vmem:[#allocation11 + $0x74] ss:$8 sps:$4 sm:$0xff]   ;;  %v261_v32 = vld [vmem:[#allocation2 + $0x8] sm:$0xff]  ;;  %3980 = vmatpush3.bf16.msra.mxu1 %v4354_v30 }
 0x6ed   :  { %v1521_v18 = vpop.f32.mrb[30].mxu1  ;;  %v260_v31 = vld [vmem:[#allocation2] sm:$0xff]  ;;  %3981 = vmatprep.subr.bf16.mxu1 %v4889_v13 }
 0x6ee   :  { %v3954_v35 = vpop.f32.mrb[31].mxu1  ;;  %4194 = vrot.lane.b32.xlu1 %v4193_v33, %s4892_s27  ;;  %v1840_v33 = vpack.c.bf16 %v261_v32, %v260_v31  ;;  %v4355_v34 = vld [vmem:[#allocation8 + $0x18] sm:$0xff]   ;;  %v262_v18 = vld [vmem:[#allocation2 + $0x10] sm:$0xff] }
 0x6ef   :  { %v263_v35 = vld [vmem:[#allocation2 + $0x18] sm:$0xff] }
 0x6f0   :  { %3982 = vmatpush3.bf16.msra.mxu1 %v4355_v34 }
 0x6f1   :  { %3983 = vmatprep.subr.bf16.mxu1 %v4889_v13 }
 0x730   :  { %v4185_v36 = vpop.permute.xlu1 %4184 }
 0x731   :  { %v4187_v26 = vunpack.i.h.bf16 %v4185_v36  ;;  %v4186_v38 = vunpack.i.l.bf16 %v4185_v36  ;;  %v4356_v36 = vld [vmem:[#allocation8 + $0x20] sm:$0xff]  }
 0x732   :  { %3984 = vmatpush3.bf16.msra.mxu1 %v4356_v36 }
 0x733   :  { %v1549_v44 = vsel %vm673_vm5, %v5506_v56, %v4187_v26  ;;  %v1548_v45 = vsel %vm673_vm5, %v5504_v52, %v4186_v38  ;;  %v4496_v56 = vld [vmem:[%s5860_s11] sm:$0xff]  ;;  %v4357_v26 = vld [vmem:[#allocation8 + $0x28] sm:$0xff]   ;;  %3985 = vmatprep.subr.bf16.mxu1 %v4889_v13  ;;  %v4358_v38 = vld [vmem:[#allocation8 + $0x30] sm:$0xff]  }
 0x736   :  { %3986 = vmatpush3.bf16.msra.mxu1 %v4357_v26 }
 0x737   :  { %3987 = vmatprep.subr.bf16.mxu1 %v4889_v13 }
 0x738   :  { %v4190_v37 = vpop.permute.xlu0 %4189 }
 0x739   :  { %v4192_v39 = vunpack.i.h.bf16 %v4190_v37  ;;  %v4191_v40 = vunpack.i.l.bf16 %v4190_v37  ;;  %v1841_v37 = vpack.c.bf16 %v263_v35, %v262_v18 }
 0x73a   :  { %3988 = vmatpush3.bf16.msra.mxu1 %v4358_v38 }
 0x73b   :  { %v1552_v47 = vsel %vm1550_vm8, %v1549_v44, %v4192_v39  ;;  %v1551_v43 = vsel %vm1550_vm8, %v1548_v45, %v4191_v40  ;;  %v4359_v39 = vld [vmem:[#allocation8 + $0x38] sm:$0xff]   ;;  %3989 = vmatprep.subr.bf16.mxu1 %v4889_v13 }
 0x73e   :  { %3990 = vmatpush3.bf16.msra.mxu1 %v4359_v39 }
 0x73f   :  { %3995 = vmatprep.subr.bf16.mxu1 %v4889_v13 }
 0x760   :  { %v4195_v41 = vpop.permute.xlu1 %4194 }
 0x761   :  { %v4197_v46 = vunpack.i.h.bf16 %v4195_v41  ;;  %v4196_v42 = vunpack.i.l.bf16 %v4195_v41 }
 0x763   :  { %v1555_v48 = vsel %vm1553_vm9, %v1552_v47, %v4197_v46  ;;  %v1554_v49 = vsel %vm1553_vm9, %v1551_v43, %v4196_v42 }
 0x764   :  { %v1556_v50 = vpack.c.bf16 %v1555_v48, %v1554_v49 }
 0x766   :  { %3972 = vmatmul.mubr.bf16.vlgmr.msra.gmra.mrb[40].mxu0 %v1556_v50 }
 0x767   :  { %1982 = vmatprep.mubr.bf16.mxu0 %v4890_v27  ;;  %1951 = vmatpush1.bf16.msra.mxu0 %v4328_v62 }
 0x768   :  { %1952 = vmatprep.subr.bf16.mxu0 %v4333_v0  ;;  %v3623_v0 = vld [vmem:[#allocation25 + $0x1] ss:$0 sm:$0xff] }
 0x76b   :  { %1953 = vmatpush1.bf16.msra.mxu0 %v4331_v2 }
 0x76c   :  { %1954 = vmatprep.subr.bf16.mxu0 %v4336_v4 }
 0x76f   :  { %1955 = vmatpush1.bf16.msra.mxu0 %v4334_v5 }
 0x770   :  { %1956 = vmatprep.subr.bf16.mxu0 %v4339_v6 }
 0x773   :  { %1957 = vmatpush1.bf16.msra.mxu0 %v4337_v7  ;;  %v1858_v7 = vld [vmem:[#allocation13] sm:$0x3] }
 0x774   :  { %1958 = vmatprep.subr.bf16.mxu0 %v4342_v17 }
 0x777   :  { %1959 = vmatpush1.bf16.msra.mxu0 %v4340_v19 }
 0x778   :  { %1960 = vmatprep.subr.bf16.mxu0 %v4345_v20 }
 0x77b   :  { %1961 = vmatpush1.bf16.msra.mxu0 %v4343_v21 }
 0x77c   :  { %1962 = vmatprep.subr.bf16.mxu0 %v4349_v22 }
 0x77f   :  { %1963 = vmatpush1.bf16.msra.mxu0 %v4347_v23 }
 0x780   :  { %1964 = vmatprep.subr.bf16.mxu0 %v4353_v25 }
 0x783   :  { %1965 = vmatpush1.bf16.msra.mxu0 %v4351_v29 }
 0x784   :  { %4025 = vmatprep.subr.bf16.mxu0 %v4889_v13 }
 0x786   :  { %1983 = vmatmul.mubr.bf16.vlgmr.msra.gmra.mrb[44].mxu0 %v1840_v33 }
 0x787   :  { %1992 = vmatprep.mubr.bf16.mxu0 %v4890_v27 }
 0x78e   :  { %1993 = vmatmul.mubr.bf16.gmra.mrb[48].mxu0 %v1841_v37 }
 0x78f   :  { %4027 = vmatprep.mubr.msk.bf16.mxu0 %vm4891_vm0, %v4889_v13 }
 0x839   :  { %v1662_v53 = vpop.f32.mrb[40].mxu0 }
 0x83a   :  { %v1663_v52 = vadd.f32 %v3613_v51, %v1662_v53  ;;  %v3973_v54 = vpop.f32.mrb[41].mxu0 }
 0x83b   :  { %v1665_v55 = vpop.f32.mrb[42].mxu0 }
 0x83c   :  { %v5533_v57 = vadd.f32 %v4496_v56, %v1663_v52  ;;  %v1666_v58 = vadd.f32 %v3613_v51, %v1665_v55  ;;  %v3974_v59 = vpop.f32.mrb[43].mxu0  ;;  %v3622_v56 = vld [vmem:[#allocation23 + $0x1] ss:$0 sm:$0xff] }
 0x83e   :  { %v5538_v61 = vadd.f32 %v4497_v60, %v1666_v58  ;;  %1671 = vadd.xlane.f32.xlu0 %v5533_v57 }
 0x840   :  { %1673 = vadd.xlane.f32.xlu1 %v5538_v61 }
 0x8cb   :  { %v1672_v8 = vpop.xlane.xlu0 %1671 }
 0x8cc   :  { %v1675_v9 = vmul.f32 0.0078125, %v1672_v8  ;;  %v1863_v8 = vrot.slane %v1858_v7, %v5328_v3 }
 0x8cd   :  { %v1674_v10 = vpop.xlane.xlu1 %1673 }
 0x8ce   :  { %v5543_v11 = vsub.f32 %v5533_v57, %v1675_v9  ;;  %v1676_v12 = vmul.f32 0.0078125, %v1674_v10  ;;  %v1867_v9 = vrot.slane %v1858_v7, %v5326_v1  ;;  %v1984_v10 = vpop.f32.mrb[44].mxu0 }
 0x8d0   :  { %v5546_v14 = vsub.f32 %v5538_v61, %v1676_v12  ;;  %v1679_v15 = vmul.f32 %v5543_v11, %v5543_v11  ;;  %v1695_v59 = vmul.f32 %v3622_v56, %v5543_v11  ;;  %v1985_v11 = vadd.f32 %v1984_v10, %v1863_v8  ;;  %v1986_v12 = vpop.f32.mrb[45].mxu0 }
 0x8d2   :  { %1681 = vadd.xlane.f32.xlu0 %v1679_v15  ;;  %v1680_v16 = vmul.f32 %v5546_v14, %v5546_v14  ;;  %v1696_v60 = vmul.f32 %v3622_v56, %v5546_v14  ;;  %v5570_v14 = vadd.f32 %v1986_v12, %v1867_v9  ;;  %v1988_v15 = vpop.f32.mrb[46].mxu0 }
 0x8d3   :  { %v1990_v17 = vpop.f32.mrb[47].mxu0 }
 0x8d4   :  { %v5572_v19 = vadd.f32 %v1990_v17, %v1867_v9  ;;  %v1994_v22 = vpop.f32.mrb[48].mxu0 }
 0x8d5   :  { %v1995_v23 = vadd.f32 %v1994_v22, %v1863_v8  ;;  %v1996_v24 = vpop.f32.mrb[49].mxu0 }
 0x8d6   :  { %1683 = vadd.xlane.f32.xlu0 %v1680_v16  ;;  %v1989_v16 = vadd.f32 %v1988_v15, %v1863_v8  ;;  %v5577_v25 = vadd.f32 %v1996_v24, %v1867_v9  ;;  %v1998_v29 = vpop.f32.mrb[50].mxu0  ;;  %v2127_v34 = vpack.c.bf16 %v5572_v19, %v5570_v14  ;;  %v5586_v18 = vpack.i.bf16 %v5572_v19, %v5570_v14 }
 0x8d7   :  { %v1999_v30 = vadd.f32 %v1998_v29, %v1863_v8  ;;  %v2000_v31 = vpop.f32.mrb[51].mxu0 }
 0x8d8   :  { %v4198_v20 = vpack.i.bf16 %v1989_v16, %v1985_v11  ;;  %v2079_v21 = vpack.c.bf16 %v1989_v16, %v1985_v11  ;;  %v5579_v32 = vadd.f32 %v2000_v31, %v1867_v9 }
 0x8d9   :  { %v4218_v33 = vpack.i.bf16 %v1999_v30, %v1995_v23 }
 0x8da   :  { %v2139_v28 = vsel %vm673_vm5, %v2079_v21, 0  ;;  %v2128_v35 = vpack.c.bf16 %v5579_v32, %v5577_v25  ;;  %v5593_v36 = vpack.i.bf16 %v5579_v32, %v5577_v25  ;;  %v3657_v25 = vld [vmem:[%s5863_s23] ss:$0 sm:$0xff] }
 0x8ec   :  { %4199 = vrot.lane.b32.xlu0 %v4198_v20, %s4892_s27 }
 0x8f0   :  { %4219 = vrot.lane.b32.xlu0 %v4218_v33, %s4870_s5 }
 0x8f4   :  { %4224 = vrot.lane.b32.xlu0 %v4198_v20, %s4893_s2 }
 0x95f   :  { %v1682_v40 = vpop.xlane.xlu0 %1681 }
 0x960   :  { %v1685_v41 = vmul.f32 0.007874016, %v1682_v40 }
 0x962   :  { %4448 = vrsqrt.f32 %v1685_v41  ;;  %vm1699_vm10 = vcmp.eq.f32.partialorder %v1685_v41, inf  ;;  %v1702_v47 = vand.u32 2147483648, %v1685_v41  ;;  %vm1701_vm11 = vcmp.eq.f32.partialorder %v1685_v41, 0.0 }
 0x963   :  { %v1684_v44 = vpop.xlane.xlu0 %1683 }
 0x964   :  { %v1686_v45 = vmul.f32 0.007874016, %v1684_v44  ;;  %v2080_v44 = vpack.c.bf16 %v1999_v30, %v1995_v23 }
 0x966   :  { %4450 = vrsqrt.f32 %v1686_v45  ;;  %vm1706_vm12 = vcmp.eq.f32.partialorder %v1686_v45, inf  ;;  %v1709_v53 = vand.u32 2147483648, %v1686_v45  ;;  %vm1708_vm13 = vcmp.eq.f32.partialorder %v1686_v45, 0.0 }
 0x967   :  { %v4200_v37 = vpop.permute.xlu0 %4199 }
 0x96b   :  { %v4220_v26 = vpop.permute.xlu0 %4219 }
 0x96c   :  { %v4449_v46 = vpop.eup %4448  ;;  %v4222_v38 = vunpack.i.h.bf16 %v4220_v26  ;;  %v4221_v39 = vunpack.i.l.bf16 %v4220_v26 }
 0x96d   :  { %v1698_v42 = vmul.f32 %v4449_v46, %v1685_v41 }
 0x96e   :  { %v2084_v40 = vpack.c.bf16 %v4222_v38, %v4221_v39 }
 0x96f   :  { %v1700_v43 = vsel %vm1699_vm10, %v1685_v41, %v1698_v42  ;;  %v3624_v41 = vld [vmem:[#allocation10] ss:$0 sm:$0xff]  ;;  %v4225_v15 = vpop.permute.xlu0 %4224 }
 0x970   :  { %v4451_v48 = vpop.eup %4450  ;;  %v1703_v49 = vsel %vm1701_vm11, %v1702_v47, %v1700_v43 }
 0x971   :  { %v1711_v50 = vadd.f32 1e-06, %v1703_v49  ;;  %v1705_v51 = vmul.f32 %v4451_v48, %v1686_v45  ;;  %v2185_v48 = vsel %vm673_vm5, %v2080_v44, 0  ;;  %v4202_v49 = vunpack.i.h.bf16 %v4200_v37 }
 0x973   :  { %4452 = vrcp.f32 %v1711_v50  ;;  %v1707_v52 = vsel %vm1706_vm12, %v1686_v45, %v1705_v51  ;;  %v2369_v45 = vsel %vm673_vm5, %v2084_v40, 0 }
 0x974   :  { %v1710_v54 = vsel %vm1708_vm13, %v1709_v53, %v1707_v52  ;;  %4026 = vmatpush3.bf16.xpose.msra.mxu0 %v2369_v45 }
 0x975   :  { %v1712_v55 = vadd.f32 1e-06, %v1710_v54  ;;  %4037 = vmatprep.subr.bf16.mxu0 %v4889_v13  ;;  %v4201_v54 = vunpack.i.l.bf16 %v4200_v37 }
 0x977   :  { %4454 = vrcp.f32 %v1712_v55 }
 0x97d   :  { %v4453_v58 = vpop.eup %4452 }
 0x97e   :  { %v1714_v62 = vmul.f32 %v4453_v58, %v1695_v59  ;;  %v2081_v58 = vpack.c.bf16 %v4202_v49, %v4201_v54 }
 0x980   :  { %v1725_v4 = vadd.f32 %v3623_v0, %v1714_v62 }
 0x981   :  { %v4455_v63 = vpop.eup %4454 }
 0x982   :  { %v1716_v2 = vmul.f32 %v4455_v63, %v1696_v60  ;;  %v2231_v60 = vsel %vm673_vm5, %v2081_v58, 0 }
 0x984   :  { %v1726_v5 = vadd.f32 %v3623_v0, %v1716_v2 }
 0x986   :  { %v1727_v6 = vpack.c.bf16 %v1726_v5, %v1725_v4 }
 0x988   :  { %3992 = vmatmul.mubr.bf16.vlgmr.msra.gmra.mrb[32].mxu1 %v1727_v6 }
 0x989   :  { %3997 = vmatprep.mubr.msk.bf16.mxu1 %vm4891_vm0, %v4889_v13  ;;  %3996 = vmatpush3.bf16.xpose.msra.mxu1 %v2139_v28  ;;  %v4227_v28 = vunpack.i.h.bf16 %v4225_v15 }
 0x98a   :  { %4001 = vmatprep.subr.bf16.mxu1 %v4889_v13 }
 0xa5b   :  { %v1833_v46 = vpop.f32.mrb[32].mxu1 }
 0xa5c   :  { %v1834_v42 = vadd.f32 %v3624_v41, %v1833_v46  ;;  %v3993_v47 = vpop.f32.mrb[33].mxu1 }
 0xa5d   :  { %v1836_v43 = vpop.f32.mrb[34].mxu1 }
 0xa5e   :  { %v2031_v50 = vpack.c.bf16 %v1834_v42, %v1834_v42  ;;  %v1837_v51 = vadd.f32 %v3624_v41, %v1836_v43  ;;  %v3994_v53 = vpop.f32.mrb[35].mxu1  ;;  %v4203_v52 = vpack.i.bf16 %v1995_v23, %v1834_v42  ;;  %v4226_v23 = vunpack.i.l.bf16 %v4225_v15 }
 0xa60   :  { %4204 = vrot.lane.b32.xlu1 %v4203_v52, %s4892_s27  ;;  %3998 = vmatmul.mubr.msk.bf16.vlgmr.msra.gmra.mrb[36].mxu1 %vm673_vm5, %v2031_v50  ;;  %v4238_v55 = vpack.i.bf16 %v1837_v51, %v1834_v42  ;;  %v4208_v56 = vpack.i.bf16 %v1837_v51, %v1999_v30  ;;  %v2032_v59 = vpack.c.bf16 %v1837_v51, %v1837_v51 }
 0xa61   :  { %4002 = vmatpush3.bf16.xpose.msra.mxu1 %v2185_v48  ;;  %4003 = vmatprep.mubr.msk.bf16.mxu1 %vm4891_vm0, %v4889_v13  ;;  %v2085_v26 = vpack.c.bf16 %v4227_v28, %v4226_v23 }
 0xa62   :  { %4239 = vrot.lane.b32.xlu0 %v4238_v55, %s4893_s2  ;;  %4007 = vmatprep.subr.bf16.mxu1 %v4889_v13 }
 0xa63   :  { %v2415_v41 = vsel %vm673_vm5, %v2085_v26, 0  ;;  %v3664_v26 = vld [vmem:[%s5863_s23 + $0x7] ss:$0 sm:$0xff] }
 0xa64   :  { %4209 = vrot.lane.b32.xlu1 %v4208_v56, %s4892_s27  ;;  %v3659_v56 = vld [vmem:[%s5863_s23 + $0x2] ss:$0 sm:$0xff] }
 0xa68   :  { %4214 = vrot.lane.b32.xlu1 %v4198_v20, %s4870_s5  ;;  %4004 = vmatmul.mubr.msk.bf16.vlgmr.msra.gmra.mrb[40].mxu1 %vm673_vm5, %v2032_v59 }
 0xa69   :  { %4008 = vmatpush3.bf16.xpose.msra.mxu1 %v2231_v60  ;;  %4009 = vmatprep.mubr.msk.bf16.mxu1 %vm4891_vm0, %v4889_v13 }
 0xa6a   :  { %4013 = vmatprep.subr.bf16.mxu1 %v4889_v13 }
 0xa6c   :  { %4229 = vrot.lane.b32.xlu1 %v4238_v55, %s4870_s5 }
 0xa70   :  { %4234 = vrot.lane.b32.xlu1 %v4218_v33, %s4893_s2 }
 0xad2   :  { %v4205_v62 = vpop.permute.xlu1 %4204 }
 0xad3   :  { %v4206_v63 = vunpack.i.l.bf16 %v4205_v62  ;;  %v4207_v4 = vunpack.i.h.bf16 %v4205_v62 }
 0xad4   :  { %v4240_v37 = vpop.permute.xlu0 %4239 }
 0xad5   :  { %v2033_v0 = vpack.c.bf16 %v4206_v63, %v4206_v63  ;;  %v4242_v39 = vunpack.i.h.bf16 %v4240_v37  ;;  %v4241_v45 = vunpack.i.l.bf16 %v4240_v37 }
 0xad6   :  { %v4210_v2 = vpop.permute.xlu1 %4209 }
 0xad7   :  { %v4211_v5 = vunpack.i.l.bf16 %v4210_v2  ;;  %4010 = vmatmul.mubr.msk.bf16.vlgmr.msra.gmra.mrb[44].mxu1 %vm673_vm5, %v2033_v0  ;;  %v4212_v11 = vunpack.i.h.bf16 %v4210_v2  ;;  %v2038_v44 = vpack.c.bf16 %v4242_v39, %v4242_v39  ;;  %v2037_v46 = vpack.c.bf16 %v4241_v45, %v4241_v45 }
 0xad8   :  { %4015 = vmatprep.mubr.msk.bf16.mxu1 %vm4891_vm0, %v4889_v13 }
 0xad9   :  { %v2082_v6 = vpack.c.bf16 %v4211_v5, %v4207_v4  ;;  %v2034_v20 = vpack.c.bf16 %v4212_v11, %v4212_v11  ;;  %v3660_v5 = vld [vmem:[%s5863_s23 + $0x3] ss:$0 sm:$0xff] }
 0xada   :  { %v4215_v7 = vpop.permute.xlu1 %4214 }
 0xadb   :  { %v4217_v8 = vunpack.i.h.bf16 %v4215_v7  ;;  %v4216_v9 = vunpack.i.l.bf16 %v4215_v7  ;;  %v2277_v10 = vsel %vm673_vm5, %v2082_v6, 0 }
 0xadc   :  { %4014 = vmatpush3.bf16.xpose.msra.mxu1 %v2277_v10 }
 0xadd   :  { %4019 = vmatprep.subr.bf16.mxu1 %v4889_v13  ;;  %v2083_v16 = vpack.c.bf16 %v4217_v8, %v4216_v9 }
 0xade   :  { %v4230_v12 = vpop.permute.xlu1 %4229 }
 0xadf   :  { %v4232_v17 = vunpack.i.h.bf16 %v4230_v12  ;;  %v2323_v30 = vsel %vm673_vm5, %v2083_v16, 0  ;;  %v4231_v31 = vunpack.i.l.bf16 %v4230_v12  ;;  %v3662_v12 = vld [vmem:[%s5863_s23 + $0x5] ss:$0 sm:$0xff] }
 0xae1   :  { %v2036_v21 = vpack.c.bf16 %v4232_v17, %v4232_v17  ;;  %v2035_v40 = vpack.c.bf16 %v4231_v31, %v4231_v31 }
 0xae2   :  { %v4235_v22 = vpop.permute.xlu1 %4234 }
 0xae3   :  { %v4237_v24 = vunpack.i.h.bf16 %v4235_v22  ;;  %v4236_v29 = vunpack.i.l.bf16 %v4235_v22  ;;  %4016 = vmatmul.mubr.msk.bf16.vlgmr.msra.gmra.mrb[48].mxu1 %vm673_vm5, %v2034_v20  ;;  %4028 = vmatmul.mubr.msk.bf16.vlgmr.msra.gmra.mrb[52].mxu0 %vm673_vm5, %v2036_v21  ;;  %v3661_v22 = vld [vmem:[%s5863_s23 + $0x4] ss:$0 sm:$0xff] }
 0xae4   :  { %4020 = vmatpush3.bf16.xpose.msra.mxu1 %v2323_v30  ;;  %4021 = vmatprep.mubr.msk.bf16.mxu1 %vm4891_vm0, %v4889_v13 }
 0xae5   :  { %v2086_v33 = vpack.c.bf16 %v4237_v24, %v4236_v29  ;;  %4031 = vmatprep.subr.bf16.mxu1 %v4889_v13  ;;  %4039 = vmatprep.mubr.msk.bf16.mxu0 %vm4891_vm0, %v4889_v13 }
 0xae7   :  { %v2461_v38 = vsel %vm673_vm5, %v2086_v33, 0 }
 0xae8   :  { %4038 = vmatpush3.bf16.xpose.msra.mxu0 %v2461_v38 }
 0xae9   :  { %4049 = vmatprep.subr.bf16.mxu0 %v4889_v13 }
 0xaeb   :  { %4022 = vmatmul.mubr.msk.bf16.vlgmr.msra.gmra.mrb[52].mxu1 %vm673_vm5, %v2035_v40 }
 0xaec   :  { %4032 = vmatpush3.bf16.xpose.msra.mxu1 %v2415_v41  ;;  %4033 = vmatprep.mubr.msk.bf16.mxu1 %vm4891_vm0, %v4889_v13 }
 0xaed   :  { %4043 = vmatprep.subr.bf16.mxu1 %v4889_v13 }
 0xaef   :  { %4040 = vmatmul.mubr.msk.bf16.vlgmr.msra.gmra.mrb[56].mxu0 %vm673_vm5, %v2038_v44 }
 0xaf0   :  { %4050 = vmatpush3.bf16.msra.mxu0 %v2128_v35  ;;  %4051 = vmatprep.mubr.msk.bf16.mxu0 %vm4891_vm0, %v4889_v13 }
 0xaf1   :  { %4061 = vmatprep.subr.bf16.mxu0 %v4889_v13 }
 0xaf3   :  { %4034 = vmatmul.mubr.msk.bf16.vlgmr.msra.gmra.mrb[56].mxu1 %vm673_vm5, %v2037_v46 }
 0xaf4   :  { %4044 = vmatpush3.bf16.msra.mxu1 %v2127_v34  ;;  %4045 = vmatprep.mubr.msk.bf16.mxu1 %vm4891_vm0, %v4889_v13  ;;  %v3658_v34 = vld [vmem:[%s5863_s23 + $0x1] ss:$0 sm:$0xff] }
 0xaf5   :  { %4055 = vmatprep.subr.bf16.mxu1 %v4889_v13 }
 0xb33   :  { %v2175_v42 = vpop.f32.mrb[36].mxu1 }
 0xb34   :  { %v2503_v32 = vmul.f32 0.17677669, %v2175_v42  ;;  %v3999_v35 = vpop.f32.mrb[37].mxu1  ;;  %v3663_v42 = vld [vmem:[%s5863_s23 + $0x6] ss:$0 sm:$0xff] }
 0xb35   :  { %v2178_v47 = vpop.f32.mrb[38].mxu1 }
 0xb36   :  { %v4000_v43 = vpop.f32.mrb[39].mxu1  ;;  %v5650_v48 = vadd.f32 %v3657_v25, %v2503_v32 }
 0xb38   :  { %v2568_v14 = vsel %vm2567_vm14, %v5650_v48, -inf }
 0xb39   :  { %2569 = vmax.xlane.f32.xlu1 %v2568_v14 }
 0xb3b   :  { %v2221_v19 = vpop.f32.mrb[40].mxu1 }
 0xb3c   :  { %v2504_v49 = vmul.f32 0.17677669, %v2221_v19  ;;  %v4005_v50 = vpop.f32.mrb[41].mxu1 }
 0xb3d   :  { %v2224_v51 = vpop.f32.mrb[42].mxu1 }
 0xb3e   :  { %v4006_v53 = vpop.f32.mrb[43].mxu1  ;;  %v2560_v52 = vadd.f32 %v3658_v34, %v2504_v49 }
 0xb40   :  { %v2571_v54 = vsel %vm2567_vm14, %v2560_v52, -inf }
 0xb41   :  { %2572 = vmax.xlane.f32.xlu0 %v2571_v54 }
 0xbaa   :  { %v2267_v55 = vpop.f32.mrb[44].mxu1 }
 0xbab   :  { %v2505_v58 = vmul.f32 0.17677669, %v2267_v55  ;;  %v4011_v59 = vpop.f32.mrb[45].mxu1 }
 0xbac   :  { %v2270_v60 = vpop.f32.mrb[46].mxu1 }
 0xbad   :  { %v4012_v62 = vpop.f32.mrb[47].mxu1  ;;  %v5661_v63 = vadd.f32 %v3659_v56, %v2505_v58 }
 0xbaf   :  { %v2574_v0 = vsel %vm2567_vm14, %v5661_v63, -inf }
 0xbb0   :  { %2575 = vmax.xlane.f32.xlu0 %v2574_v0 }
 0xbb6   :  { %v2313_v2 = vpop.f32.mrb[48].mxu1  ;;  %v2405_v4 = vpop.f32.mrb[52].mxu0 }
 0xbb7   :  { %v2506_v6 = vmul.f32 0.17677669, %v2313_v2  ;;  %v2508_v7 = vmul.f32 0.17677669, %v2405_v4  ;;  %v4017_v8 = vpop.f32.mrb[49].mxu1  ;;  %v4029_v9 = vpop.f32.mrb[53].mxu0 }
 0xbb8   :  { %v2316_v10 = vpop.f32.mrb[50].mxu1  ;;  %v2408_v11 = vpop.f32.mrb[54].mxu0 }
 0xbb9   :  { %v4018_v15 = vpop.f32.mrb[51].mxu1  ;;  %v4030_v16 = vpop.f32.mrb[55].mxu0  ;;  %v2562_v17 = vadd.f32 %v3660_v5, %v2506_v6  ;;  %v2564_v21 = vadd.f32 %v3662_v12, %v2508_v7 }
 0xbbb   :  { %v2577_v20 = vsel %vm2567_vm14, %v2562_v17, -inf  ;;  %v2583_v29 = vsel %vm2567_vm14, %v2564_v21, -inf }
 0xbbc   :  { %2578 = vmax.xlane.f32.xlu0 %v2577_v20 }
 0xbbe   :  { %v2359_v28 = vpop.f32.mrb[52].mxu1 }
 0xbbf   :  { %v2507_v23 = vmul.f32 0.17677669, %v2359_v28  ;;  %v4023_v24 = vpop.f32.mrb[53].mxu1 }
 0xbc0   :  { %2584 = vmax.xlane.f32.xlu0 %v2583_v29  ;;  %v2362_v30 = vpop.f32.mrb[54].mxu1 }
 0xbc1   :  { %v4024_v31 = vpop.f32.mrb[55].mxu1  ;;  %v5676_v33 = vadd.f32 %v3661_v22, %v2507_v23 }
 0xbc2   :  { %v2497_v37 = vpop.f32.mrb[56].mxu0 }
 0xbc3   :  { %v2510_v38 = vmul.f32 0.17677669, %v2497_v37  ;;  %v4041_v39 = vpop.f32.mrb[57].mxu0  ;;  %v2580_v40 = vsel %vm2567_vm14, %v5676_v33, -inf }
 0xbc4   :  { %v2500_v41 = vpop.f32.mrb[58].mxu0  ;;  %2581 = vmax.xlane.f32.xlu1 %v2580_v40 }
 0xbc5   :  { %v4042_v44 = vpop.f32.mrb[59].mxu0  ;;  %v5683_v45 = vadd.f32 %v3664_v26, %v2510_v38 }
 0xbc6   :  { %v2451_v46 = vpop.f32.mrb[56].mxu1  ;;  %v2570_v54 = vpop.xlane.xlu1 %2569 }
 0xbc7   :  { %v2509_v25 = vmul.f32 0.17677669, %v2451_v46  ;;  %v4035_v32 = vpop.f32.mrb[57].mxu1  ;;  %v2589_v35 = vsel %vm2567_vm14, %v5683_v45, -inf  ;;  %v2592_v55 = vsub.f32 %v5650_v48, %v2570_v54 }
 0xbc8   :  { %2590 = vmax.xlane.f32.xlu0 %v2589_v35  ;;  %v2454_v47 = vpop.f32.mrb[58].mxu1 }
 0xbc9   :  { %v4036_v43 = vpop.f32.mrb[59].mxu1  ;;  %v2565_v14 = vadd.f32 %v3663_v42, %v2509_v25  ;;  %v2600_v56 = vmul.f32 1.442695, %v2592_v55 }
 0xbcb   :  { %v2586_v19 = vsel %vm2567_vm14, %v2565_v14, -inf }
 0xbcc   :  { %2587 = vmax.xlane.f32.xlu1 %v2586_v19 }
 0xbce   :  { %v2573_v34 = vpop.xlane.xlu0 %2572 }
 0xbcf   :  { %v2593_v49 = vsub.f32 %v2560_v52, %v2573_v34 }
 0xbd1   :  { %v2602_v50 = vmul.f32 1.442695, %v2593_v49 }
 0xbd3   :  { %4456 = vpow2.f32 %v2602_v50 }
 0xbd4   :  { %4458 = vpow2.f32 %v2600_v56 }
 0xbdd   :  { %v4457_v51 = vpop.eup %4456  ;;  %4244 = vrot.lane.b32.xlu1 %v5586_v18, %s4892_s27 }
 0xbde   :  { %v2619_v53 = vsel %vm2567_vm14, %v4457_v51, 0.0  ;;  %v4459_v58 = vpop.eup %4458 }
 0xbdf   :  { %2620 = vadd.xlane.f32.xlu0 %v2619_v53  ;;  %v2616_v59 = vsel %vm2567_vm14, %v4459_v58, 0.0 }
 0xc01   :  { %2617 = vadd.xlane.f32.xlu1 %v2616_v59 }
 0xc3d   :  { %v2576_v60 = vpop.xlane.xlu0 %2575 }
 0xc3e   :  { %v2594_v52 = vsub.f32 %v5661_v63, %v2576_v60 }
 0xc40   :  { %v2604_v62 = vmul.f32 1.442695, %v2594_v52 }
 0xc42   :  { %4460 = vpow2.f32 %v2604_v62 }
 0xc49   :  { %v2579_v0 = vpop.xlane.xlu0 %2578 }
 0xc4a   :  { %v2595_v4 = vsub.f32 %v2562_v17, %v2579_v0 }
 0xc4c   :  { %v5697_v2 = vpop.eup %4460  ;;  %v2606_v7 = vmul.f32 1.442695, %v2595_v4 }
 0xc4d   :  { %v2585_v5 = vpop.xlane.xlu0 %2584  ;;  %v2622_v6 = vsel %vm2567_vm14, %v5697_v2, 0.0 }
 0xc4e   :  { %v2597_v48 = vsub.f32 %v2564_v21, %v2585_v5  ;;  %2623 = vadd.xlane.f32.xlu1 %v2622_v6 }
 0xc50   :  { %v2610_v8 = vmul.f32 1.442695, %v2597_v48 }
 0xc51   :  { %v2582_v16 = vpop.xlane.xlu1 %2581 }
 0xc52   :  { %4462 = vpow2.f32 %v2610_v8  ;;  %v2596_v17 = vsub.f32 %v5676_v33, %v2582_v16 }
 0xc53   :  { %4464 = vpow2.f32 %v2606_v7 }
 0xc54   :  { %v2608_v21 = vmul.f32 1.442695, %v2596_v17 }
 0xc55   :  { %v2591_v12 = vpop.xlane.xlu0 %2590 }
 0xc56   :  { %v2599_v30 = vsub.f32 %v5683_v45, %v2591_v12 }
 0xc58   :  { %v2614_v33 = vmul.f32 1.442695, %v2599_v30 }
 0xc59   :  { %v2588_v20 = vpop.xlane.xlu1 %2587 }
 0xc5a   :  { %v2598_v28 = vsub.f32 %v2565_v14, %v2588_v20 }
 0xc5c   :  { %v5701_v9 = vpop.eup %4462  ;;  %v2612_v24 = vmul.f32 1.442695, %v2598_v28 }
 0xc5d   :  { %v2631_v63 = vsel %vm2567_vm14, %v5701_v9, 0.0  ;;  %v5705_v10 = vpop.eup %4464  ;;  %v4245_v38 = vpop.permute.xlu1 %4244 }
 0xc5e   :  { %2632 = vadd.xlane.f32.xlu0 %v2631_v63  ;;  %v2625_v11 = vsel %vm2567_vm14, %v5705_v10, 0.0  ;;  %v4247_v46 = vunpack.i.h.bf16 %v4245_v38  ;;  %v4246_v42 = vunpack.i.l.bf16 %v4245_v38 }
 0xc5f   :  { %4254 = vrot.lane.b32.xlu1 %v5586_v18, %s4870_s5 }
 0xc60   :  { %v2129_v35 = vpack.c.bf16 %v4247_v46, %v4246_v42 }
 0xc62   :  { %2626 = vadd.xlane.f32.xlu0 %v2625_v11 }
 0xc63   :  { %4259 = vrot.lane.b32.xlu1 %v5593_v36, %s4870_s5 }
 0xc6c   :  { %v2621_v15 = vpop.xlane.xlu0 %2620 }
 0xc6d   :  { %4466 = vrcp.f32 %v2621_v15 }
 0xc6e   :  { %4468 = vpow2.f32 %v2608_v21 }
 0xc6f   :  { %4470 = vpow2.f32 %v2612_v24 }
 0xc70   :  { %4472 = vpow2.f32 %v2614_v33 }
 0xc77   :  { %v4467_v22 = vpop.eup %4466 }
 0xc78   :  { %v2649_v23 = vmul.f32 %v4467_v22, %v4457_v51  ;;  %4249 = vrot.lane.b32.xlu0 %v5593_v36, %s4892_s27  ;;  %v5720_v31 = vpop.eup %4468 }
 0xc79   :  { %v2628_v37 = vsel %vm2567_vm14, %v5720_v31, 0.0  ;;  %v5724_v26 = vpop.eup %4470 }
 0xc7a   :  { %v2657_v29 = vpack.c.bf16 %v2649_v23, %v2649_v23  ;;  %v2634_v39 = vsel %vm2567_vm14, %v5724_v26, 0.0  ;;  %v5728_v41 = vpop.eup %4472 }
 0xc7b   :  { %v2637_v44 = vsel %vm2567_vm14, %v5728_v41, 0.0 }
 0xc7c   :  { %4052 = vmatmul.mubr.msk.bf16.vlgmr.msra.gmra.mrb[60].mxu0 %vm2567_vm14, %v2657_v29 }
 0xc7d   :  { %4063 = vmatprep.mubr.msk.bf16.mxu0 %vm4891_vm0, %v4889_v13 }
 0xc87   :  { %2629 = vadd.xlane.f32.xlu1 %v2628_v37 }
 0xc8b   :  { %2635 = vadd.xlane.f32.xlu1 %v2634_v39 }
 0xc8e   :  { %v2618_v40 = vpop.xlane.xlu1 %2617 }
 0xc8f   :  { %4474 = vrcp.f32 %v2618_v40 }
 0xc97   :  { %2638 = vadd.xlane.f32.xlu0 %v2637_v44 }
 0xc99   :  { %v4475_v45 = vpop.eup %4474 }
 0xc9a   :  { %v2648_v25 = vmul.f32 %v4475_v45, %v4459_v58 }
 0xc9c   :  { %4264 = vrot.lane.b32.xlu1 %v5586_v18, %s4893_s2  ;;  %v2656_v32 = vpack.c.bf16 %v2648_v25, %v2648_v25 }
 0xc9e   :  { %4046 = vmatmul.mubr.msk.bf16.vlgmr.msra.gmra.mrb[60].mxu1 %vm2567_vm14, %v2656_v32 }
 0xc9f   :  { %4056 = vmatpush3.bf16.msra.mxu1 %v2129_v35  ;;  %4057 = vmatprep.mubr.msk.bf16.mxu1 %vm4891_vm0, %v4889_v13  ;;  %v4361_v35 = vld [vmem:[#allocation14 + $0x8] sm:$0xff]  }
 0xca0   :  { %4067 = vmatprep.subr.bf16.mxu1 %v4889_v13 }
 0xcad   :  { %4269 = vrot.lane.b32.xlu0 %v5593_v36, %s4893_s2 }
 0xcdb   :  { %v2624_v47 = vpop.xlane.xlu1 %2623 }
 0xcdc   :  { %4476 = vrcp.f32 %v2624_v47 }
 0xcdf   :  { %v4255_v43 = vpop.permute.xlu1 %4254 }
 0xce0   :  { %v4257_v19 = vunpack.i.h.bf16 %v4255_v43  ;;  %v4256_v34 = vunpack.i.l.bf16 %v4255_v43 }
 0xce2   :  { %v2131_v50 = vpack.c.bf16 %v4257_v19, %v4256_v34 }
 0xce3   :  { %v4260_v58 = vpop.permute.xlu1 %4259 }
 0xce4   :  { %v4262_v60 = vunpack.i.h.bf16 %v4260_v58  ;;  %v4261_v52 = vunpack.i.l.bf16 %v4260_v58 }
 0xce6   :  { %v4477_v14 = vpop.eup %4476  ;;  %v2132_v4 = vpack.c.bf16 %v4262_v60, %v4261_v52  ;;  %v4366_v60 = vld [vmem:[#allocation14 + $0x30] sm:$0xff]  }
 0xce7   :  { %v2650_v18 = vmul.f32 %v4477_v14, %v5697_v2 }
 0xce9   :  { %v2658_v49 = vpack.c.bf16 %v2650_v18, %v2650_v18 }
 0xceb   :  { %v2633_v51 = vpop.xlane.xlu0 %2632  ;;  %4058 = vmatmul.mubr.msk.bf16.vlgmr.msra.gmra.mrb[64].mxu1 %vm2567_vm14, %v2658_v49 }
 0xcec   :  { %4068 = vmatpush3.bf16.msra.mxu1 %v2131_v50  ;;  %4069 = vmatprep.mubr.msk.bf16.mxu1 %vm4891_vm0, %v4889_v13 }
 0xced   :  { %4079 = vmatprep.subr.bf16.mxu1 %v4889_v13 }
 0xcef   :  { %v2627_v36 = vpop.xlane.xlu0 %2626 }
 0xcf0   :  { %4478 = vrcp.f32 %v2627_v36  ;;  %v4363_v36 = vld [vmem:[#allocation14 + $0x18] sm:$0xff]  }
 0xcf1   :  { %4480 = vrcp.f32 %v2633_v51 }
 0xcf3   :  { %v4250_v53 = vpop.permute.xlu0 %4249 }
 0xcf4   :  { %v4252_v54 = vunpack.i.h.bf16 %v4250_v53  ;;  %v4251_v55 = vunpack.i.l.bf16 %v4250_v53  ;;  %v4364_v53 = vld [vmem:[#allocation14 + $0x20] sm:$0xff]  }
 0xcf6   :  { %v2130_v56 = vpack.c.bf16 %v4252_v54, %v4251_v55  ;;  %v4365_v54 = vld [vmem:[#allocation14 + $0x28] sm:$0xff]  }
 0xcf8   :  { %4062 = vmatpush3.bf16.msra.mxu0 %v2130_v56 }
 0xcf9   :  { %4073 = vmatprep.subr.bf16.mxu0 %v4889_v13 }
 0xcfa   :  { %v4479_v59 = vpop.eup %4478 }
 0xcfb   :  { %v2651_v62 = vmul.f32 %v4479_v59, %v5705_v10  ;;  %v4481_v2 = vpop.eup %4480 }
 0xcfc   :  { %v2653_v5 = vmul.f32 %v4481_v2, %v5701_v9  ;;  %v4367_v2 = vld [vmem:[#allocation14 + $0x38] sm:$0xff]  }
 0xcfd   :  { %v2659_v0 = vpack.c.bf16 %v2651_v62, %v2651_v62 }
 0xcfe   :  { %v2661_v6 = vpack.c.bf16 %v2653_v5, %v2653_v5 }
 0xcff   :  { %4064 = vmatmul.mubr.msk.bf16.vlgmr.msra.gmra.mrb[64].mxu0 %vm2567_vm14, %v2659_v0 }
 0xd00   :  { %4074 = vmatpush3.bf16.msra.mxu0 %v2132_v4  ;;  %4075 = vmatprep.mubr.msk.bf16.mxu0 %vm4891_vm0, %v4889_v13 }
 0xd01   :  { %4085 = vmatprep.subr.bf16.mxu0 %v4889_v13 }
 0xd07   :  { %4076 = vmatmul.mubr.msk.bf16.vlgmr.msra.gmra.mrb[68].mxu0 %vm2567_vm14, %v2661_v6 }
 0xd08   :  { %4087 = vmatprep.mubr.msk.bf16.mxu0 %vm4891_vm0, %v4889_v13 }
 0xd14   :  { %v2630_v48 = vpop.xlane.xlu1 %2629 }
 0xd15   :  { %4482 = vrcp.f32 %v2630_v48 }
 0xd18   :  { %v2636_v7 = vpop.xlane.xlu1 %2635 }
 0xd19   :  { %4484 = vrcp.f32 %v2636_v7 }
 0xd1c   :  { %v4265_v8 = vpop.permute.xlu1 %4264 }
 0xd1d   :  { %v4267_v10 = vunpack.i.h.bf16 %v4265_v8  ;;  %v4266_v11 = vunpack.i.l.bf16 %v4265_v8 }
 0xd1f   :  { %v4483_v63 = vpop.eup %4482  ;;  %v2133_v16 = vpack.c.bf16 %v4267_v10, %v4266_v11 }
 0xd20   :  { %v2652_v12 = vmul.f32 %v4483_v63, %v5720_v31 }
 0xd22   :  { %v2660_v15 = vpack.c.bf16 %v2652_v12, %v2652_v12 }
 0xd23   :  { %v4485_v9 = vpop.eup %4484 }
 0xd24   :  { %v2639_v17 = vpop.xlane.xlu0 %2638  ;;  %4070 = vmatmul.mubr.msk.bf16.vlgmr.msra.gmra.mrb[68].mxu1 %vm2567_vm14, %v2660_v15  ;;  %v2654_v20 = vmul.f32 %v4485_v9, %v5724_v26 }
 0xd25   :  { %4486 = vrcp.f32 %v2639_v17  ;;  %4080 = vmatpush3.bf16.msra.mxu1 %v2133_v16  ;;  %4081 = vmatprep.mubr.msk.bf16.mxu1 %vm4891_vm0, %v4889_v13 }
 0xd26   :  { %4091 = vmatprep.subr.bf16.mxu1 %v4889_v13  ;;  %v2662_v23 = vpack.c.bf16 %v2654_v20, %v2654_v20 }
 0xd28   :  { %v4270_v21 = vpop.permute.xlu0 %4269 }
 0xd29   :  { %v4272_v28 = vunpack.i.h.bf16 %v4270_v21  ;;  %v4271_v22 = vunpack.i.l.bf16 %v4270_v21 }
 0xd2b   :  { %v2134_v24 = vpack.c.bf16 %v4272_v28, %v4271_v22 }
 0xd2c   :  { %4082 = vmatmul.mubr.msk.bf16.vlgmr.msra.gmra.mrb[72].mxu1 %vm2567_vm14, %v2662_v23 }
 0xd2d   :  { %4086 = vmatpush3.bf16.msra.mxu0 %v2134_v24  ;;  %4107 = vmatprep.mubr.msk.bf16.mxu1 %vm4891_vm0, %v4889_v13 }
 0xd2f   :  { %v4487_v29 = vpop.eup %4486 }
 0xd30   :  { %v2655_v30 = vmul.f32 %v4487_v29, %v5728_v41  ;;  %v4360_v41 = vld [vmem:[#allocation14] sm:$0xff]  }
 0xd31   :  { %4092 = vmatpush3.bf16.msra.mxu1 %v4360_v41 }
 0xd32   :  { %v2663_v31 = vpack.c.bf16 %v2655_v30, %v2655_v30  ;;  %4093 = vmatprep.subr.bf16.mxu1 %v4889_v13 }
 0xd34   :  { %4088 = vmatmul.mubr.msk.bf16.vlgmr.msra.gmra.mrb[72].mxu0 %vm2567_vm14, %v2663_v31  ;;  %v3673_v31 = vld [vmem:[#allocation16] ss:$0 sm:$0xff] }
 0xd35   :  { %3350 = vmatprep.mubr.bf16.mxu0 %v4890_v27  ;;  %4094 = vmatpush3.bf16.msra.mxu1 %v4361_v35  ;;  %v4362_v27 = vld [vmem:[#allocation14 + $0x10] sm:$0xff]  }
 0xd36   :  { %4095 = vmatprep.subr.bf16.mxu1 %v4889_v13 }
 0xd39   :  { %4096 = vmatpush3.bf16.msra.mxu1 %v4362_v27  ;;  %v4370_v27 = vld [vmem:[#allocation17 + $0x4] ss:$8 sps:$4 sm:$0xff]  }
 0xd3a   :  { %4097 = vmatprep.subr.bf16.mxu1 %v4889_v13  ;;  %3318 = vmatprep.subr.bf16.mxu0 %v4370_v27  ;;  %v4407_v27 = vld [vmem:[#allocation20 + $0x38] sm:$0xff]  }
 0xd3d   :  { %4098 = vmatpush3.bf16.msra.mxu1 %v4363_v36  ;;  %v4385_v36 = vld [vmem:[#allocation17 + $0x54] ss:$8 sps:$4 sm:$0xff]  }
 0xd3e   :  { %4099 = vmatprep.subr.bf16.mxu1 %v4889_v13 }
 0xd41   :  { %4100 = vmatpush3.bf16.msra.mxu1 %v4364_v53  ;;  %v4383_v53 = vld [vmem:[#allocation17 + $0x50] ss:$8 sps:$4 sm:$0xff]  }
 0xd42   :  { %4101 = vmatprep.subr.bf16.mxu1 %v4889_v13 }
 0xd45   :  { %4102 = vmatpush3.bf16.msra.mxu1 %v4365_v54  ;;  %v4388_v54 = vld [vmem:[#allocation17 + $0x64] ss:$8 sps:$4 sm:$0xff]  }
 0xd46   :  { %4103 = vmatprep.subr.bf16.mxu1 %v4889_v13 }
 0xd49   :  { %4104 = vmatpush3.bf16.msra.mxu1 %v4366_v60  ;;  %v4393_v60 = vld [vmem:[#allocation20] sm:$0xff]  }
 0xd4a   :  { %4105 = vmatprep.subr.bf16.mxu1 %v4889_v13 }
 0xd4d   :  { %4106 = vmatpush3.bf16.msra.mxu1 %v4367_v2  ;;  %v4397_v2 = vld [vmem:[#allocation20 + $0x10] sm:$0xff]  }
 0xd4f   :  { %v5767_v33 = vpop.f32.mrb[60].mxu0 }
 0xd50   :  { %v4053_v37 = vpop.f32.mrb[61].mxu0 }
 0xd51   :  { %v2747_v26 = vpop.f32.mrb[62].mxu0 }
 0xd52   :  { %v4054_v38 = vpop.f32.mrb[63].mxu0 }
 0xd71   :  { %v5769_v39 = vpop.f32.mrb[60].mxu1 }
 0xd72   :  { %v4047_v40 = vpop.f32.mrb[61].mxu1 }
 0xd73   :  { %v2704_v44 = vpop.f32.mrb[62].mxu1 }
 0xd74   :  { %v4048_v45 = vpop.f32.mrb[63].mxu1 }
 0xdbe   :  { %v2787_v46 = vpop.f32.mrb[64].mxu1 }
 0xdbf   :  { %v4059_v42 = vpop.f32.mrb[65].mxu1 }
 0xdc0   :  { %v2790_v25 = vpop.f32.mrb[66].mxu1 }
 0xdc1   :  { %v4060_v32 = vpop.f32.mrb[67].mxu1 }
 0xdd2   :  { %v2830_v47 = vpop.f32.mrb[64].mxu0 }
 0xdd3   :  { %v4273_v43 = vpack.i.bf16 %v2830_v47, %v2787_v46  ;;  %v4065_v14 = vpop.f32.mrb[65].mxu0  ;;  %v4368_v47 = vld [vmem:[#allocation17] ss:$8 sps:$4 sm:$0xff]  }
 0xdd4   :  { %v2833_v19 = vpop.f32.mrb[66].mxu0  ;;  %3319 = vmatpush1.bf16.msra.mxu0 %v4368_v47  ;;  %v4371_v14 = vld [vmem:[#allocation17 + $0x10] ss:$8 sps:$4 sm:$0xff]  }
 0xdd5   :  { %v4066_v34 = vpop.f32.mrb[67].mxu0  ;;  %4274 = vrot.lane.b32.xlu1 %v4273_v43, %s4893_s2  ;;  %v4373_v43 = vld [vmem:[#allocation17 + $0x14] ss:$8 sps:$4 sm:$0xff]   ;;  %v4376_v19 = vld [vmem:[#allocation17 + $0x24] ss:$8 sps:$4 sm:$0xff]  }
 0xdd6   :  { %3320 = vmatprep.subr.bf16.mxu0 %v4373_v43  ;;  %v4374_v34 = vld [vmem:[#allocation17 + $0x20] ss:$8 sps:$4 sm:$0xff]  }
 0xdd8   :  { %3321 = vmatpush1.bf16.msra.mxu0 %v4371_v14 }
 0xdd9   :  { %3322 = vmatprep.subr.bf16.mxu0 %v4376_v19 }
 0xdda   :  { %v2916_v18 = vpop.f32.mrb[68].mxu0 }
 0xddb   :  { %v4077_v49 = vpop.f32.mrb[69].mxu0 }
 0xddc   :  { %v2919_v50 = vpop.f32.mrb[70].mxu0  ;;  %3323 = vmatpush1.bf16.msra.mxu0 %v4374_v34  ;;  %v4377_v49 = vld [vmem:[#allocation17 + $0x30] ss:$8 sps:$4 sm:$0xff]  }
 0xddd   :  { %v4078_v51 = vpop.f32.mrb[71].mxu0  ;;  %v4382_v50 = vld [vmem:[#allocation17 + $0x44] ss:$8 sps:$4 sm:$0xff]  }
 0xdde   :  { %v4380_v51 = vld [vmem:[#allocation17 + $0x40] ss:$8 sps:$4 sm:$0xff]  }
 0xdf7   :  { %v2873_v55 = vpop.f32.mrb[68].mxu1 }
 0xdf8   :  { %v4278_v56 = vpack.i.bf16 %v2916_v18, %v2873_v55  ;;  %v4071_v58 = vpop.f32.mrb[69].mxu1  ;;  %v4379_v18 = vld [vmem:[#allocation17 + $0x34] ss:$8 sps:$4 sm:$0xff]   ;;  %v4386_v55 = vld [vmem:[#allocation17 + $0x60] ss:$8 sps:$4 sm:$0xff]  }
 0xdf9   :  { %v2876_v59 = vpop.f32.mrb[70].mxu1  ;;  %3324 = vmatprep.subr.bf16.mxu0 %v4379_v18  ;;  %v4389_v58 = vld [vmem:[#allocation17 + $0x70] ss:$8 sps:$4 sm:$0xff]  }
 0xdfa   :  { %4279 = vrot.lane.b32.xlu0 %v4278_v56, %s4870_s5  ;;  %v4072_v52 = vpop.f32.mrb[71].mxu1  ;;  %3325 = vmatpush1.bf16.msra.mxu0 %v4377_v49  ;;  %v4391_v56 = vld [vmem:[#allocation17 + $0x74] ss:$8 sps:$4 sm:$0xff]   ;;  %v4392_v59 = vld [vmem:[#allocation20 + $0x40] sm:$0xff]   ;;  %s4894_s5 = smov [#allocation26]  }
 0xdfb   :  { %3326 = vmatprep.subr.bf16.mxu0 %v4382_v50  ;;  %v4394_v52 = vld [vmem:[#allocation20 + $0x48] sm:$0xff]   ;;  %3817 = vmatprep.subr.bf16.mxu1 %v4392_v59 }
 0xdfe   :  { %3327 = vmatpush1.bf16.msra.mxu0 %v4380_v51 }
 0xdff   :  { %v2959_v62 = vpop.f32.mrb[72].mxu1  ;;  %3328 = vmatprep.subr.bf16.mxu0 %v4385_v36 }
 0xe00   :  { %v4083_v0 = vpop.f32.mrb[73].mxu1 }
 0xe01   :  { %v2962_v4 = vpop.f32.mrb[74].mxu1  ;;  %v4396_v0 = vld [vmem:[#allocation20 + $0x50] sm:$0xff]  }
 0xe02   :  { %v4084_v5 = vpop.f32.mrb[75].mxu1  ;;  %3329 = vmatpush1.bf16.msra.mxu0 %v4383_v53  ;;  %v4398_v4 = vld [vmem:[#allocation20 + $0x58] sm:$0xff]  }
 0xe03   :  { %3330 = vmatprep.subr.bf16.mxu0 %v4388_v54  ;;  %v4399_v5 = vld [vmem:[#allocation20 + $0x18] sm:$0xff]  }
 0xe06   :  { %3331 = vmatpush1.bf16.msra.mxu0 %v4386_v55 }
 0xe07   :  { %v3002_v6 = vpop.f32.mrb[72].mxu0  ;;  %3332 = vmatprep.subr.bf16.mxu0 %v4391_v56 }
 0xe08   :  { %v4283_v48 = vpack.i.bf16 %v3002_v6, %v2959_v62  ;;  %v4089_v7 = vpop.f32.mrb[73].mxu0  ;;  %v4395_v62 = vld [vmem:[#allocation20 + $0x8] sm:$0xff]   ;;  %v4400_v6 = vld [vmem:[#allocation20 + $0x60] sm:$0xff]  }
 0xe09   :  { %v3005_v8 = vpop.f32.mrb[74].mxu0  ;;  %v4402_v7 = vld [vmem:[#allocation20 + $0x68] sm:$0xff]  }
 0xe0a   :  { %v4090_v63 = vpop.f32.mrb[75].mxu0  ;;  %4284 = vrot.lane.b32.xlu1 %v4283_v48, %s4892_s27  ;;  %3333 = vmatpush1.bf16.msra.mxu0 %v4389_v58  ;;  %v4401_v48 = vld [vmem:[#allocation20 + $0x20] sm:$0xff]   ;;  %s3552_s27 = sshll.u32 %s4894_s5, 4  ;;  %s3553_s27 = int_to_ptr.vmem [resolvable:$true] %s3552_s27 }
 0xe0b   :  { %s4828_s2 = scalar_lea.vmem %s3553_s27, 256  ;;  %p4833_p9 = scmp.lt.s32.totalorder %s3553_s27, %s3553_s27 }
 0xe0c   :  { %p4829_p8 = scmp.ne.s32.totalorder %s3553_s27, %s4828_s2  ;;  %p4834_p10 = scmp.lt.s32.totalorder %s4828_s2, %s4828_s2 }
 0xe0e   :  { %p4835_p11 = por %p4834_p10, %p4833_p9 }
 0xe10   :  { %p4836_p12 = pnand %p4835_p11, %p4829_p8 }
 0xe47   :  { %v4275_v10 = vpop.permute.xlu1 %4274 }
 0xe48   :  { %v4277_v12 = vunpack.i.h.bf16 %v4275_v10  ;;  %v4276_v15 = vunpack.i.l.bf16 %v4275_v10 }
 0xe4a   :  { %v3033_v17 = vsel %vm673_vm5, %v5767_v33, %v4277_v12  ;;  %v3032_v20 = vsel %vm673_vm5, %v5769_v39, %v4276_v15 }
 0xe6c   :  { %v4280_v11 = vpop.permute.xlu0 %4279 }
 0xe6d   :  { %v4282_v9 = vunpack.i.h.bf16 %v4280_v11  ;;  %v4281_v16 = vunpack.i.l.bf16 %v4280_v11 }
 0xe6f   :  { %v3035_v22 = vsel %vm1550_vm8, %v3033_v17, %v4282_v9  ;;  %v3034_v23 = vsel %vm1550_vm8, %v3032_v20, %v4281_v16 }
 0xe7c   :  { %v4285_v13 = vpop.permute.xlu1 %4284 }
 0xe7d   :  { %v4287_v21 = vunpack.i.h.bf16 %v4285_v13  ;;  %v4286_v28 = vunpack.i.l.bf16 %v4285_v13 }
 0xe7f   :  { %v3037_v24 = vsel %vm1553_vm9, %v3035_v22, %v4287_v21  ;;  %v3036_v29 = vsel %vm1553_vm9, %v3034_v23, %v4286_v28 }
 0xe80   :  { %v3038_v30 = vpack.c.bf16 %v3037_v24, %v3036_v29  ;;  %v3682_v29 = vld [vmem:[#allocation23 + $0x2] ss:$0 sm:$0xff] }
 0xe82   :  { %4108 = vmatmul.mubr.bf16.vlgmr.msra.gmra.mrb[76].mxu1 %v3038_v30 }
 0xe83   :  { %3818 = vmatpush3.bf16.msra.mxu1 %v4393_v60 }
 0xe84   :  { %3819 = vmatprep.subr.bf16.mxu1 %v4394_v52 }
 0xe87   :  { %3820 = vmatpush3.bf16.msra.mxu1 %v4395_v62 }
 0xe88   :  { %3821 = vmatprep.subr.bf16.mxu1 %v4396_v0 }
 0xe8b   :  { %3822 = vmatpush3.bf16.msra.mxu1 %v4397_v2 }
 0xe8c   :  { %3823 = vmatprep.subr.bf16.mxu1 %v4398_v4 }
 0xe8f   :  { %3824 = vmatpush3.bf16.msra.mxu1 %v4399_v5 }
 0xe90   :  { %3825 = vmatprep.subr.bf16.mxu1 %v4400_v6 }
 0xe93   :  { %3826 = vmatpush3.bf16.msra.mxu1 %v4401_v48 }
 0xe94   :  { %3827 = vmatprep.subr.bf16.mxu1 %v4402_v7 }
 0xf55   :  { %v3144_v37 = vpop.f32.mrb[76].mxu1 }
 0xf56   :  { %v3145_v26 = vadd.f32 %v3673_v31, %v3144_v37  ;;  %v4109_v38 = vpop.f32.mrb[77].mxu1 }
 0xf57   :  { %v3147_v33 = vpop.f32.mrb[78].mxu1 }
 0xf58   :  { %v5790_v40 = vadd.f32 %v3145_v26, %v5533_v57  ;;  %v3148_v39 = vadd.f32 %v3673_v31, %v3147_v33  ;;  %v4110_v44 = vpop.f32.mrb[79].mxu1  ;;  %v3683_v33 = vld [vmem:[#allocation25 + $0x2] ss:$0 sm:$0xff] }
 0xf5a   :  { %v5793_v45 = vadd.f32 %v3148_v39, %v5538_v61  ;;  %3153 = vadd.xlane.f32.xlu0 %v5790_v40 }
 0xf5c   :  { %3155 = vadd.xlane.f32.xlu1 %v5793_v45 }
 0xfe7   :  { %v3154_v46 = vpop.xlane.xlu0 %3153 }
 0xfe8   :  { %v3157_v42 = vmul.f32 0.0078125, %v3154_v46 }
 0xfe9   :  { %v3156_v25 = vpop.xlane.xlu1 %3155 }
 0xfea   :  { %v5798_v32 = vsub.f32 %v5790_v40, %v3157_v42  ;;  %v3158_v41 = vmul.f32 0.0078125, %v3156_v25  ;;  %v4403_v25 = vld [vmem:[#allocation20 + $0x28] sm:$0xff]  }
 0xfeb   :  { %3828 = vmatpush3.bf16.msra.mxu1 %v4403_v25 }
 0xfec   :  { %v5801_v35 = vsub.f32 %v5793_v45, %v3158_v41  ;;  %v3161_v57 = vmul.f32 %v5798_v32, %v5798_v32  ;;  %v3177_v31 = vmul.f32 %v3682_v29, %v5798_v32  ;;  %v4404_v41 = vld [vmem:[#allocation20 + $0x70] sm:$0xff]   ;;  %v3226_v32 = vld [vmem:[#allocation19] sm:$0x3] }
 0xfed   :  { %3829 = vmatprep.subr.bf16.mxu1 %v4404_v41  ;;  %v3235_v47 = vrot.slane %v3226_v32, %v5326_v1 }
 0xfee   :  { %3163 = vadd.xlane.f32.xlu0 %v3161_v57  ;;  %v3162_v61 = vmul.f32 %v5801_v35, %v5801_v35  ;;  %v3178_v37 = vmul.f32 %v3682_v29, %v5801_v35  ;;  %v4405_v57 = vld [vmem:[#allocation20 + $0x30] sm:$0xff]   ;;  %v3231_v35 = vrot.slane %v3226_v32, %v5328_v3  ;;  %v3700_v3 = vld [vmem:[#allocation22] ss:$0 sm:$0xff] }
 0xfef   :  { %3830 = vmatpush3.bf16.msra.mxu1 %v4405_v57 }
 0xff2   :  { %3165 = vadd.xlane.f32.xlu0 %v3162_v61  ;;  %v4406_v61 = vld [vmem:[#allocation20 + $0x78] sm:$0xff]  }
 0xff3   :  { %3831 = vmatprep.subr.bf16.mxu1 %v4406_v61 }
 0xff4   :  { %3832 = vmatpush3.bf16.msra.mxu1 %v4407_v27 }
0x107b   :  { %v3164_v8 = vpop.xlane.xlu0 %3163 }
0x107c   :  { %v3167_v63 = vmul.f32 0.007874016, %v3164_v8 }
0x107e   :  { %4488 = vrsqrt.f32 %v3167_v63  ;;  %vm3181_vm15 = vcmp.eq.f32.partialorder %v3167_v63, inf  ;;  %v3184_v9 = vand.u32 2147483648, %v3167_v63  ;;  %vm3183_vm0 = vcmp.eq.f32.partialorder %v3167_v63, 0.0 }
0x107f   :  { %v3166_v10 = vpop.xlane.xlu0 %3165 }
0x1080   :  { %v3168_v11 = vmul.f32 0.007874016, %v3166_v10 }
0x1082   :  { %4490 = vrsqrt.f32 %v3168_v11  ;;  %vm3188_vm1 = vcmp.eq.f32.partialorder %v3168_v11, inf  ;;  %v3191_v28 = vand.u32 2147483648, %v3168_v11  ;;  %vm3190_vm2 = vcmp.eq.f32.partialorder %v3168_v11, 0.0 }
0x1088   :  { %v4489_v12 = vpop.eup %4488 }
0x1089   :  { %v3180_v15 = vmul.f32 %v4489_v12, %v3167_v63 }
0x108b   :  { %v3182_v16 = vsel %vm3181_vm15, %v3167_v63, %v3180_v15 }
0x108c   :  { %v4491_v13 = vpop.eup %4490  ;;  %v3185_v17 = vsel %vm3183_vm0, %v3184_v9, %v3182_v16 }
0x108d   :  { %v3193_v20 = vadd.f32 1e-06, %v3185_v17  ;;  %v3187_v21 = vmul.f32 %v4491_v13, %v3168_v11 }
0x108f   :  { %4492 = vrcp.f32 %v3193_v20  ;;  %v3189_v22 = vsel %vm3188_vm1, %v3168_v11, %v3187_v21 }
0x1090   :  { %v3192_v23 = vsel %vm3190_vm2, %v3191_v28, %v3189_v22 }
0x1091   :  { %v3194_v24 = vadd.f32 1e-06, %v3192_v23 }
0x1093   :  { %4494 = vrcp.f32 %v3194_v24 }
0x1099   :  { %v4493_v30 = vpop.eup %4492 }
0x109a   :  { %v3196_v26 = vmul.f32 %v4493_v30, %v3177_v31 }
0x109c   :  { %v3207_v44 = vadd.f32 %v3683_v33, %v3196_v26 }
0x109d   :  { %v4495_v38 = vpop.eup %4494 }
0x109e   :  { %v3198_v39 = vmul.f32 %v4495_v38, %v3178_v37 }
0x10a0   :  { %v3208_v46 = vadd.f32 %v3683_v33, %v3198_v39 }
0x10a2   :  { %v3209_v42 = vpack.c.bf16 %v3208_v46, %v3207_v44 }
0x10a4   :  { %3351 = vmatmul.mubr.bf16.vlgmr.msra.gmra.mrb[76].mxu0 %v3209_v42 }
0x1177   :  { %v3352_v43 = vpop.f32.mrb[76].mxu0 }
0x1178   :  { %v3353_v14 = vadd.f32 %v3352_v43, %v3231_v35  ;;  %v3354_v19 = vpop.f32.mrb[77].mxu0 }
0x1179   :  { %v3355_v34 = vadd.f32 %v3354_v19, %v3235_v47  ;;  %v3356_v18 = vpop.f32.mrb[78].mxu0 }
0x117a   :  { %v3357_v49 = vadd.f32 %v3356_v18, %v3231_v35  ;;  %v3358_v50 = vpop.f32.mrb[79].mxu0  ;;  %v3361_v36 = vmax.f32 %v3353_v14, 0.0 }
0x117b   :  { %v3359_v51 = vadd.f32 %v3358_v50, %v3235_v47  ;;  %v3362_v54 = vmax.f32 %v3355_v34, 0.0 }
0x117c   :  { %v3363_v53 = vmax.f32 %v3357_v49, 0.0 }
0x117d   :  { %v3364_v55 = vmax.f32 %v3359_v51, 0.0 }
0x117e   :  { %v3365_v56 = vpack.c.bf16 %v3363_v53, %v3361_v36 }
0x117f   :  { %v3366_v58 = vpack.c.bf16 %v3364_v55, %v3362_v54 }
0x1181   :  { %3534 = vmatprep.mubr.bf16.mxu1 %v3366_v58 }
0x1182   :  { %3535 = vmatmul.mubr.bf16.vlgmr.msra.gmra.mrb[80].mxu1 %v3365_v56 }
0x1255   :  { %v3833_v59 = vpop.f32.mrb[80].mxu1 }
0x1256   :  { %v3834_v60 = vpop.f32.mrb[81].mxu1 }
0x1257   :  { %v3835_v1 = vadd.f32 %v3834_v60, %v3833_v59  ;;  %v3836_v52 = vpop.f32.mrb[82].mxu1 }
0x1258   :  { %v3837_v62 = vpop.f32.mrb[83].mxu1 }
0x1259   :  { %v3537_v0 = vadd.f32 %v3835_v1, %v3700_v3  ;;  %v3838_v2 = vadd.f32 %v3837_v62, %v3836_v52 }
0x125b   :  { %v3543_v4 = vadd.f32 %v3537_v0, %v5790_v40  ;;  %v3540_v5 = vadd.f32 %v3838_v2, %v3700_v3 }
0x125d   :  { %3545 = vst [vmem:[#allocation26] sm:$0xff] %v3543_v4  ;;  %v3544_v6 = vadd.f32 %v3540_v5, %v5793_v45 }
0x125f   :  { %3546 = vst [vmem:[#allocation26 + $0x8] sm:$0xff] %v3544_v6 }
0x1260   :  { %4839 = shalt.err (!%p4836_p12)
}
0x1261   :  { %s4840_s17 = scalar_lea.hbm %s5848_s20, 256 }
0x1262   :  { %p4841_p13 = scmp.ne.s32.totalorder %s5848_s20, %s4840_s17  ;;  %p4844_p0 = scmp.lt.u32.totalorder %s4840_s17, %s5848_s20 }
0x1264   :  { %p4846_p1 = pnand %p4844_p0, %p4841_p13 }
0x1266   :  { %4849 = shalt.err (!%p4846_p1)
}
0x1267   :  { %3558 = dma.vmem_to_hbm [thread:$0]  %s3553_s27, 256, %s5848_s20, [#allocation4], %s4874_s21, %s4874_s21, %s4875_s28  }
0x1268   :  { %4866 = dma.done.wait [#allocation4], 256  }
0x1269   :  { %4867 = vsyncadd [#allocation4], 4294967040 }
0x126a   :  { %3562 = vsyncpa [#allocation3], 1 }
0x126b   :  { %3563 = vsyncpa [#allocation6], 1 }
0x126c   :  { %3564 = vsyncpa [#allocation9], 1 }
0x126d   :  { %3565 = vsyncpa [#allocation12], 1 }
0x126e   :  { %3566 = vsyncpa [#allocation15], 1 }
0x126f   :  { %3567 = vsyncpa [#allocation18], 1 }
0x1270   :  { %3568 = vsyncpa [#allocation21], 1 }
0x1271   :  { %3569 = vsyncpa [#allocation24], 1 }
0x1272   :  { %3570 = vsyncpa [#allocation4], 1 }

</bundles_post_ra>
